<compile_context>
chip_gen: v5e
topology: v5e:2x2
jax: 0.10.0
libtpu: 0.0.40
codegen_flags: <defaults>
</compile_context>

<pallas_src>
from functools import partial
import math

import jax
import jax.numpy as jnp
from jax.experimental import pallas as pl
from jax.experimental.pallas import tpu as pltpu


def _silu(y):
    # y * sigmoid(y); the divide goes to the EUP approx-reciprocal slot.
    return y * pl.reciprocal(1.0 + jnp.exp(-y), approx=True)


def gsconv_kernel(x_ref, w1_ref, b1_ref, w2_ref, b2_ref, o_ref, xp_ref, *,
                  W, K, C_, TH, LPAD, WP):
    P = K // 2
    THp = TH + 2 * P
    t = pl.program_id(1)
    n_h = pl.num_programs(1)

    # ---- cv1: 1x1 pointwise conv (BN folded) + SiLU, recomputed for the halo rows ------
    # x_ref holds the whole zero-row-padded image for this batch element (resident across
    # the H-tile axis); take this tile's TH + 2P rows with a dynamic row slice.
    row0 = pl.multiple_of(t * TH, TH)
    x_win = x_ref[0, pl.ds(row0, THp), :, :]                       # (THp, W, C1)
    y1 = jnp.dot(x_win.reshape(THp * W, x_win.shape[-1]), w1_ref[...],
                 preferred_element_type=jnp.float32)               # (THp*W, C_) f32 acc
    x1 = _silu(y1 + b1_ref[...]).reshape(THp, W, C_)

    # ---- x1 half of the output: store now so x1 is not live across the tap loop --------
    o_ref[0, :, :, 0:C_] = x1[P:P + TH].astype(o_ref.dtype)

    # ---- stage x1 into the padded scratch; zero only the halo strips --------------------
    xp_ref[:, LPAD:LPAD + W, :] = x1.astype(xp_ref.dtype)          # sublane-aligned interior
    xp_ref[:, 0:LPAD, :] = jnp.zeros((THp, LPAD, C_), xp_ref.dtype)
    xp_ref[:, LPAD + W:WP, :] = jnp.zeros((THp, WP - LPAD - W, C_), xp_ref.dtype)

    @pl.when(t == 0)             # image top: conv padding rows are zeros, not SiLU(b1)
    def _():
        xp_ref[0:P, :, :] = jnp.zeros((P, WP, C_), xp_ref.dtype)

    @pl.when(t == n_h - 1)       # image bottom
    def _():
        xp_ref[THp - P:THp, :, :] = jnp.zeros((P, WP, C_), xp_ref.dtype)

    # ---- cv2: KxK depthwise conv (BN folded) + SiLU -------------------------------------
    # One aligned row-slab load per kernel row; the K column taps are static sublane
    # rotations (XLU) of that slab, accumulated on the VPU in f32. Wrapped / out-of-range
    # columns only land in the discarded [W, WP) tail (halo columns are zero).
    N2 = TH * WP
    acc = jnp.zeros((N2, C_), jnp.float32)
    for dh in range(K):
        slab = xp_ref[dh:dh + TH, :, :].astype(jnp.float32).reshape(N2, C_)
        for dw in range(K):
            off = (LPAD - P) + dw                      # scratch-column offset of this tap
            tap = w2_ref[dh * K + dw].reshape(1, C_)
            src = pltpu.roll(slab, (N2 - off) % N2, 0) if (off % N2) else slab
            acc = acc + src * tap
    y2 = acc.reshape(TH, WP, C_)[:, 0:W, :] + b2_ref[...].reshape(1, 1, C_)
    x2 = _silu(y2)

    # ---- x2 half of the output (full-C_-wide lane store; shuffle handled on host) -------
    o_ref[0, :, :, C_:2 * C_] = x2.astype(o_ref.dtype)


def gsconv_forward(x, w1, b1, w2, b2, *, compute_dtype=jnp.bfloat16,
                   scratch_dtype=None, out_dtype=jnp.float32, row_tile=8):
    """GSConv forward.

    x  : (B, C1, H, W)  NCHW (PyTorch layout)
    w1 : (C_, C1)       BN-folded pointwise conv weight      b1: (C_,)
    w2 : (C_, K, K)     BN-folded depthwise conv weight      b2: (C_,)
    compute_dtype : dtype of the cv1 MXU inputs (default bf16; accumulation stays f32)
    scratch_dtype : dtype of the padded depthwise scratch (default = compute_dtype)
    out_dtype     : kernel output dtype (f32 default; bf16 halves the writeback on v5e)
    returns (B, 2*C_, H, W) in out_dtype
    """
    B, C1, H, W = x.shape
    C_ = w1.shape[0]
    K = w2.shape[-1]
    assert w1.shape == (C_, C1), "cv1 must be a pointwise (k=1, s=1) conv"
    assert C_ % 2 == 0, "GSConv channel shuffle assumes c2//2 even"
    assert K % 2 == 1, "depthwise kernel must be odd-sized"
    if scratch_dtype is None:
        scratch_dtype = compute_dtype

    C2 = 2 * C_
    P = K // 2
    TH = math.gcd(H, max(1, row_tile))          # row tile (divides H)
    n_h = H // TH
    THp = TH + 2 * P
    LPAD = max(8, P)                            # sublane-aligned interior start column
    WP = -(-(LPAD + W + P) // 8) * 8            # scratch width, multiple of 8

    # ---- host-side layout plumbing (once per call) --------------------------------------
    # Compute channels in [even..., odd...] order so the channel shuffle reduces to a
    # contiguous 4-block reorder, folded into the final transpose back to NCHW.
    perm = jnp.concatenate([jnp.arange(0, C_, 2), jnp.arange(1, C_, 2)])
    w1_t = jnp.transpose(w1[perm], (1, 0)).astype(compute_dtype)                    # (C1, C_)
    b1_v = b1[perm].reshape(1, C_).astype(jnp.float32)                              # (1, C_)
    w2_t = jnp.transpose(w2[perm].reshape(C_, K * K), (1, 0)).astype(jnp.float32)   # (K*K, C_)
    b2_v = b2[perm].reshape(1, C_).astype(jnp.float32)                              # (1, C_)

    # channels-last input with P zero rows top/bottom so the halo row slice is uniform
    x_cl = jnp.transpose(x, (0, 2, 3, 1)).astype(compute_dtype)                     # (B, H, W, C1)
    x_pad = jnp.pad(x_cl, ((0, 0), (P, P), (0, 0), (0, 0)))                         # (B, H+2P, W, C1)

    isz = lambda dt: jnp.dtype(dt).itemsize
    vmem_est = (2 * (H + 2 * P) * W * C1 * isz(compute_dtype)      # resident x (dbl-buffered)
                + 2 * TH * W * C2 * isz(out_dtype)                 # output tile (dbl-buffered)
                + THp * WP * C_ * isz(scratch_dtype)               # padded scratch
                + (C1 * C_ + K * K * C_ + 2 * C_) * 4 * 2)         # weights / biases
    vmem_limit = int(min(64 << 20, max(32 << 20, 2 * vmem_est + (2 << 20))))

    kernel = partial(gsconv_kernel, W=W, K=K, C_=C_, TH=TH, LPAD=LPAD, WP=WP)
    out_cl = pl.pallas_call(
        kernel,
        out_shape=jax.ShapeDtypeStruct((B, H, W, C2), out_dtype),
        grid_spec=pltpu.PrefetchScalarGridSpec(
            num_scalar_prefetch=0,
            grid=(B, n_h),
            in_specs=[
                # Whole padded image per batch element; the index map ignores t so the
                # block stays resident in VMEM across the H-tile axis (one DMA per b).
                # TODO(synk): for very large H*W*C1 switch this to a (TH+2P)-row halo
                #             block (manual halo DMA / pl.Element) to bound VMEM.
                pl.BlockSpec((1, H + 2 * P, W, C1), lambda b, t: (b, 0, 0, 0)),
                pl.BlockSpec((C1, C_), lambda b, t: (0, 0)),
                pl.BlockSpec((1, C_), lambda b, t: (0, 0)),
                pl.BlockSpec((K * K, C_), lambda b, t: (0, 0)),
                pl.BlockSpec((1, C_), lambda b, t: (0, 0)),
            ],
            out_specs=pl.BlockSpec((1, TH, W, C2), lambda b, t: (b, t, 0, 0)),
            scratch_shapes=[pltpu.VMEM((THp, WP, C_), scratch_dtype)],
        ),
        compiler_params=pltpu.CompilerParams(
            dimension_semantics=("parallel", "parallel"),
            vmem_limit_bytes=vmem_limit),
    )(x_pad, w1_t, b1_v, w2_t, b2_v)

    # ---- channel shuffle folded into the transpose back to NCHW -------------------------
    # kernel channel layout is [x1' | x2'] (already even/odd-permuted); the shuffle is the
    # coarse 4-block reorder [x1'[:h], x2'[:h], x1'[h:], x2'[h:]], fused into this copy.
    half = C_ // 2
    final_perm = jnp.concatenate([
        jnp.arange(0, half), jnp.arange(C_, C_ + half),
        jnp.arange(half, C_), jnp.arange(C_ + half, 2 * C_)])
    return jnp.transpose(out_cl, (0, 3, 1, 2))[:, final_perm]


# ---------------------------- parameter setup --------------------------------
_EPS = 1e-3  # Ultralytics Conv uses BatchNorm2d(eps=0.001)


def init_params(key, c1, c2, k_cv1=1, k_cv2=5):
    c_ = c2 // 2
    k1, k2, k3, k4 = jax.random.split(key, 4)
    # Conv2d has bias=False inside the YOLO Conv block.
    w_cv1 = 0.1 * jax.random.normal(k1, (c_, c1, k_cv1, k_cv1), jnp.float32)
    w_cv2 = 0.1 * jax.random.normal(k2, (c_, 1, k_cv2, k_cv2), jnp.float32)  # depthwise OIHW (I=1)

    def bn_params(key, c):
        gamma = 1.0 + 0.1 * jax.random.normal(key, (c,), jnp.float32)
        beta = 0.05 * jnp.arange(c, dtype=jnp.float32)
        mean = 0.01 * jnp.arange(c, dtype=jnp.float32)
        var = 0.9 * jnp.ones((c,), jnp.float32)
        return gamma, beta, mean, var

    return w_cv1, bn_params(k3, c_), w_cv2, bn_params(k4, c_)


def fold_bn(w_conv, bn, depthwise=False):
    gamma, beta, mean, var = bn
    scale = gamma / jnp.sqrt(var + _EPS)
    bias = beta - mean * scale
    if depthwise:
        w = w_conv[:, 0] * scale[:, None, None]          # (C_, K, K)
    else:
        assert w_conv.shape[2:] == (1, 1), "cv1 must be k=1"
        w = w_conv[:, :, 0, 0] * scale[:, None]          # (C_, C1)
    return w, bias                                       # bias: (C_,)


# ---------------------------- pure-JAX reference ------------------------------
def gsconv_reference(x, w_cv1, bn1, w_cv2, bn2):
    def conv(x, w, pad, groups):
        return jax.lax.conv_general_dilated(
            x, w, (1, 1), [(pad, pad), (pad, pad)],
            feature_group_count=groups,
            dimension_numbers=("NCHW", "OIHW", "NCHW"))

    def bn_apply(x, bn):
        gamma, beta, mean, var = bn
        s = gamma / jnp.sqrt(var + _EPS)
        return x * s[None, :, None, None] + (beta - mean * s)[None, :, None, None]

    def silu(v):
        return v * jax.nn.sigmoid(v)

    c_ = w_cv1.shape[0]
    x1 = silu(bn_apply(conv(x, w_cv1, 0, 1), bn1))
    x2b = silu(bn_apply(conv(x1, w_cv2, 2, c_), bn2))
    x2 = jnp.concatenate([x1, x2b], axis=1)
    b, n, h, w = x2.shape
    y = x2.reshape(b * n // 2, 2, h * w)
    y = jnp.transpose(y, (1, 0, 2))
    y = y.reshape(2, -1, n // 2, h, w)
    return jnp.concatenate([y[0], y[1]], axis=1)


if __name__ == "__main__":
    key = jax.random.PRNGKey(0)
    kx, kp = jax.random.split(key)

    B, C1, C2, H, W = 2, 4, 8, 16, 16
    x = jax.random.normal(kx, (B, C1, H, W), jnp.float32)

    w_cv1, bn1, w_cv2, bn2 = init_params(kp, C1, C2)
    w1, b1 = fold_bn(w_cv1, bn1, depthwise=False)   # (C_, C1), (C_,)
    w2, b2 = fold_bn(w_cv2, bn2, depthwise=True)    # (C_, 5, 5), (C_,)

    ref = jax.block_until_ready(gsconv_reference(x, w_cv1, bn1, w_cv2, bn2))

    # f32 path: structural check (tolerance covers the EUP approx-reciprocal SiLU)
    out_f32 = jax.block_until_ready(
        gsconv_forward(x, w1, b1, w2, b2, compute_dtype=jnp.float32))
    assert out_f32.shape == (B, C2, H, W), out_f32.shape
    err32 = float(jnp.max(jnp.abs(out_f32 - ref)))
    assert jnp.allclose(out_f32, ref, atol=2e-2, rtol=2e-2), err32

    # default path: bf16 MXU inputs + bf16 depthwise scratch (f32 accumulation)
    out_bf = jax.block_until_ready(gsconv_forward(x, w1, b1, w2, b2))
    assert out_bf.shape == (B, C2, H, W), out_bf.shape
    errbf = float(jnp.max(jnp.abs(out_bf - ref)))
    assert jnp.allclose(out_bf, ref, atol=1e-1, rtol=1e-1), errbf

    print("KERNEL_OK")
</pallas_src>

<mosaic_0001>
module attributes {stable_mosaic.version = 11 : i64} {
  func.func @gsconv_kernel(%arg0: i32, %arg1: i32, %arg2: memref<1x20x16x4xf32, #tpu.memory_space<vmem>>, %arg3: memref<4x4xf32, #tpu.memory_space<vmem>>, %arg4: memref<1x4xf32, #tpu.memory_space<vmem>>, %arg5: memref<25x4xf32, #tpu.memory_space<vmem>>, %arg6: memref<1x4xf32, #tpu.memory_space<vmem>>, %arg7: memref<1x8x16x8xf32, #tpu.memory_space<vmem>>, %arg8: memref<12x32x4xf32, #tpu.memory_space<vmem>>) attributes {dimension_semantics = [#tpu.dimension_semantics<parallel>, #tpu.dimension_semantics<parallel>], iteration_bounds = array<i64: 2, 2>, scalar_prefetch = 0 : i64, scratch_operands = 1 : i64, tpu.core_type = #tpu.core_type<tc>, window_params = [{transform_indices = @transform_0, window_bounds = array<i64: 1, 20, 16, 4>}, {pipeline_mode = #tpu.pipeline_mode<synchronous>, transform_indices = @transform_1, window_bounds = array<i64: 4, 4>}, {pipeline_mode = #tpu.pipeline_mode<synchronous>, transform_indices = @transform_2, window_bounds = array<i64: 1, 4>}, {pipeline_mode = #tpu.pipeline_mode<synchronous>, transform_indices = @transform_3, window_bounds = array<i64: 25, 4>}, {pipeline_mode = #tpu.pipeline_mode<synchronous>, transform_indices = @transform_4, window_bounds = array<i64: 1, 4>}, {transform_indices = @transform_5, window_bounds = array<i64: 1, 8, 16, 8>}]} {
    %c8_i32 = arith.constant 8 : i32
    %0 = arith.muli %arg1, %c8_i32 : i32
    %1 = tpu.assume_multiple %0, 8 : i32
    %c0 = arith.constant 0 : index
    %2 = arith.index_cast %1 : i32 to index
    %c0_0 = arith.constant 0 : index
    %c0_1 = arith.constant 0 : index
    %3 = vector.load %arg2[%c0, %2, %c0_0, %c0_1] : memref<1x20x16x4xf32, #tpu.memory_space<vmem>>, vector<1x12x16x4xf32>
    %4 = vector.shape_cast %3 : vector<1x12x16x4xf32> to vector<12x16x4xf32>
    %5 = vector.shape_cast %4 : vector<12x16x4xf32> to vector<192x4xf32>
    %c0_2 = arith.constant 0 : index
    %c0_3 = arith.constant 0 : index
    %6 = vector.load %arg3[%c0_2, %c0_3] : memref<4x4xf32, #tpu.memory_space<vmem>>, vector<4x4xf32>
    %cst = arith.constant dense<0.000000e+00> : vector<192x4xf32>
    %7 = tpu.matmul %5, %6, %cst {dimension_numbers = #tpu.dot_dimension_numbers<[1], [0], [0], [1], [0, 0, 1, 1], [], []>} : vector<192x4xf32>, vector<4x4xf32>, vector<192x4xf32> -> vector<192x4xf32>
    %c0_4 = arith.constant 0 : index
    %c0_5 = arith.constant 0 : index
    %8 = vector.load %arg4[%c0_4, %c0_5] : memref<1x4xf32, #tpu.memory_space<vmem>>, vector<1x4xf32>
    %9 = vector.broadcast %8 : vector<1x4xf32> to vector<192x4xf32>
    %10 = arith.addf %7, %9 : vector<192x4xf32>
    %cst_6 = arith.constant 0.000000e+00 : f32
    %11 = vector.broadcast %cst_6 : f32 to vector<192x4xf32>
    %12 = arith.subf %11, %10 : vector<192x4xf32>
    %13 = math.exp %12 : vector<192x4xf32>
    %cst_7 = arith.constant 1.000000e+00 : f32
    %14 = vector.broadcast %cst_7 : f32 to vector<192x4xf32>
    %15 = arith.addf %14, %13 : vector<192x4xf32>
    %16 = tpu.reciprocal %15 {approx = true} : vector<192x4xf32> -> vector<192x4xf32>
    %17 = arith.mulf %10, %16 : vector<192x4xf32>
    %18 = vector.shape_cast %17 : vector<192x4xf32> to vector<12x16x4xf32>
    %19 = vector.extract_strided_slice %18 {offsets = [2, 0, 0], sizes = [8, 16, 4], strides = [1, 1, 1]} : vector<12x16x4xf32> to vector<8x16x4xf32>
    %c0_8 = arith.constant 0 : index
    %c0_9 = arith.constant 0 : index
    %c0_10 = arith.constant 0 : index
    %c0_11 = arith.constant 0 : index
    %20 = vector.load %arg7[%c0_8, %c0_9, %c0_10, %c0_11] : memref<1x8x16x8xf32, #tpu.memory_space<vmem>>, vector<1x8x16x4xf32>
    %21 = vector.shape_cast %20 : vector<1x8x16x4xf32> to vector<8x16x4xf32>
    %22 = vector.shape_cast %19 : vector<8x16x4xf32> to vector<1x8x16x4xf32>
    tpu.vector_store %arg7[%c0_8, %c0_9, %c0_10, %c0_11], %22 {strides = array<i32>} : memref<1x8x16x8xf32, #tpu.memory_space<vmem>>, vector<1x8x16x4xf32>,
    %c0_12 = arith.constant 0 : index
    %c8 = arith.constant 8 : index
    %c0_13 = arith.constant 0 : index
    %23 = vector.load %arg8[%c0_12, %c8, %c0_13] : memref<12x32x4xf32, #tpu.memory_space<vmem>>, vector<12x16x4xf32>
    tpu.vector_store %arg8[%c0_12, %c8, %c0_13], %18 {strides = array<i32>} : memref<12x32x4xf32, #tpu.memory_space<vmem>>, vector<12x16x4xf32>,
    %cst_14 = arith.constant 0.000000e+00 : f32
    %24 = vector.broadcast %cst_14 : f32 to vector<12x8x4xf32>
    %c0_15 = arith.constant 0 : index
    %c0_16 = arith.constant 0 : index
    %c0_17 = arith.constant 0 : index
    %25 = vector.load %arg8[%c0_15, %c0_16, %c0_17] : memref<12x32x4xf32, #tpu.memory_space<vmem>>, vector<12x8x4xf32>
    tpu.vector_store %arg8[%c0_15, %c0_16, %c0_17], %24 {strides = array<i32>} : memref<12x32x4xf32, #tpu.memory_space<vmem>>, vector<12x8x4xf32>,
    %cst_18 = arith.constant 0.000000e+00 : f32
    %26 = vector.broadcast %cst_18 : f32 to vector<12x8x4xf32>
    %c0_19 = arith.constant 0 : index
    %c24 = arith.constant 24 : index
    %c0_20 = arith.constant 0 : index
    %27 = vector.load %arg8[%c0_19, %c24, %c0_20] : memref<12x32x4xf32, #tpu.memory_space<vmem>>, vector<12x8x4xf32>
    tpu.vector_store %arg8[%c0_19, %c24, %c0_20], %26 {strides = array<i32>} : memref<12x32x4xf32, #tpu.memory_space<vmem>>, vector<12x8x4xf32>,
    %c0_i32 = arith.constant 0 : i32
    %28 = arith.cmpi eq, %arg1, %c0_i32 : i32
    %29 = arith.extui %28 : i1 to i32
    %c0_i32_21 = arith.constant 0 : i32
    %30 = arith.cmpi ne, %29, %c0_i32_21 : i32
    scf.if %30 {
      %cst_95 = arith.constant 0.000000e+00 : f32
      %236 = vector.broadcast %cst_95 : f32 to vector<2x32x4xf32>
      %c0_96 = arith.constant 0 : index
      %c0_97 = arith.constant 0 : index
      %c0_98 = arith.constant 0 : index
      %237 = vector.load %arg8[%c0_96, %c0_97, %c0_98] : memref<12x32x4xf32, #tpu.memory_space<vmem>>, vector<2x32x4xf32>
      tpu.vector_store %arg8[%c0_96, %c0_97, %c0_98], %236 {strides = array<i32>} : memref<12x32x4xf32, #tpu.memory_space<vmem>>, vector<2x32x4xf32>,
    } else {
    }
    %c1_i32 = arith.constant 1 : i32
    %31 = arith.cmpi eq, %arg1, %c1_i32 : i32
    %32 = arith.extui %31 : i1 to i32
    %c0_i32_22 = arith.constant 0 : i32
    %33 = arith.cmpi ne, %32, %c0_i32_22 : i32
    scf.if %33 {
      %cst_95 = arith.constant 0.000000e+00 : f32
      %236 = vector.broadcast %cst_95 : f32 to vector<2x32x4xf32>
      %c10_96 = arith.constant 10 : index
      %c0_97 = arith.constant 0 : index
      %c0_98 = arith.constant 0 : index
      %237 = vector.load %arg8[%c10_96, %c0_97, %c0_98] : memref<12x32x4xf32, #tpu.memory_space<vmem>>, vector<2x32x4xf32>
      tpu.vector_store %arg8[%c10_96, %c0_97, %c0_98], %236 {strides = array<i32>} : memref<12x32x4xf32, #tpu.memory_space<vmem>>, vector<2x32x4xf32>,
    } else {
    }
    %cst_23 = arith.constant 0.000000e+00 : f32
    %34 = vector.broadcast %cst_23 : f32 to vector<256x4xf32>
    %c0_24 = arith.constant 0 : index
    %c0_25 = arith.constant 0 : index
    %c0_26 = arith.constant 0 : index
    %35 = vector.load %arg8[%c0_24, %c0_25, %c0_26] : memref<12x32x4xf32, #tpu.memory_space<vmem>>, vector<8x32x4xf32>
    %36 = vector.shape_cast %35 : vector<8x32x4xf32> to vector<256x4xf32>
    %c0_27 = arith.constant 0 : index
    %c0_28 = arith.constant 0 : index
    %37 = vector.load %arg5[%c0_27, %c0_28] : memref<25x4xf32, #tpu.memory_space<vmem>>, vector<1x4xf32>
    %38 = vector.shape_cast %37 : vector<1x4xf32> to vector<4xf32>
    %39 = vector.shape_cast %38 : vector<4xf32> to vector<1x4xf32>
    %c250_i32 = arith.constant 250 : i32
    %40 = tpu.dynamic_rotate %36 by %c250_i32 dim 0 : vector<256x4xf32>, i32 -> vector<256x4xf32>
    %41 = vector.broadcast %39 : vector<1x4xf32> to vector<256x4xf32>
    %42 = arith.mulf %40, %41 : vector<256x4xf32>
    %43 = arith.addf %34, %42 : vector<256x4xf32>
    %c1 = arith.constant 1 : index
    %c0_29 = arith.constant 0 : index
    %44 = vector.load %arg5[%c1, %c0_29] : memref<25x4xf32, #tpu.memory_space<vmem>>, vector<1x4xf32>
    %45 = vector.shape_cast %44 : vector<1x4xf32> to vector<4xf32>
    %46 = vector.shape_cast %45 : vector<4xf32> to vector<1x4xf32>
    %c249_i32 = arith.constant 249 : i32
    %47 = tpu.dynamic_rotate %36 by %c249_i32 dim 0 : vector<256x4xf32>, i32 -> vector<256x4xf32>
    %48 = vector.broadcast %46 : vector<1x4xf32> to vector<256x4xf32>
    %49 = arith.mulf %47, %48 : vector<256x4xf32>
    %50 = arith.addf %43, %49 : vector<256x4xf32>
    %c2 = arith.constant 2 : index
    %c0_30 = arith.constant 0 : index
    %51 = vector.load %arg5[%c2, %c0_30] : memref<25x4xf32, #tpu.memory_space<vmem>>, vector<1x4xf32>
    %52 = vector.shape_cast %51 : vector<1x4xf32> to vector<4xf32>
    %53 = vector.shape_cast %52 : vector<4xf32> to vector<1x4xf32>
    %c248_i32 = arith.constant 248 : i32
    %54 = tpu.dynamic_rotate %36 by %c248_i32 dim 0 : vector<256x4xf32>, i32 -> vector<256x4xf32>
    %55 = vector.broadcast %53 : vector<1x4xf32> to vector<256x4xf32>
    %56 = arith.mulf %54, %55 : vector<256x4xf32>
    %57 = arith.addf %50, %56 : vector<256x4xf32>
    %c3 = arith.constant 3 : index
    %c0_31 = arith.constant 0 : index
    %58 = vector.load %arg5[%c3, %c0_31] : memref<25x4xf32, #tpu.memory_space<vmem>>, vector<1x4xf32>
    %59 = vector.shape_cast %58 : vector<1x4xf32> to vector<4xf32>
    %60 = vector.shape_cast %59 : vector<4xf32> to vector<1x4xf32>
    %c247_i32 = arith.constant 247 : i32
    %61 = tpu.dynamic_rotate %36 by %c247_i32 dim 0 : vector<256x4xf32>, i32 -> vector<256x4xf32>
    %62 = vector.broadcast %60 : vector<1x4xf32> to vector<256x4xf32>
    %63 = arith.mulf %61, %62 : vector<256x4xf32>
    %64 = arith.addf %57, %63 : vector<256x4xf32>
    %c4 = arith.constant 4 : index
    %c0_32 = arith.constant 0 : index
    %65 = vector.load %arg5[%c4, %c0_32] : memref<25x4xf32, #tpu.memory_space<vmem>>, vector<1x4xf32>
    %66 = vector.shape_cast %65 : vector<1x4xf32> to vector<4xf32>
    %67 = vector.shape_cast %66 : vector<4xf32> to vector<1x4xf32>
    %c246_i32 = arith.constant 246 : i32
    %68 = tpu.dynamic_rotate %36 by %c246_i32 dim 0 : vector<256x4xf32>, i32 -> vector<256x4xf32>
    %69 = vector.broadcast %67 : vector<1x4xf32> to vector<256x4xf32>
    %70 = arith.mulf %68, %69 : vector<256x4xf32>
    %71 = arith.addf %64, %70 : vector<256x4xf32>
    %c1_33 = arith.constant 1 : index
    %c0_34 = arith.constant 0 : index
    %c0_35 = arith.constant 0 : index
    %72 = vector.load %arg8[%c1_33, %c0_34, %c0_35] : memref<12x32x4xf32, #tpu.memory_space<vmem>>, vector<8x32x4xf32>
    %73 = vector.shape_cast %72 : vector<8x32x4xf32> to vector<256x4xf32>
    %c5 = arith.constant 5 : index
    %c0_36 = arith.constant 0 : index
    %74 = vector.load %arg5[%c5, %c0_36] : memref<25x4xf32, #tpu.memory_space<vmem>>, vector<1x4xf32>
    %75 = vector.shape_cast %74 : vector<1x4xf32> to vector<4xf32>
    %76 = vector.shape_cast %75 : vector<4xf32> to vector<1x4xf32>
    %c250_i32_37 = arith.constant 250 : i32
    %77 = tpu.dynamic_rotate %73 by %c250_i32_37 dim 0 : vector<256x4xf32>, i32 -> vector<256x4xf32>
    %78 = vector.broadcast %76 : vector<1x4xf32> to vector<256x4xf32>
    %79 = arith.mulf %77, %78 : vector<256x4xf32>
    %80 = arith.addf %71, %79 : vector<256x4xf32>
    %c6 = arith.constant 6 : index
    %c0_38 = arith.constant 0 : index
    %81 = vector.load %arg5[%c6, %c0_38] : memref<25x4xf32, #tpu.memory_space<vmem>>, vector<1x4xf32>
    %82 = vector.shape_cast %81 : vector<1x4xf32> to vector<4xf32>
    %83 = vector.shape_cast %82 : vector<4xf32> to vector<1x4xf32>
    %c249_i32_39 = arith.constant 249 : i32
    %84 = tpu.dynamic_rotate %73 by %c249_i32_39 dim 0 : vector<256x4xf32>, i32 -> vector<256x4xf32>
    %85 = vector.broadcast %83 : vector<1x4xf32> to vector<256x4xf32>
    %86 = arith.mulf %84, %85 : vector<256x4xf32>
    %87 = arith.addf %80, %86 : vector<256x4xf32>
    %c7 = arith.constant 7 : index
    %c0_40 = arith.constant 0 : index
    %88 = vector.load %arg5[%c7, %c0_40] : memref<25x4xf32, #tpu.memory_space<vmem>>, vector<1x4xf32>
    %89 = vector.shape_cast %88 : vector<1x4xf32> to vector<4xf32>
    %90 = vector.shape_cast %89 : vector<4xf32> to vector<1x4xf32>
    %c248_i32_41 = arith.constant 248 : i32
    %91 = tpu.dynamic_rotate %73 by %c248_i32_41 dim 0 : vector<256x4xf32>, i32 -> vector<256x4xf32>
    %92 = vector.broadcast %90 : vector<1x4xf32> to vector<256x4xf32>
    %93 = arith.mulf %91, %92 : vector<256x4xf32>
    %94 = arith.addf %87, %93 : vector<256x4xf32>
    %c8_42 = arith.constant 8 : index
    %c0_43 = arith.constant 0 : index
    %95 = vector.load %arg5[%c8_42, %c0_43] : memref<25x4xf32, #tpu.memory_space<vmem>>, vector<1x4xf32>
    %96 = vector.shape_cast %95 : vector<1x4xf32> to vector<4xf32>
    %97 = vector.shape_cast %96 : vector<4xf32> to vector<1x4xf32>
    %c247_i32_44 = arith.constant 247 : i32
    %98 = tpu.dynamic_rotate %73 by %c247_i32_44 dim 0 : vector<256x4xf32>, i32 -> vector<256x4xf32>
    %99 = vector.broadcast %97 : vector<1x4xf32> to vector<256x4xf32>
    %100 = arith.mulf %98, %99 : vector<256x4xf32>
    %101 = arith.addf %94, %100 : vector<256x4xf32>
    %c9 = arith.constant 9 : index
    %c0_45 = arith.constant 0 : index
    %102 = vector.load %arg5[%c9, %c0_45] : memref<25x4xf32, #tpu.memory_space<vmem>>, vector<1x4xf32>
    %103 = vector.shape_cast %102 : vector<1x4xf32> to vector<4xf32>
    %104 = vector.shape_cast %103 : vector<4xf32> to vector<1x4xf32>
    %c246_i32_46 = arith.constant 246 : i32
    %105 = tpu.dynamic_rotate %73 by %c246_i32_46 dim 0 : vector<256x4xf32>, i32 -> vector<256x4xf32>
    %106 = vector.broadcast %104 : vector<1x4xf32> to vector<256x4xf32>
    %107 = arith.mulf %105, %106 : vector<256x4xf32>
    %108 = arith.addf %101, %107 : vector<256x4xf32>
    %c2_47 = arith.constant 2 : index
    %c0_48 = arith.constant 0 : index
    %c0_49 = arith.constant 0 : index
    %109 = vector.load %arg8[%c2_47, %c0_48, %c0_49] : memref<12x32x4xf32, #tpu.memory_space<vmem>>, vector<8x32x4xf32>
    %110 = vector.shape_cast %109 : vector<8x32x4xf32> to vector<256x4xf32>
    %c10 = arith.constant 10 : index
    %c0_50 = arith.constant 0 : index
    %111 = vector.load %arg5[%c10, %c0_50] : memref<25x4xf32, #tpu.memory_space<vmem>>, vector<1x4xf32>
    %112 = vector.shape_cast %111 : vector<1x4xf32> to vector<4xf32>
    %113 = vector.shape_cast %112 : vector<4xf32> to vector<1x4xf32>
    %c250_i32_51 = arith.constant 250 : i32
    %114 = tpu.dynamic_rotate %110 by %c250_i32_51 dim 0 : vector<256x4xf32>, i32 -> vector<256x4xf32>
    %115 = vector.broadcast %113 : vector<1x4xf32> to vector<256x4xf32>
    %116 = arith.mulf %114, %115 : vector<256x4xf32>
    %117 = arith.addf %108, %116 : vector<256x4xf32>
    %c11 = arith.constant 11 : index
    %c0_52 = arith.constant 0 : index
    %118 = vector.load %arg5[%c11, %c0_52] : memref<25x4xf32, #tpu.memory_space<vmem>>, vector<1x4xf32>
    %119 = vector.shape_cast %118 : vector<1x4xf32> to vector<4xf32>
    %120 = vector.shape_cast %119 : vector<4xf32> to vector<1x4xf32>
    %c249_i32_53 = arith.constant 249 : i32
    %121 = tpu.dynamic_rotate %110 by %c249_i32_53 dim 0 : vector<256x4xf32>, i32 -> vector<256x4xf32>
    %122 = vector.broadcast %120 : vector<1x4xf32> to vector<256x4xf32>
    %123 = arith.mulf %121, %122 : vector<256x4xf32>
    %124 = arith.addf %117, %123 : vector<256x4xf32>
    %c12 = arith.constant 12 : index
    %c0_54 = arith.constant 0 : index
    %125 = vector.load %arg5[%c12, %c0_54] : memref<25x4xf32, #tpu.memory_space<vmem>>, vector<1x4xf32>
    %126 = vector.shape_cast %125 : vector<1x4xf32> to vector<4xf32>
    %127 = vector.shape_cast %126 : vector<4xf32> to vector<1x4xf32>
    %c248_i32_55 = arith.constant 248 : i32
    %128 = tpu.dynamic_rotate %110 by %c248_i32_55 dim 0 : vector<256x4xf32>, i32 -> vector<256x4xf32>
    %129 = vector.broadcast %127 : vector<1x4xf32> to vector<256x4xf32>
    %130 = arith.mulf %128, %129 : vector<256x4xf32>
    %131 = arith.addf %124, %130 : vector<256x4xf32>
    %c13 = arith.constant 13 : index
    %c0_56 = arith.constant 0 : index
    %132 = vector.load %arg5[%c13, %c0_56] : memref<25x4xf32, #tpu.memory_space<vmem>>, vector<1x4xf32>
    %133 = vector.shape_cast %132 : vector<1x4xf32> to vector<4xf32>
    %134 = vector.shape_cast %133 : vector<4xf32> to vector<1x4xf32>
    %c247_i32_57 = arith.constant 247 : i32
    %135 = tpu.dynamic_rotate %110 by %c247_i32_57 dim 0 : vector<256x4xf32>, i32 -> vector<256x4xf32>
    %136 = vector.broadcast %134 : vector<1x4xf32> to vector<256x4xf32>
    %137 = arith.mulf %135, %136 : vector<256x4xf32>
    %138 = arith.addf %131, %137 : vector<256x4xf32>
    %c14 = arith.constant 14 : index
    %c0_58 = arith.constant 0 : index
    %139 = vector.load %arg5[%c14, %c0_58] : memref<25x4xf32, #tpu.memory_space<vmem>>, vector<1x4xf32>
    %140 = vector.shape_cast %139 : vector<1x4xf32> to vector<4xf32>
    %141 = vector.shape_cast %140 : vector<4xf32> to vector<1x4xf32>
    %c246_i32_59 = arith.constant 246 : i32
    %142 = tpu.dynamic_rotate %110 by %c246_i32_59 dim 0 : vector<256x4xf32>, i32 -> vector<256x4xf32>
    %143 = vector.broadcast %141 : vector<1x4xf32> to vector<256x4xf32>
    %144 = arith.mulf %142, %143 : vector<256x4xf32>
    %145 = arith.addf %138, %144 : vector<256x4xf32>
    %c3_60 = arith.constant 3 : index
    %c0_61 = arith.constant 0 : index
    %c0_62 = arith.constant 0 : index
    %146 = vector.load %arg8[%c3_60, %c0_61, %c0_62] : memref<12x32x4xf32, #tpu.memory_space<vmem>>, vector<8x32x4xf32>
    %147 = vector.shape_cast %146 : vector<8x32x4xf32> to vector<256x4xf32>
    %c15 = arith.constant 15 : index
    %c0_63 = arith.constant 0 : index
    %148 = vector.load %arg5[%c15, %c0_63] : memref<25x4xf32, #tpu.memory_space<vmem>>, vector<1x4xf32>
    %149 = vector.shape_cast %148 : vector<1x4xf32> to vector<4xf32>
    %150 = vector.shape_cast %149 : vector<4xf32> to vector<1x4xf32>
    %c250_i32_64 = arith.constant 250 : i32
    %151 = tpu.dynamic_rotate %147 by %c250_i32_64 dim 0 : vector<256x4xf32>, i32 -> vector<256x4xf32>
    %152 = vector.broadcast %150 : vector<1x4xf32> to vector<256x4xf32>
    %153 = arith.mulf %151, %152 : vector<256x4xf32>
    %154 = arith.addf %145, %153 : vector<256x4xf32>
    %c16 = arith.constant 16 : index
    %c0_65 = arith.constant 0 : index
    %155 = vector.load %arg5[%c16, %c0_65] : memref<25x4xf32, #tpu.memory_space<vmem>>, vector<1x4xf32>
    %156 = vector.shape_cast %155 : vector<1x4xf32> to vector<4xf32>
    %157 = vector.shape_cast %156 : vector<4xf32> to vector<1x4xf32>
    %c249_i32_66 = arith.constant 249 : i32
    %158 = tpu.dynamic_rotate %147 by %c249_i32_66 dim 0 : vector<256x4xf32>, i32 -> vector<256x4xf32>
    %159 = vector.broadcast %157 : vector<1x4xf32> to vector<256x4xf32>
    %160 = arith.mulf %158, %159 : vector<256x4xf32>
    %161 = arith.addf %154, %160 : vector<256x4xf32>
    %c17 = arith.constant 17 : index
    %c0_67 = arith.constant 0 : index
    %162 = vector.load %arg5[%c17, %c0_67] : memref<25x4xf32, #tpu.memory_space<vmem>>, vector<1x4xf32>
    %163 = vector.shape_cast %162 : vector<1x4xf32> to vector<4xf32>
    %164 = vector.shape_cast %163 : vector<4xf32> to vector<1x4xf32>
    %c248_i32_68 = arith.constant 248 : i32
    %165 = tpu.dynamic_rotate %147 by %c248_i32_68 dim 0 : vector<256x4xf32>, i32 -> vector<256x4xf32>
    %166 = vector.broadcast %164 : vector<1x4xf32> to vector<256x4xf32>
    %167 = arith.mulf %165, %166 : vector<256x4xf32>
    %168 = arith.addf %161, %167 : vector<256x4xf32>
    %c18 = arith.constant 18 : index
    %c0_69 = arith.constant 0 : index
    %169 = vector.load %arg5[%c18, %c0_69] : memref<25x4xf32, #tpu.memory_space<vmem>>, vector<1x4xf32>
    %170 = vector.shape_cast %169 : vector<1x4xf32> to vector<4xf32>
    %171 = vector.shape_cast %170 : vector<4xf32> to vector<1x4xf32>
    %c247_i32_70 = arith.constant 247 : i32
    %172 = tpu.dynamic_rotate %147 by %c247_i32_70 dim 0 : vector<256x4xf32>, i32 -> vector<256x4xf32>
    %173 = vector.broadcast %171 : vector<1x4xf32> to vector<256x4xf32>
    %174 = arith.mulf %172, %173 : vector<256x4xf32>
    %175 = arith.addf %168, %174 : vector<256x4xf32>
    %c19 = arith.constant 19 : index
    %c0_71 = arith.constant 0 : index
    %176 = vector.load %arg5[%c19, %c0_71] : memref<25x4xf32, #tpu.memory_space<vmem>>, vector<1x4xf32>
    %177 = vector.shape_cast %176 : vector<1x4xf32> to vector<4xf32>
    %178 = vector.shape_cast %177 : vector<4xf32> to vector<1x4xf32>
    %c246_i32_72 = arith.constant 246 : i32
    %179 = tpu.dynamic_rotate %147 by %c246_i32_72 dim 0 : vector<256x4xf32>, i32 -> vector<256x4xf32>
    %180 = vector.broadcast %178 : vector<1x4xf32> to vector<256x4xf32>
    %181 = arith.mulf %179, %180 : vector<256x4xf32>
    %182 = arith.addf %175, %181 : vector<256x4xf32>
    %c4_73 = arith.constant 4 : index
    %c0_74 = arith.constant 0 : index
    %c0_75 = arith.constant 0 : index
    %183 = vector.load %arg8[%c4_73, %c0_74, %c0_75] : memref<12x32x4xf32, #tpu.memory_space<vmem>>, vector<8x32x4xf32>
    %184 = vector.shape_cast %183 : vector<8x32x4xf32> to vector<256x4xf32>
    %c20 = arith.constant 20 : index
    %c0_76 = arith.constant 0 : index
    %185 = vector.load %arg5[%c20, %c0_76] : memref<25x4xf32, #tpu.memory_space<vmem>>, vector<1x4xf32>
    %186 = vector.shape_cast %185 : vector<1x4xf32> to vector<4xf32>
    %187 = vector.shape_cast %186 : vector<4xf32> to vector<1x4xf32>
    %c250_i32_77 = arith.constant 250 : i32
    %188 = tpu.dynamic_rotate %184 by %c250_i32_77 dim 0 : vector<256x4xf32>, i32 -> vector<256x4xf32>
    %189 = vector.broadcast %187 : vector<1x4xf32> to vector<256x4xf32>
    %190 = arith.mulf %188, %189 : vector<256x4xf32>
    %191 = arith.addf %182, %190 : vector<256x4xf32>
    %c21 = arith.constant 21 : index
    %c0_78 = arith.constant 0 : index
    %192 = vector.load %arg5[%c21, %c0_78] : memref<25x4xf32, #tpu.memory_space<vmem>>, vector<1x4xf32>
    %193 = vector.shape_cast %192 : vector<1x4xf32> to vector<4xf32>
    %194 = vector.shape_cast %193 : vector<4xf32> to vector<1x4xf32>
    %c249_i32_79 = arith.constant 249 : i32
    %195 = tpu.dynamic_rotate %184 by %c249_i32_79 dim 0 : vector<256x4xf32>, i32 -> vector<256x4xf32>
    %196 = vector.broadcast %194 : vector<1x4xf32> to vector<256x4xf32>
    %197 = arith.mulf %195, %196 : vector<256x4xf32>
    %198 = arith.addf %191, %197 : vector<256x4xf32>
    %c22 = arith.constant 22 : index
    %c0_80 = arith.constant 0 : index
    %199 = vector.load %arg5[%c22, %c0_80] : memref<25x4xf32, #tpu.memory_space<vmem>>, vector<1x4xf32>
    %200 = vector.shape_cast %199 : vector<1x4xf32> to vector<4xf32>
    %201 = vector.shape_cast %200 : vector<4xf32> to vector<1x4xf32>
    %c248_i32_81 = arith.constant 248 : i32
    %202 = tpu.dynamic_rotate %184 by %c248_i32_81 dim 0 : vector<256x4xf32>, i32 -> vector<256x4xf32>
    %203 = vector.broadcast %201 : vector<1x4xf32> to vector<256x4xf32>
    %204 = arith.mulf %202, %203 : vector<256x4xf32>
    %205 = arith.addf %198, %204 : vector<256x4xf32>
    %c23 = arith.constant 23 : index
    %c0_82 = arith.constant 0 : index
    %206 = vector.load %arg5[%c23, %c0_82] : memref<25x4xf32, #tpu.memory_space<vmem>>, vector<1x4xf32>
    %207 = vector.shape_cast %206 : vector<1x4xf32> to vector<4xf32>
    %208 = vector.shape_cast %207 : vector<4xf32> to vector<1x4xf32>
    %c247_i32_83 = arith.constant 247 : i32
    %209 = tpu.dynamic_rotate %184 by %c247_i32_83 dim 0 : vector<256x4xf32>, i32 -> vector<256x4xf32>
    %210 = vector.broadcast %208 : vector<1x4xf32> to vector<256x4xf32>
    %211 = arith.mulf %209, %210 : vector<256x4xf32>
    %212 = arith.addf %205, %211 : vector<256x4xf32>
    %c24_84 = arith.constant 24 : index
    %c0_85 = arith.constant 0 : index
    %213 = vector.load %arg5[%c24_84, %c0_85] : memref<25x4xf32, #tpu.memory_space<vmem>>, vector<1x4xf32>
    %214 = vector.shape_cast %213 : vector<1x4xf32> to vector<4xf32>
    %215 = vector.shape_cast %214 : vector<4xf32> to vector<1x4xf32>
    %c246_i32_86 = arith.constant 246 : i32
    %216 = tpu.dynamic_rotate %184 by %c246_i32_86 dim 0 : vector<256x4xf32>, i32 -> vector<256x4xf32>
    %217 = vector.broadcast %215 : vector<1x4xf32> to vector<256x4xf32>
    %218 = arith.mulf %216, %217 : vector<256x4xf32>
    %219 = arith.addf %212, %218 : vector<256x4xf32>
    %220 = vector.shape_cast %219 : vector<256x4xf32> to vector<8x32x4xf32>
    %221 = vector.extract_strided_slice %220 {offsets = [0, 0, 0], sizes = [8, 16, 4], strides = [1, 1, 1]} : vector<8x32x4xf32> to vector<8x16x4xf32>
    %c0_87 = arith.constant 0 : index
    %c0_88 = arith.constant 0 : index
    %222 = vector.load %arg6[%c0_87, %c0_88] : memref<1x4xf32, #tpu.memory_space<vmem>>, vector<1x4xf32>
    %223 = vector.shape_cast %222 : vector<1x4xf32> to vector<1x1x4xf32>
    %224 = vector.broadcast %223 : vector<1x1x4xf32> to vector<8x16x4xf32>
    %225 = arith.addf %221, %224 : vector<8x16x4xf32>
    %cst_89 = arith.constant 0.000000e+00 : f32
    %226 = vector.broadcast %cst_89 : f32 to vector<8x16x4xf32>
    %227 = arith.subf %226, %225 : vector<8x16x4xf32>
    %228 = math.exp %227 : vector<8x16x4xf32>
    %cst_90 = arith.constant 1.000000e+00 : f32
    %229 = vector.broadcast %cst_90 : f32 to vector<8x16x4xf32>
    %230 = arith.addf %229, %228 : vector<8x16x4xf32>
    %231 = tpu.reciprocal %230 {approx = true} : vector<8x16x4xf32> -> vector<8x16x4xf32>
    %232 = arith.mulf %225, %231 : vector<8x16x4xf32>
    %c0_91 = arith.constant 0 : index
    %c0_92 = arith.constant 0 : index
    %c0_93 = arith.constant 0 : index
    %c4_94 = arith.constant 4 : index
    %233 = vector.load %arg7[%c0_91, %c0_92, %c0_93, %c4_94] : memref<1x8x16x8xf32, #tpu.memory_space<vmem>>, vector<1x8x16x4xf32>
    %234 = vector.shape_cast %233 : vector<1x8x16x4xf32> to vector<8x16x4xf32>
    %235 = vector.shape_cast %232 : vector<8x16x4xf32> to vector<1x8x16x4xf32>
    tpu.vector_store %arg7[%c0_91, %c0_92, %c0_93, %c4_94], %235 {strides = array<i32>} : memref<1x8x16x8xf32, #tpu.memory_space<vmem>>, vector<1x8x16x4xf32>,
    return
  }
  func.func @transform_0(%arg0: i32, %arg1: i32) -> (i32, i32, i32, i32) {
    %c0_i32 = arith.constant 0 : i32
    %c0_i32_0 = arith.constant 0 : i32
    %c0_i32_1 = arith.constant 0 : i32
    %c0_i32_2 = arith.constant 0 : i32
    return %arg0, %c0_i32, %c0_i32_0, %c0_i32_1 : i32, i32, i32, i32
  }
  func.func @transform_1(%arg0: i32, %arg1: i32) -> (i32, i32) {
    %c0_i32 = arith.constant 0 : i32
    %c0_i32_0 = arith.constant 0 : i32
    %c0_i32_1 = arith.constant 0 : i32
    return %c0_i32, %c0_i32_0 : i32, i32
  }
  func.func @transform_2(%arg0: i32, %arg1: i32) -> (i32, i32) {
    %c0_i32 = arith.constant 0 : i32
    %c0_i32_0 = arith.constant 0 : i32
    %c0_i32_1 = arith.constant 0 : i32
    return %c0_i32, %c0_i32_0 : i32, i32
  }
  func.func @transform_3(%arg0: i32, %arg1: i32) -> (i32, i32) {
    %c0_i32 = arith.constant 0 : i32
    %c0_i32_0 = arith.constant 0 : i32
    %c0_i32_1 = arith.constant 0 : i32
    return %c0_i32, %c0_i32_0 : i32, i32
  }
  func.func @transform_4(%arg0: i32, %arg1: i32) -> (i32, i32) {
    %c0_i32 = arith.constant 0 : i32
    %c0_i32_0 = arith.constant 0 : i32
    %c0_i32_1 = arith.constant 0 : i32
    return %c0_i32, %c0_i32_0 : i32, i32
  }
  func.func @transform_5(%arg0: i32, %arg1: i32) -> (i32, i32, i32, i32) {
    %c0_i32 = arith.constant 0 : i32
    %c0_i32_0 = arith.constant 0 : i32
    %c0_i32_1 = arith.constant 0 : i32
    return %arg0, %arg1, %c0_i32, %c0_i32_0 : i32, i32, i32, i32
  }
}

</mosaic_0001>

<bundles_post_ra>
// kernel: tpu_custom_call.1
= control target key start
LH: loop header
LB: loop body
LE: loop exit
PB: predicated region body
PF: predicated region fallthrough
CT: control target
= control target key end

     0   :  { %s3206_s18 = smov 0   ;;  %s3208_s19 = smov 0   ;;  %s6131_s0 = inlined_call_operand.vmem [shape: f32[2,20,16,4], index: 0, kind: input, shape index: {}]   ;;  %s6132_s1 = inlined_call_operand.vmem [shape: f32[4,4], index: 1, kind: input, shape index: {}]   ;;  %s6133_s2 = inlined_call_operand.vmem [shape: f32[1,4], index: 2, kind: input, shape index: {}]   ;;  %s6134_s3 = inlined_call_operand.vmem [shape: f32[25,4], index: 3, kind: input, shape index: {}]   ;;  %s6135_s4 = inlined_call_operand.vmem [shape: f32[1,4], index: 4, kind: input, shape index: {}]   ;;  %s6136_s5 = inlined_call_operand.vmem [shape: f32[2,16,16,8], index: 5, kind: output, shape index: {}]  }
   0x1   :  { %s3210_s20 = smov 0   ;;  %s3212_s21 = smov 0  }
   0x2   :  { %s3214_s22 = smov 0  }
   0x3 LB: > { %s24_s23 = sadd.s32 1, %s3162_s20  ;;  %s27_s24 = sadd.s32 1, %s3166_s21  ;;  %s3170_s22 = sphi %s3214_s22, %s15_s22   ;;  %s3166_s21 = sphi %s3212_s21, %s6786_s21   ;;  %s3162_s20 = sphi %s3210_s20, %s6785_s20   ;;  %s3158_s19 = sphi %s3208_s19, %s6784_s19   ;;  %s3154_s18 = sphi %s3206_s18, %s6783_s18  }
   0x4   : > { %p25_p0 = scmp.ge.s32.totalorder %s24_s23, 2  ;;  %p2794_p1 = scmp.ge.s32.totalorder %s3170_s22, 1 }
   0x5   : > { %p201_p2 = scmp.lt.s32.totalorder %s3170_s22, 5 }
   0x6   : > { %s6788_s23 = smov (%p25_p0, %s24_s23), 0  ;;  %s6790_s24 = smov (!%p25_p0, %s27_s24), %s3166_s21 }
   0x7   : > { %p202_p3 = pnand %p2794_p1, %p201_p2  ;;  %p29_p4 = scmp.ge.s32.totalorder %s6790_s24, 2 }
   0x9   : > { %s6792_s24 = smov (%p29_p4, %s6790_s24), 0  ;;  %205 = sbr.rel (%p202_p3) target bundleno = 754 (0x2f2), region = 40 }
   0xe   : > { %v277_v0 = vld [vmem:[%s6132_s1] sm:$0xf]  ;;  %vm355_vm0 = vcmask 1043456   ;;  %p234_p5 = scmp.lt.s32.totalorder %s3158_s19, 1  ;;  %s2831_s28 = sshll.u32 %s3154_s18, 7  ;;  %vm282_vm1 = vcmask 31744  }
   0xf   : > { %2802 = vmatpush.msk.msra.mxu0 %vm355_vm0, %v277_v0  ;;  %2832 = vmatpush.msk.msra.mxu1 %vm355_vm0, %v277_v0  ;;  %v3301_v25 = vld [vmem:[%s6133_s2] ss:$0 sm:$0xff]  ;;  %s2796_s10 = sshll.u32 %s3154_s18, 3  ;;  %p2827_p7 = scmp.ne.s32.totalorder %s3154_s18, 0 }
  0x10   : > { %2833 = vmatpush.msk.msra.mxu2 %vm355_vm0, %v277_v0  ;;  %2834 = vmatpush.msk.msra.mxu3 %vm355_vm0, %v277_v0  ;;  %s6794_s19 = smov (!%p234_p5, %s3158_s19), 1  ;;  %p242_p6 = scmp.lt.s32.totalorder %s2796_s10, 15 }
  0x11   : > { %s2835_s27 = smul.u32 320, %s6794_s19  ;;  %s2798_s12 = sshll.u32 %s6794_s19, 5 }
  0x12   : > { %s6796_s10 = smov (!%p242_p6, %s2796_s10), 15 }
  0x13   : > { %s238_s6 = scalar_lea.vmem %s6131_s0, %s2835_s27  ;;  %s2797_s11 = sshll.u32 %s6796_s10, 1 }
  0x14   : > { %s3248_s7 = scalar_lea.vmem %s238_s6, %s2831_s28  ;;  %s246_s13 = sadd.s32 %s2798_s12, %s2797_s11 }
  0x15   : > { %v253_v1 = vld [vmem:[%s3248_s7] sm:$0xff]  ;;  %v259_v2 = vld [vmem:[%s3248_s7 + $0x30] sm:$0xff]  ;;  %v254_v5 = vld [vmem:[%s3248_s7 + $0x8] sm:$0xff]  ;;  %s2799_s14 = sshll.u32 %s246_s13, 3 }
  0x16   : > { %v265_v3 = vld [vmem:[%s3248_s7 + $0x60] sm:$0xff]  ;;  %2803 = vmatmul.msk.f32.vlgmr.msra.gmra.mxu0 %vm282_vm1, %v253_v1  ;;  %2809 = vmatmul.msk.f32.vlgmr.msra.gmra.mxu1 %vm282_vm1, %v259_v2  ;;  %v271_v4 = vld [vmem:[%s3248_s7 + $0x90] sm:$0xff]  ;;  %v260_v6 = vld [vmem:[%s3248_s7 + $0x38] sm:$0xff]  ;;  %s3349_s17 = scalar_lea.vmem %s6136_s5, %s2799_s14 }
  0x17   : > { %2815 = vmatmul.msk.f32.vlgmr.msra.gmra.mxu2 %vm282_vm1, %v265_v3  ;;  %2821 = vmatmul.msk.f32.vlgmr.msra.gmra.mxu3 %vm282_vm1, %v271_v4  ;;  %v266_v7 = vld [vmem:[%s3248_s7 + $0x68] sm:$0xff]  ;;  %v272_v8 = vld [vmem:[%s3248_s7 + $0x98] sm:$0xff]  ;;  %v255_v9 = vld [vmem:[%s3248_s7 + $0x10] sm:$0xff] }
  0x18   : > { %v261_v10 = vld [vmem:[%s3248_s7 + $0x40] sm:$0xff]  ;;  %v267_v11 = vld [vmem:[%s3248_s7 + $0x70] sm:$0xff]  ;;  %v256_v13 = vld [vmem:[%s3248_s7 + $0x18] sm:$0xff] }
  0x19   : > { %v273_v12 = vld [vmem:[%s3248_s7 + $0xa0] sm:$0xff]  ;;  %v262_v14 = vld [vmem:[%s3248_s7 + $0x48] sm:$0xff]  ;;  %v268_v15 = vld [vmem:[%s3248_s7 + $0x78] sm:$0xff] }
  0x1a   : > { %v274_v16 = vld [vmem:[%s3248_s7 + $0xa8] sm:$0xff]  ;;  %v257_v17 = vld [vmem:[%s3248_s7 + $0x20] sm:$0xff]  ;;  %v263_v18 = vld [vmem:[%s3248_s7 + $0x50] sm:$0xff] }
  0x1b   : > { %v269_v19 = vld [vmem:[%s3248_s7 + $0x80] sm:$0xff]  ;;  %v275_v20 = vld [vmem:[%s3248_s7 + $0xb0] sm:$0xff]  ;;  %v258_v21 = vld [vmem:[%s3248_s7 + $0x28] sm:$0xff] }
  0x1c   : > { %v264_v22 = vld [vmem:[%s3248_s7 + $0x58] sm:$0xff]  ;;  %v270_v23 = vld [vmem:[%s3248_s7 + $0x88] sm:$0xff] }
  0x1d   : > { %v276_v24 = vld [vmem:[%s3248_s7 + $0xb8] sm:$0xff] }
  0x1e   : > { %2804 = vmatmul.msk.f32.gmra.mxu0 %vm282_vm1, %v254_v5  ;;  %2810 = vmatmul.msk.f32.gmra.mxu1 %vm282_vm1, %v260_v6 }
  0x1f   : > { %2816 = vmatmul.msk.f32.gmra.mxu2 %vm282_vm1, %v266_v7  ;;  %2822 = vmatmul.msk.f32.gmra.mxu3 %vm282_vm1, %v272_v8 }
  0x26   : > { %2805 = vmatmul.msk.f32.gmra.mxu0 %vm282_vm1, %v255_v9  ;;  %2811 = vmatmul.msk.f32.gmra.mxu1 %vm282_vm1, %v261_v10 }
  0x27   : > { %2817 = vmatmul.msk.f32.gmra.mxu2 %vm282_vm1, %v267_v11  ;;  %2823 = vmatmul.msk.f32.gmra.mxu3 %vm282_vm1, %v273_v12 }
  0x2e   : > { %2806 = vmatmul.msk.f32.gmra.mxu0 %vm282_vm1, %v256_v13  ;;  %2812 = vmatmul.msk.f32.gmra.mxu1 %vm282_vm1, %v262_v14 }
  0x2f   : > { %2818 = vmatmul.msk.f32.gmra.mxu2 %vm282_vm1, %v268_v15  ;;  %2824 = vmatmul.msk.f32.gmra.mxu3 %vm282_vm1, %v274_v16 }
  0x36   : > { %2807 = vmatmul.msk.f32.gmra.mxu0 %vm282_vm1, %v257_v17  ;;  %2813 = vmatmul.msk.f32.gmra.mxu1 %vm282_vm1, %v263_v18 }
  0x37   : > { %2819 = vmatmul.msk.f32.gmra.mxu2 %vm282_vm1, %v269_v19  ;;  %2825 = vmatmul.msk.f32.gmra.mxu3 %vm282_vm1, %v275_v20 }
  0x3e   : > { %2808 = vmatmul.msk.f32.gmra.mxu0 %vm282_vm1, %v258_v21  ;;  %2814 = vmatmul.msk.f32.gmra.mxu1 %vm282_vm1, %v264_v22 }
  0x3f   : > { %2820 = vmatmul.msk.f32.gmra.mxu2 %vm282_vm1, %v270_v23  ;;  %2826 = vmatmul.msk.f32.gmra.mxu3 %vm282_vm1, %v276_v24 }
  0x93   : > { %v376_v26 = vpop.f32.mrf.mxu0  ;;  %v394_v27 = vpop.f32.mrf.mxu1 }
  0x94   : > { %v3304_v28 = vadd.f32 %v3301_v25, %v376_v26  ;;  %v3307_v29 = vadd.f32 %v3301_v25, %v394_v27 }
  0x96   : > { %v448_v30 = vsub.f32 0.0, %v3304_v28  ;;  %v454_v31 = vsub.f32 0.0, %v3307_v29 }
  0x98   : > { %v472_v32 = vmul.f32 1.442695, %v448_v30  ;;  %v484_v33 = vmul.f32 1.442695, %v454_v31 }
  0x9a   : > { %2881 = vpow2.f32 %v472_v32  ;;  %v412_v34 = vpop.f32.mrf.mxu2  ;;  %v430_v35 = vpop.f32.mrf.mxu3 }
  0x9b   : > { %2883 = vpow2.f32 %v484_v33  ;;  %v3313_v36 = vadd.f32 %v3301_v25, %v412_v34  ;;  %v3316_v37 = vadd.f32 %v3301_v25, %v430_v35  ;;  %v379_v38 = vpop.f32.mrf.mxu0  ;;  %v397_v39 = vpop.f32.mrf.mxu1 }
  0x9c   : > { %v3319_v40 = vadd.f32 %v3301_v25, %v379_v38  ;;  %v3322_v41 = vadd.f32 %v3301_v25, %v397_v39 }
  0x9d   : > { %v460_v42 = vsub.f32 0.0, %v3313_v36  ;;  %v466_v43 = vsub.f32 0.0, %v3316_v37 }
  0x9e   : > { %v449_v44 = vsub.f32 0.0, %v3319_v40  ;;  %v455_v45 = vsub.f32 0.0, %v3322_v41 }
  0x9f   : > { %v496_v46 = vmul.f32 1.442695, %v460_v42  ;;  %v508_v47 = vmul.f32 1.442695, %v466_v43 }
  0xa0   : > { %v2882_v48 = vpop.eup %2881  ;;  %v474_v51 = vmul.f32 1.442695, %v449_v44  ;;  %v486_v53 = vmul.f32 1.442695, %v455_v45 }
  0xa1   : > { %v2884_v49 = vpop.eup %2883  ;;  %v520_v50 = vadd.f32 1.0, %v2882_v48  ;;  %2885 = vpow2.f32 %v496_v46 }
  0xa2   : > { %v526_v52 = vadd.f32 1.0, %v2884_v49  ;;  %2887 = vpow2.f32 %v508_v47  ;;  %v415_v54 = vpop.f32.mrf.mxu2  ;;  %v433_v55 = vpop.f32.mrf.mxu3 }
  0xa3   : > { %2889 = vrcp.f32 %v520_v50  ;;  %v3330_v56 = vadd.f32 %v3301_v25, %v415_v54  ;;  %v3333_v57 = vadd.f32 %v3301_v25, %v433_v55  ;;  %v382_v58 = vpop.f32.mrf.mxu0  ;;  %v400_v59 = vpop.f32.mrf.mxu1 }
  0xa4   : > { %2891 = vrcp.f32 %v526_v52  ;;  %v3336_v60 = vadd.f32 %v3301_v25, %v382_v58  ;;  %v3339_v61 = vadd.f32 %v3301_v25, %v400_v59 }
  0xa5   : > { %2893 = vpow2.f32 %v474_v51  ;;  %v461_v62 = vsub.f32 0.0, %v3330_v56  ;;  %v467_v63 = vsub.f32 0.0, %v3333_v57 }
  0xa6   : > { %2895 = vpow2.f32 %v486_v53  ;;  %v450_v0 = vsub.f32 0.0, %v3336_v60  ;;  %v456_v1 = vsub.f32 0.0, %v3339_v61 }
  0xa7   : > { %v2886_v2 = vpop.eup %2885  ;;  %v498_v3 = vmul.f32 1.442695, %v461_v62  ;;  %v510_v6 = vmul.f32 1.442695, %v467_v63 }
  0xa8   : > { %v2888_v4 = vpop.eup %2887  ;;  %v532_v5 = vadd.f32 1.0, %v2886_v2  ;;  %v476_v9 = vmul.f32 1.442695, %v450_v0  ;;  %v488_v12 = vmul.f32 1.442695, %v456_v1 }
  0xa9   : > { %v2890_v7 = vpop.eup %2889  ;;  %v538_v8 = vadd.f32 1.0, %v2888_v4  ;;  %2897 = vpow2.f32 %v498_v3 }
  0xaa   : > { %v2892_v10 = vpop.eup %2891  ;;  %v568_v11 = vmul.f32 %v2890_v7, %v3304_v28  ;;  %2899 = vrcp.f32 %v532_v5  ;;  %v418_v13 = vpop.f32.mrf.mxu2 }
  0xab   : > { %v436_v14 = vpop.f32.mrf.mxu3  ;;  %v2894_v15 = vpop.eup %2893  ;;  %v574_v16 = vmul.f32 %v2892_v10, %v3307_v29  ;;  %2901 = vrcp.f32 %v538_v8  ;;  %v3353_v17 = vadd.f32 %v3301_v25, %v418_v13 }
  0xac   : > { %v3356_v18 = vadd.f32 %v3301_v25, %v436_v14  ;;  %v385_v19 = vpop.f32.mrf.mxu0  ;;  %v403_v20 = vpop.f32.mrf.mxu1  ;;  %608 = vst.msk [vmem:[#allocation2 + $0x8] sm:$0xff] %vm282_vm1, %v568_v11  ;;  %v521_v22 = vadd.f32 1.0, %v2894_v15  ;;  %2903 = vpow2.f32 %v510_v6 }
  0xad   : > { %v2896_v21 = vpop.eup %2895  ;;  %v3360_v23 = vadd.f32 %v3301_v25, %v385_v19  ;;  %v3363_v24 = vadd.f32 %v3301_v25, %v403_v20  ;;  %594 = vst.msk [vmem:[%s3349_s17 + $0x10] sm:$0xff] %vm282_vm1, %v574_v16  ;;  %2905 = vpow2.f32 %v476_v9  ;;  %v462_v27 = vsub.f32 0.0, %v3353_v17 }
  0xae   : > { %v527_v26 = vadd.f32 1.0, %v2896_v21  ;;  %v468_v28 = vsub.f32 0.0, %v3356_v18  ;;  %614 = vst.msk [vmem:[#allocation2 + $0x68] sm:$0xff] %vm282_vm1, %v574_v16  ;;  %2907 = vrcp.f32 %v521_v22 }
  0xaf   : > { %v451_v29 = vsub.f32 0.0, %v3360_v23  ;;  %v457_v30 = vsub.f32 0.0, %v3363_v24  ;;  %v2898_v31 = vpop.eup %2897  ;;  %v500_v32 = vmul.f32 1.442695, %v462_v27 }
  0xb0   : > { %2909 = vrcp.f32 %v527_v26  ;;  %v512_v33 = vmul.f32 1.442695, %v468_v28  ;;  %v2900_v34 = vpop.eup %2899  ;;  %v533_v35 = vadd.f32 1.0, %v2898_v31 }
  0xb1   : > { %2911 = vpow2.f32 %v488_v12  ;;  %v478_v38 = vmul.f32 1.442695, %v451_v29  ;;  %v2902_v39 = vpop.eup %2901  ;;  %v580_v42 = vmul.f32 %v2900_v34, %v3313_v36  ;;  %v490_v45 = vmul.f32 1.442695, %v457_v30 }
  0xb2   : > { %2913 = vpow2.f32 %v500_v32  ;;  %v2904_v43 = vpop.eup %2903  ;;  %v586_v44 = vmul.f32 %v2902_v39, %v3316_v37  ;;  %v421_v46 = vpop.f32.mrf.mxu2 }
  0xb3   : > { %2915 = vrcp.f32 %v533_v35  ;;  %v439_v47 = vpop.f32.mrf.mxu3  ;;  %v2906_v48 = vpop.eup %2905  ;;  %600 = vst.msk [vmem:[%s3349_s17 + $0x40] sm:$0xff] %vm282_vm1, %v580_v42  ;;  %v539_v49 = vadd.f32 1.0, %v2904_v43  ;;  %v3377_v50 = vadd.f32 %v3301_v25, %v421_v46 }
  0xb4   : > { %2917 = vpow2.f32 %v512_v33  ;;  %v3380_v51 = vadd.f32 %v3301_v25, %v439_v47  ;;  %v388_v36 = vpop.f32.mrf.mxu0  ;;  %v406_v52 = vpop.f32.mrf.mxu1  ;;  %620 = vst.msk [vmem:[#allocation2 + $0xc8] sm:$0xff] %vm282_vm1, %v580_v42  ;;  %v522_v37 = vadd.f32 1.0, %v2906_v48  ;;  %v3172_v47 = vmov 0.0  }
  0xb5   : > { %v2908_v53 = vpop.eup %2907  ;;  %2919 = vpow2.f32 %v478_v38  ;;  %v3384_v54 = vadd.f32 %v3301_v25, %v388_v36  ;;  %v3387_v55 = vadd.f32 %v3301_v25, %v406_v52  ;;  %606 = vst.msk [vmem:[%s3349_s17 + $0x70] sm:$0xff] %vm282_vm1, %v586_v44  ;;  %v463_v62 = vsub.f32 0.0, %v3377_v50 }
  0xb6   : > { %v2910_v58 = vpop.eup %2909  ;;  %v569_v59 = vmul.f32 %v2908_v53, %v3319_v40  ;;  %2921 = vrcp.f32 %v539_v49  ;;  %v469_v63 = vsub.f32 0.0, %v3380_v51  ;;  %626 = vst.msk [vmem:[#allocation2 + $0x128] sm:$0xff] %vm282_vm1, %v586_v44 }
  0xb7   : > { %v2912_v0 = vpop.eup %2911  ;;  %v575_v1 = vmul.f32 %v2910_v58, %v3322_v41  ;;  %2923 = vrcp.f32 %v522_v37  ;;  %v452_v2 = vsub.f32 0.0, %v3384_v54  ;;  %v458_v3 = vsub.f32 0.0, %v3387_v55  ;;  %632 = vst.msk [vmem:[#allocation2] sm:$0xff] %vm282_vm1, %v3172_v47 }
  0xb8   : > { %v2914_v4 = vpop.eup %2913  ;;  %609 = vst.msk [vmem:[#allocation2 + $0x10] sm:$0xff] %vm282_vm1, %v569_v59  ;;  %v528_v40 = vadd.f32 1.0, %v2912_v0  ;;  %2925 = vpow2.f32 %v490_v45  ;;  %v502_v5 = vmul.f32 1.442695, %v463_v62  ;;  %v514_v9 = vmul.f32 1.442695, %v469_v63 }
  0xb9   : > { %v2916_v6 = vpop.eup %2915  ;;  %595 = vst.msk [vmem:[%s3349_s17 + $0x18] sm:$0xff] %vm282_vm1, %v575_v1  ;;  %v534_v7 = vadd.f32 1.0, %v2914_v4  ;;  %v480_v12 = vmul.f32 1.442695, %v452_v2  ;;  %v492_v13 = vmul.f32 1.442695, %v458_v3 }
  0xba   : > { %v2918_v8 = vpop.eup %2917  ;;  %615 = vst.msk [vmem:[#allocation2 + $0x70] sm:$0xff] %vm282_vm1, %v575_v1  ;;  %v581_v41 = vmul.f32 %v2916_v6, %v3330_v56  ;;  %2927 = vrcp.f32 %v528_v40  ;;  %v424_v14 = vpop.f32.mrf.mxu2 }
  0xbb   : > { %v2920_v10 = vpop.eup %2919  ;;  %2929 = vrcp.f32 %v534_v7  ;;  %v540_v11 = vadd.f32 1.0, %v2918_v8  ;;  %v442_v15 = vpop.f32.mrf.mxu3  ;;  %v3406_v20 = vadd.f32 %v3301_v25, %v424_v14  ;;  %633 = vst.msk [vmem:[#allocation2 + $0x20] sm:$0xff] %vm282_vm1, %v3172_v47 }
  0xbc   : > { %v2922_v16 = vpop.eup %2921  ;;  %601 = vst.msk [vmem:[%s3349_s17 + $0x48] sm:$0xff] %vm282_vm1, %v581_v41  ;;  %v523_v19 = vadd.f32 1.0, %v2920_v10  ;;  %2931 = vpow2.f32 %v502_v5  ;;  %v3409_v56 = vadd.f32 %v3301_v25, %v442_v15  ;;  %v391_v21 = vpop.f32.mrf.mxu0 }
  0xbd   : > { %v409_v22 = vpop.f32.mrf.mxu1  ;;  %v2924_v26 = vpop.eup %2923  ;;  %621 = vst.msk [vmem:[#allocation2 + $0xd0] sm:$0xff] %vm282_vm1, %v581_v41  ;;  %v587_v27 = vmul.f32 %v2922_v16, %v3333_v57  ;;  %2933 = vrcp.f32 %v540_v11  ;;  %v3414_v28 = vadd.f32 %v3301_v25, %v391_v21  ;;  %v464_v32 = vsub.f32 0.0, %v3406_v20 }
  0xbe   : > { %v3417_v29 = vadd.f32 %v3301_v25, %v409_v22  ;;  %v2926_v30 = vpop.eup %2925  ;;  %v570_v31 = vmul.f32 %v2924_v26, %v3336_v60  ;;  %2935 = vrcp.f32 %v523_v19  ;;  %v470_v33 = vsub.f32 0.0, %v3409_v56  ;;  %634 = vst.msk [vmem:[#allocation2 + $0x40] sm:$0xff] %vm282_vm1, %v3172_v47 }
  0xbf   : > { %607 = vst.msk [vmem:[%s3349_s17 + $0x78] sm:$0xff] %vm282_vm1, %v587_v27  ;;  %v529_v34 = vadd.f32 1.0, %v2926_v30  ;;  %2937 = vpow2.f32 %v514_v9  ;;  %v453_v57 = vsub.f32 0.0, %v3414_v28  ;;  %v504_v39 = vmul.f32 1.442695, %v464_v32 }
  0xc0   : > { %v459_v35 = vsub.f32 0.0, %v3417_v29  ;;  %v2928_v38 = vpop.eup %2927  ;;  %627 = vst.msk [vmem:[#allocation2 + $0x130] sm:$0xff] %vm282_vm1, %v587_v27  ;;  %2939 = vpow2.f32 %v480_v12  ;;  %v516_v60 = vmul.f32 1.442695, %v470_v33 }
  0xc1   : > { %v2930_v42 = vpop.eup %2929  ;;  %610 = vst.msk [vmem:[#allocation2 + $0x28] sm:$0xff] %vm282_vm1, %v570_v31  ;;  %v576_v43 = vmul.f32 %v2928_v38, %v3339_v61  ;;  %2941 = vrcp.f32 %v529_v34  ;;  %v482_v46 = vmul.f32 1.442695, %v453_v57 }
  0xc2   : > { %v2932_v44 = vpop.eup %2931  ;;  %v582_v45 = vmul.f32 %v2930_v42, %v3353_v17  ;;  %2943 = vpow2.f32 %v492_v13  ;;  %v494_v36 = vmul.f32 1.442695, %v459_v35  ;;  %v427_v52 = vpop.f32.mrf.mxu2  ;;  %635 = vst.msk [vmem:[#allocation2 + $0x60] sm:$0xff] %vm282_vm1, %v3172_v47 }
  0xc3   : > { %v2934_v48 = vpop.eup %2933  ;;  %596 = vst.msk [vmem:[%s3349_s17 + $0x20] sm:$0xff] %vm282_vm1, %v576_v43  ;;  %v535_v49 = vadd.f32 1.0, %v2932_v44  ;;  %2945 = vpow2.f32 %v504_v39  ;;  %v445_v53 = vpop.f32.mrf.mxu3  ;;  %v3437_v37 = vadd.f32 %v3301_v25, %v427_v52 }
  0xc4   : > { %v2936_v61 = vpop.eup %2935  ;;  %616 = vst.msk [vmem:[#allocation2 + $0x88] sm:$0xff] %vm282_vm1, %v576_v43  ;;  %v588_v17 = vmul.f32 %v2934_v48, %v3356_v18  ;;  %2947 = vpow2.f32 %v516_v60  ;;  %v3440_v58 = vadd.f32 %v3301_v25, %v445_v53 }
  0xc5   : > { %v2938_v59 = vpop.eup %2937  ;;  %602 = vst.msk [vmem:[%s3349_s17 + $0x50] sm:$0xff] %vm282_vm1, %v582_v45  ;;  %v571_v62 = vmul.f32 %v2936_v61, %v3360_v23  ;;  %2949 = vrcp.f32 %v535_v49  ;;  %v465_v18 = vsub.f32 0.0, %v3437_v37 }
  0xc6   : > { %v2940_v63 = vpop.eup %2939  ;;  %622 = vst.msk [vmem:[#allocation2 + $0xe8] sm:$0xff] %vm282_vm1, %v582_v45  ;;  %v541_v0 = vadd.f32 1.0, %v2938_v59  ;;  %2951 = vpow2.f32 %v482_v46  ;;  %v471_v1 = vsub.f32 0.0, %v3440_v58 }
  0xc7   : > { %v2942_v2 = vpop.eup %2941  ;;  %628 = vst.msk [vmem:[#allocation2 + $0x148] sm:$0xff] %vm282_vm1, %v588_v17  ;;  %v524_v25 = vadd.f32 1.0, %v2940_v63  ;;  %2953 = vpow2.f32 %v494_v36  ;;  %v506_v4 = vmul.f32 1.442695, %v465_v18 }
  0xc8   : > { %v2944_v3 = vpop.eup %2943  ;;  %611 = vst.msk [vmem:[#allocation2 + $0x30] sm:$0xff] %vm282_vm1, %v571_v62  ;;  %v577_v23 = vmul.f32 %v2942_v2, %v3363_v24  ;;  %2955 = vrcp.f32 %v541_v0  ;;  %v518_v8 = vmul.f32 1.442695, %v471_v1 }
  0xc9   : > { %v2946_v40 = vpop.eup %2945  ;;  %2957 = vrcp.f32 %v524_v25  ;;  %v530_v5 = vadd.f32 1.0, %v2944_v3  ;;  %636 = vst.msk [vmem:[#allocation2 + $0x80] sm:$0xff] %vm282_vm1, %v3172_v47 }
  0xca   : > { %v2948_v6 = vpop.eup %2947  ;;  %597 = vst.msk [vmem:[%s3349_s17 + $0x28] sm:$0xff] %vm282_vm1, %v577_v23  ;;  %v536_v7 = vadd.f32 1.0, %v2946_v40  ;;  %2959 = vpow2.f32 %v506_v4 }
  0xcb   : > { %v2950_v41 = vpop.eup %2949  ;;  %617 = vst.msk [vmem:[#allocation2 + $0x90] sm:$0xff] %vm282_vm1, %v577_v23  ;;  %2961 = vrcp.f32 %v530_v5  ;;  %v542_v24 = vadd.f32 1.0, %v2948_v6 }
  0xcc   : > { %v2952_v9 = vpop.eup %2951  ;;  %v583_v10 = vmul.f32 %v2950_v41, %v3377_v50  ;;  %2963 = vrcp.f32 %v536_v7  ;;  %637 = vst.msk [vmem:[#allocation2 + $0xa0] sm:$0xff] %vm282_vm1, %v3172_v47 }
  0xcd   : > { %v2954_v11 = vpop.eup %2953  ;;  %2965 = vrcp.f32 %v542_v24  ;;  %v525_v12 = vadd.f32 1.0, %v2952_v9  ;;  %638 = vst.msk [vmem:[#allocation2 + $0xc0] sm:$0xff] %vm282_vm1, %v3172_v47 }
  0xce   : > { %v2956_v13 = vpop.eup %2955  ;;  %603 = vst.msk [vmem:[%s3349_s17 + $0x58] sm:$0xff] %vm282_vm1, %v583_v10  ;;  %v531_v14 = vadd.f32 1.0, %v2954_v11  ;;  %2967 = vpow2.f32 %v518_v8 }
  0xcf   : > { %v2958_v15 = vpop.eup %2957  ;;  %623 = vst.msk [vmem:[#allocation2 + $0xf0] sm:$0xff] %vm282_vm1, %v583_v10  ;;  %v589_v50 = vmul.f32 %v2956_v13, %v3380_v51  ;;  %2969 = vrcp.f32 %v525_v12 }
  0xd0   : > { %v2960_v16 = vpop.eup %2959  ;;  %v572_v19 = vmul.f32 %v2958_v15, %v3384_v54  ;;  %2971 = vrcp.f32 %v531_v14  ;;  %639 = vst.msk [vmem:[#allocation2 + $0xe0] sm:$0xff] %vm282_vm1, %v3172_v47 }
  0xd1   : > { %v2962_v21 = vpop.eup %2961  ;;  %629 = vst.msk [vmem:[#allocation2 + $0x150] sm:$0xff] %vm282_vm1, %v589_v50  ;;  %v537_v22 = vadd.f32 1.0, %v2960_v16 }
  0xd2   : > { %v2964_v26 = vpop.eup %2963  ;;  %592 = vst.msk [vmem:[%s3349_s17] sm:$0xff] %vm282_vm1, %v572_v19  ;;  %v578_v27 = vmul.f32 %v2962_v21, %v3387_v55 }
  0xd3   : > { %v2966_v51 = vpop.eup %2965  ;;  %612 = vst.msk [vmem:[#allocation2 + $0x48] sm:$0xff] %vm282_vm1, %v572_v19  ;;  %v584_v30 = vmul.f32 %v2964_v26, %v3406_v20  ;;  %2973 = vrcp.f32 %v537_v22 }
  0xd4   : > { %v2968_v54 = vpop.eup %2967  ;;  %598 = vst.msk [vmem:[%s3349_s17 + $0x30] sm:$0xff] %vm282_vm1, %v578_v27  ;;  %v590_v31 = vmul.f32 %v2966_v51, %v3409_v56 }
  0xd5   : > { %v2970_v32 = vpop.eup %2969  ;;  %618 = vst.msk [vmem:[#allocation2 + $0xa8] sm:$0xff] %vm282_vm1, %v578_v27  ;;  %v543_v33 = vadd.f32 1.0, %v2968_v54 }
  0xd6   : > { %v2972_v34 = vpop.eup %2971  ;;  %604 = vst.msk [vmem:[%s3349_s17 + $0x60] sm:$0xff] %vm282_vm1, %v584_v30  ;;  %v573_v55 = vmul.f32 %v2970_v32, %v3414_v28 }
  0xd7   : > { %624 = vst.msk [vmem:[#allocation2 + $0x108] sm:$0xff] %vm282_vm1, %v584_v30  ;;  %v579_v20 = vmul.f32 %v2972_v34, %v3417_v29  ;;  %2975 = vrcp.f32 %v543_v33 }
  0xd8   : > { %630 = vst.msk [vmem:[#allocation2 + $0x168] sm:$0xff] %vm282_vm1, %v590_v31 }
  0xd9   : > { %v2974_v57 = vpop.eup %2973  ;;  %593 = vst.msk [vmem:[%s3349_s17 + $0x8] sm:$0xff] %vm282_vm1, %v573_v55 }
  0xda   : > { %613 = vst.msk [vmem:[#allocation2 + $0x50] sm:$0xff] %vm282_vm1, %v573_v55  ;;  %v585_v56 = vmul.f32 %v2974_v57, %v3437_v37 }
  0xdb   : > { %599 = vst.msk [vmem:[%s3349_s17 + $0x38] sm:$0xff] %vm282_vm1, %v579_v20 }
  0xdc   : > { %619 = vst.msk [vmem:[#allocation2 + $0xb0] sm:$0xff] %vm282_vm1, %v579_v20 }
  0xdd   : > { %v2976_v35 = vpop.eup %2975  ;;  %605 = vst.msk [vmem:[%s3349_s17 + $0x68] sm:$0xff] %vm282_vm1, %v585_v56 }
  0xde   : > { %625 = vst.msk [vmem:[#allocation2 + $0x110] sm:$0xff] %vm282_vm1, %v585_v56  ;;  %v591_v28 = vmul.f32 %v2976_v35, %v3440_v58 }
  0xdf   : > { %640 = vst.msk [vmem:[#allocation2 + $0x100] sm:$0xff] %vm282_vm1, %v3172_v47 }
  0xe0   : > { %631 = vst.msk [vmem:[#allocation2 + $0x170] sm:$0xff] %vm282_vm1, %v591_v28 }
  0xe1   : > { %641 = vst.msk [vmem:[#allocation2 + $0x120] sm:$0xff] %vm282_vm1, %v3172_v47 }
  0xe2   : > { %642 = vst.msk [vmem:[#allocation2 + $0x140] sm:$0xff] %vm282_vm1, %v3172_v47 }
  0xe3   : > { %643 = vst.msk [vmem:[#allocation2 + $0x160] sm:$0xff] %vm282_vm1, %v3172_v47 }
  0xe4   : > { %644 = vst.msk [vmem:[#allocation2 + $0x18] sm:$0xff] %vm282_vm1, %v3172_v47 }
  0xe5   : > { %645 = vst.msk [vmem:[#allocation2 + $0x38] sm:$0xff] %vm282_vm1, %v3172_v47 }
  0xe6   : > { %646 = vst.msk [vmem:[#allocation2 + $0x58] sm:$0xff] %vm282_vm1, %v3172_v47 }
  0xe7   : > { %647 = vst.msk [vmem:[#allocation2 + $0x78] sm:$0xff] %vm282_vm1, %v3172_v47 }
  0xe8   : > { %648 = vst.msk [vmem:[#allocation2 + $0x98] sm:$0xff] %vm282_vm1, %v3172_v47 }
  0xe9   : > { %649 = vst.msk [vmem:[#allocation2 + $0xb8] sm:$0xff] %vm282_vm1, %v3172_v47 }
  0xea   : > { %650 = vst.msk [vmem:[#allocation2 + $0xd8] sm:$0xff] %vm282_vm1, %v3172_v47 }
  0xeb   : > { %651 = vst.msk [vmem:[#allocation2 + $0xf8] sm:$0xff] %vm282_vm1, %v3172_v47  ;;  %659 = sbr.rel (%p2827_p7) target bundleno = 249 (0xf9), region = 44 }
  0xec   : > { %652 = vst.msk [vmem:[#allocation2 + $0x118] sm:$0xff] %vm282_vm1, %v3172_v47 }
  0xed   : > { %653 = vst.msk [vmem:[#allocation2 + $0x138] sm:$0xff] %vm282_vm1, %v3172_v47 }
  0xee   : > { %654 = vst.msk [vmem:[#allocation2 + $0x158] sm:$0xff] %vm282_vm1, %v3172_v47 }
  0xef   : > { %655 = vst.msk [vmem:[#allocation2 + $0x178] sm:$0xff] %vm282_vm1, %v3172_v47 }
  0xf0   : > { %v3173_v29 = vmov 0.0  }
  0xf1   : > { %660 = vst.msk [vmem:[#allocation2] sm:$0xff] %vm282_vm1, %v3173_v29 }
  0xf2   : > { %661 = vst.msk [vmem:[#allocation2 + $0x8] sm:$0xff] %vm282_vm1, %v3173_v29 }
  0xf3   : > { %662 = vst.msk [vmem:[#allocation2 + $0x10] sm:$0xff] %vm282_vm1, %v3173_v29 }
  0xf4   : > { %663 = vst.msk [vmem:[#allocation2 + $0x18] sm:$0xff] %vm282_vm1, %v3173_v29 }
  0xf5   : > { %664 = vst.msk [vmem:[#allocation2 + $0x20] sm:$0xff] %vm282_vm1, %v3173_v29 }
  0xf6   : > { %665 = vst.msk [vmem:[#allocation2 + $0x28] sm:$0xff] %vm282_vm1, %v3173_v29 }
  0xf7   : > { %666 = vst.msk [vmem:[#allocation2 + $0x30] sm:$0xff] %vm282_vm1, %v3173_v29 }
  0xf8   : > { %667 = vst.msk [vmem:[#allocation2 + $0x38] sm:$0xff] %vm282_vm1, %v3173_v29 }
  0xf9 PF: > { %p2828_p8 = scmp.ne.s32.totalorder %s3154_s18, 1 }
  0xfb   : > { %671 = sbr.rel (%p2828_p8) target bundleno = 265 (0x109), region = 48 }
 0x100   : > { %v3174_v38 = vmov 0.0  }
 0x101   : > { %673 = vst.msk [vmem:[#allocation2 + $0x140] sm:$0xff] %vm282_vm1, %v3174_v38 }
 0x102   : > { %674 = vst.msk [vmem:[#allocation2 + $0x148] sm:$0xff] %vm282_vm1, %v3174_v38 }
 0x103   : > { %675 = vst.msk [vmem:[#allocation2 + $0x150] sm:$0xff] %vm282_vm1, %v3174_v38 }
 0x104   : > { %676 = vst.msk [vmem:[#allocation2 + $0x158] sm:$0xff] %vm282_vm1, %v3174_v38 }
 0x105   : > { %677 = vst.msk [vmem:[#allocation2 + $0x160] sm:$0xff] %vm282_vm1, %v3174_v38 }
 0x106   : > { %678 = vst.msk [vmem:[#allocation2 + $0x168] sm:$0xff] %vm282_vm1, %v3174_v38 }
 0x107   : > { %679 = vst.msk [vmem:[#allocation2 + $0x170] sm:$0xff] %vm282_vm1, %v3174_v38 }
 0x108   : > { %680 = vst.msk [vmem:[#allocation2 + $0x178] sm:$0xff] %vm282_vm1, %v3174_v38 }
 0x109 PF: > { %v681_v39 = vld [vmem:[#allocation2] sm:$0xff]  ;;  %v3552_v60 = vld [vmem:[#allocation2 + $0x8] sm:$0xff]  ;;  %v3554_v42 = vld [vmem:[#allocation2 + $0x10] sm:$0xff]  ;;  %v738_v43 = vlaneseq  ;;  %s3175_s12 = smov 4   ;;  %vm2681_vm6 = vcmask 64544  }
 0x10a   : > { %v714_v44 = vrot.slane %v681_v39, 6  ;;  %v6150_v45 = vrot.slane %v3552_v60, 6  ;;  %v3560_v46 = vld [vmem:[%s6134_s3] ss:$0 sm:$0xff]  ;;  %v791_v48 = vrot.slane %v681_v39, 7  ;;  %v6149_v49 = vrot.slane %v3552_v60, 7 }
 0x10b   : > { %6412 = vst [vmem:[#allocation3_spill] sm:$0xff] %v3560_v46  ;;  %v3562_v47 = vshrl.u32 %v738_v43, 7  ;;  %v900_v36 = vrot.slane %v3552_v60, 1  ;;  %v3569_v52 = vld [vmem:[%s6134_s3 + $0x1] ss:$0 sm:$0xff]  ;;  %v6147_v61 = vrot.slane %v3554_v42, 1 }
 0x10c   : > { %6413 = vst [vmem:[#allocation4_spill] sm:$0xff] %v3569_v52  ;;  %v3574_v53 = vld [vmem:[%s6134_s3 + $0x2] ss:$0 sm:$0xff]  ;;  %v3593_v59 = vld [vmem:[%s6134_s3 + $0x3] ss:$0 sm:$0xff]  ;;  %v975_v62 = vrot.slane %v3552_v60, 2 }
 0x10d   : > { %6414 = vst [vmem:[#allocation5_spill] sm:$0xff] %v3574_v53  ;;  %vm740_vm2 = vcmp.lt.s32.totalorder %v3562_v47, 2  ;;  %vm815_vm3 = vcmp.lt.s32.totalorder %v3562_v47, 1  ;;  %vm924_vm4 = vcmp.lt.s32.totalorder %v3562_v47, 7  ;;  %v867_v58 = vmul.f32 %v3574_v53, %v3552_v60  ;;  %v1050_v63 = vld [vmem:[#allocation2 + $0x20] sm:$0xff]  ;;  %v3608_v3 = vld [vmem:[#allocation2 + $0x28] sm:$0xff] }
 0x10e   : > { %v756_v17 = vsel %vm740_vm2, %v714_v44, %v6150_v45  ;;  %v831_v37 = vsel %vm815_vm3, %v791_v48, %v6149_v49  ;;  %v940_v1 = vsel %vm924_vm4, %v900_v36, %v6147_v61  ;;  %v6146_v2 = vrot.slane %v3554_v42, 2  ;;  %v3606_v25 = vld [vmem:[%s6134_s3 + $0x4] ss:$0 sm:$0xff]  ;;  %v3620_v7 = vld [vmem:[%s6134_s3 + $0x5] ss:$0 sm:$0xff]  ;;  %v3622_v8 = vld [vmem:[#allocation2 + $0x30] sm:$0xff] }
 0x10f   : > { %v758_v0 = vmul.f32 %v3560_v46, %v756_v17  ;;  %v833_v18 = vmul.f32 %v3569_v52, %v831_v37  ;;  %vm999_vm5 = vcmp.lt.s32.totalorder %v3562_v47, 6  ;;  %v1083_v23 = vrot.slane %v1050_v63, 6  ;;  %6415 = vst [vmem:[#allocation6_spill] sm:$0xff] %v3620_v7  ;;  %v3633_v12 = vld [vmem:[%s6134_s3 + $0x6] ss:$0 sm:$0xff]  ;;  %v3640_v15 = vld [vmem:[#allocation2 + $0x48] sm:$0xff] }
 0x110   : > { %v6145_v4 = vrot.slane %v3608_v3, 6  ;;  %v942_v5 = vmul.f32 %v3593_v59, %v940_v1  ;;  %v1015_v6 = vsel %vm999_vm5, %v975_v62, %v6146_v2  ;;  %v1157_v24 = vrot.slane %v1050_v63, 7  ;;  %v1413_v13 = vld [vmem:[#allocation2 + $0x40] sm:$0xff]  ;;  %6416 = vst [vmem:[#allocation7_spill] sm:$0xff] %v3640_v15  ;;  %v3648_v22 = vld [vmem:[%s6134_s3 + $0x8] ss:$0 sm:$0xff] }
 0x111   : > { %v849_v40 = vadd.f32 %v833_v18, %v758_v0  ;;  %v6143_v9 = vrot.slane %v3608_v3, 7  ;;  %v1017_v11 = vmul.f32 %v3606_v25, %v1015_v6  ;;  %v3638_v14 = vld [vmem:[%s6134_s3 + $0x7] ss:$0 sm:$0xff]  ;;  %v1265_v19 = vrot.slane %v3608_v3, 1  ;;  %v3659_v30 = vld [vmem:[%s6134_s3 + $0x9] ss:$0 sm:$0xff] }
 0x112   : > { %v1122_v41 = vsel %vm740_vm2, %v1083_v23, %v6145_v4  ;;  %v6142_v21 = vrot.slane %v3622_v8, 1  ;;  %v1339_v27 = vrot.slane %v3608_v3, 2  ;;  %v6141_v51 = vrot.slane %v3622_v8, 2  ;;  %v3662_v32 = vld [vmem:[#allocation2 + $0x50] sm:$0xff]  ;;  %v3668_v55 = vld [vmem:[%s6134_s3 + $0xa] ss:$0 sm:$0xff] }
 0x113   : > { %v883_v10 = vadd.f32 %v867_v58, %v849_v40  ;;  %v1124_v16 = vmul.f32 %v3620_v7, %v1122_v41  ;;  %v1196_v26 = vsel %vm815_vm3, %v1157_v24, %v6143_v9  ;;  %6417 = vst [vmem:[#allocation8_spill] sm:$0xff] %v3662_v32  ;;  %v1446_v33 = vrot.slane %v1413_v13, 6  ;;  %v3680_v29 = vld [vmem:[%s6134_s3 + $0xb] ss:$0 sm:$0xff]  ;;  %v3685_v38 = vld [vmem:[%s6134_s3 + $0xc] ss:$0 sm:$0xff] }
 0x114   : > { %v1198_v31 = vmul.f32 %v3633_v12, %v1196_v26  ;;  %v6140_v34 = vrot.slane %v3640_v15, 6  ;;  %v1520_v20 = vrot.slane %v1413_v13, 7  ;;  %v6139_v57 = vrot.slane %v3640_v15, 7  ;;  %v1776_v17 = vld [vmem:[#allocation2 + $0x60] sm:$0xff]  ;;  %v3698_v37 = vld [vmem:[#allocation2 + $0x68] sm:$0xff]  ;;  %v3727_v6 = vld [vmem:[#allocation2 + $0x70] sm:$0xff] }
 0x115   : > { %v958_v50 = vadd.f32 %v942_v5, %v883_v10  ;;  %v1232_v35 = vmul.f32 %v3638_v14, %v3608_v3  ;;  %v1304_v28 = vsel %vm924_vm4, %v1265_v19, %v6142_v21  ;;  %v3689_v39 = vmul.f32 %v3574_v53, %v3608_v3  ;;  %6418 = vst [vmem:[#allocation9_spill] sm:$0xff] %v3698_v37  ;;  %v3709_v63 = vld [vmem:[%s6134_s3 + $0xd] ss:$0 sm:$0xff]  ;;  %v3725_v5 = vld [vmem:[%s6134_s3 + $0xe] ss:$0 sm:$0xff]  ;;  %v3796_v4 = vld [vmem:[#allocation2 + $0x90] sm:$0xff] }
 0x116   : > { %v1306_v43 = vmul.f32 %v3648_v22, %v1304_v28  ;;  %v1378_v44 = vsel %vm999_vm5, %v1339_v27, %v6141_v51  ;;  %v1628_v48 = vrot.slane %v3640_v15, 1  ;;  %v6138_v36 = vrot.slane %v3662_v32, 1  ;;  %6419 = vst [vmem:[#allocation10_spill] sm:$0xff] %v3725_v5 }
 0x117   : > { %v1033_v54 = vadd.f32 %v1017_v11, %v958_v50  ;;  %v3704_v62 = vsel %vm740_vm2, %v1446_v33, %v6140_v34  ;;  %v1702_v0 = vrot.slane %v3640_v15, 2  ;;  %v6137_v18 = vrot.slane %v3662_v32, 2  ;;  %6420 = vst [vmem:[#allocation11_spill] sm:$0xff] %v3727_v6 }
 0x118   : > { %v1380_v1 = vmul.f32 %v3659_v30, %v1378_v44  ;;  %v1487_v23 = vmul.f32 %v3668_v55, %v3704_v62  ;;  %v3720_v40 = vsel %vm815_vm3, %v1520_v20, %v6139_v57  ;;  %v760_v24 = vmul.f32 %v3560_v46, %v1122_v41  ;;  %6428 = vst [vmem:[#allocation19_spill] sm:$0xff] %v3796_v4 }
 0x119   : > { %v1140_v56 = vadd.f32 %v1124_v16, %v1033_v54  ;;  %v1561_v11 = vmul.f32 %v3680_v29, %v3720_v40  ;;  %v1809_v13 = vrot.slane %v1776_v17, 6  ;;  %v6144_v50 = vrot.slane %v3698_v37, 6  ;;  %v3736_v16 = vld [vmem:[%s6134_s3 + $0xf] ss:$0 sm:$0xff]  ;;  %v2139_v54 = vld [vmem:[#allocation2 + $0x80] sm:$0xff] }
 0x11a   : > { %6421 = vst [vmem:[#allocation12_spill] sm:$0xff] %v3736_v16  ;;  %v3742_v19 = vsel %vm924_vm4, %v1628_v48, %v6138_v36  ;;  %v1883_v27 = vrot.slane %v1776_v17, 7  ;;  %v6148_v41 = vrot.slane %v3698_v37, 7  ;;  %v1595_v20 = vmul.f32 %v3685_v38, %v3640_v15  ;;  %v3757_v48 = vld [vmem:[%s6134_s3 + $0x10] ss:$0 sm:$0xff] }
 0x11b   : > { %v1214_v58 = vadd.f32 %v1198_v31, %v1140_v56  ;;  %v835_v31 = vmul.f32 %v3569_v52, %v1196_v26  ;;  %v1669_v56 = vmul.f32 %v3709_v63, %v3742_v19  ;;  %6422 = vst [vmem:[#allocation13_spill] sm:$0xff] %v3757_v48  ;;  %v3762_v26 = vld [vmem:[%s6134_s3 + $0x11] ss:$0 sm:$0xff]  ;;  %v1991_v17 = vrot.slane %v3698_v37, 1 }
 0x11c   : > { %v3774_v36 = vsel %vm740_vm2, %v1809_v13, %v6144_v50  ;;  %v2172_v57 = vrot.slane %v2139_v54, 6  ;;  %v3784_v9 = vsel %vm815_vm3, %v1883_v27, %v6148_v41  ;;  %v3794_v13 = vld [vmem:[%s6134_s3 + $0x13] ss:$0 sm:$0xff]  ;;  %v2246_v2 = vrot.slane %v2139_v54, 7 }
 0x11d   : > { %v1248_v10 = vadd.f32 %v1232_v35, %v1214_v58  ;;  %v1741_v35 = vsel %vm999_vm5, %v1702_v0, %v6137_v18  ;;  %v6152_v58 = vrot.slane %v3727_v6, 1  ;;  %v6151_v0 = vrot.slane %v3727_v6, 2  ;;  %6424 = vst [vmem:[#allocation15_spill] sm:$0xff] %v3774_v36 }
 0x11e   : > { %v1743_v51 = vmul.f32 %v3725_v5, %v1741_v35  ;;  %v1850_v21 = vmul.f32 %v3736_v16, %v3774_v36  ;;  %6425 = vst [vmem:[#allocation16_spill] sm:$0xff] %v3784_v9  ;;  %v944_v27 = vmul.f32 %v3593_v59, %v1304_v28  ;;  %v1924_v41 = vmul.f32 %v3757_v48, %v3784_v9  ;;  %v3819_v28 = vld [vmem:[%s6134_s3 + $0x14] ss:$0 sm:$0xff] }
 0x11f   : > { %v1322_v33 = vadd.f32 %v1306_v43, %v1248_v10  ;;  %v3764_v43 = vld [vmem:[#allocation2 + $0x88] sm:$0xff]  ;;  %v2065_v10 = vrot.slane %v3698_v37, 2  ;;  %6427 = vst [vmem:[#allocation18_spill] sm:$0xff] %v3794_v13  ;;  %v1958_v49 = vmul.f32 %v3762_v26, %v3698_v37  ;;  %v3808_v45 = vsel %vm924_vm4, %v1991_v17, %v6152_v58 }
 0x120   : > { %6423 = vst [vmem:[#allocation14_spill] sm:$0xff] %v3764_v43  ;;  %v6153_v34 = vrot.slane %v3764_v43, 6  ;;  %v6437_v6 = vrot.slane %v3796_v4, 1 }
 0x121   : > { %v1396_v18 = vadd.f32 %v1380_v1, %v1322_v33  ;;  %v3789_v1 = vld [vmem:[%s6134_s3 + $0x12] ss:$0 sm:$0xff]  ;;  %v851_v33 = vadd.f32 %v835_v31, %v760_v24  ;;  %6429 = vst [vmem:[#allocation20_spill] sm:$0xff] %v3808_v45  ;;  %v3835_v31 = vld [vmem:[%s6134_s3 + $0x16] ss:$0 sm:$0xff] }
 0x122   : > { %6426 = vst [vmem:[#allocation17_spill] sm:$0xff] %v3789_v1  ;;  %v3830_v54 = vsel %vm740_vm2, %v2172_v57, %v6153_v34  ;;  %v6435_v57 = vrot.slane %v3764_v43, 7 }
 0x123   : > { %v1503_v50 = vadd.f32 %v1487_v23, %v1396_v18  ;;  %v3814_v18 = vsel %vm999_vm5, %v2065_v10, %v6151_v0  ;;  %6431 = vst [vmem:[#allocation22_spill] sm:$0xff] %v3819_v28  ;;  %v3824_v23 = vld [vmem:[%s6134_s3 + $0x15] ss:$0 sm:$0xff]  ;;  %v885_v17 = vadd.f32 %v3689_v39, %v851_v33  ;;  %v1019_v10 = vmul.f32 %v3606_v25, %v1378_v44  ;;  %v3852_v39 = vld [vmem:[%s6134_s3 + $0x17] ss:$0 sm:$0xff] }
 0x124   : > { %6430 = vst [vmem:[#allocation21_spill] sm:$0xff] %v3814_v18  ;;  %v2354_v0 = vrot.slane %v3764_v43, 1  ;;  %v3847_v34 = vsel %vm815_vm3, %v2246_v2, %v6435_v57  ;;  %v3857_v44 = vld [vmem:[%s6134_s3 + $0x18] ss:$0 sm:$0xff]  ;;  %v2106_v2 = vmul.f32 %v3794_v13, %v3814_v18  ;;  %v3867_v57 = vmul.f32 %v3819_v28, %v3830_v54 }
 0x125   : > { %6432 = vst [vmem:[#allocation23_spill] sm:$0xff] %v3824_v23  ;;  %v1577_v24 = vadd.f32 %v1561_v11, %v1503_v50  ;;  %v2428_v11 = vrot.slane %v3764_v43, 2  ;;  %v960_v33 = vadd.f32 %v944_v27, %v885_v17  ;;  %v3871_v50 = vmul.f32 %v3824_v23, %v3847_v34 }
 0x126   : > { %6433 = vst [vmem:[#allocation24_spill] sm:$0xff] %v3830_v54  ;;  %v3875_v27 = vmul.f32 %v3835_v31, %v3764_v43  ;;  %v1200_v17 = vmul.f32 %v3633_v12, %v3720_v40  ;;  %v3883_v32 = vsel %vm924_vm4, %v2354_v0, %v6437_v6 }
 0x127   : > { %6434 = vst [vmem:[#allocation25_spill] sm:$0xff] %v3835_v31  ;;  %v1611_v61 = vadd.f32 %v1595_v20, %v1577_v24  ;;  %v1126_v20 = vmul.f32 %v3620_v7, %v3704_v62  ;;  %v2032_v24 = vmul.f32 %v3789_v1, %v3808_v45  ;;  %v1035_v62 = vadd.f32 %v1019_v10, %v960_v33 }
 0x128   : > { %6436 = vst [vmem:[#allocation26_spill] sm:$0xff] %v3847_v34  ;;  %v6439_v7 = vrot.slane %v3796_v4, 2  ;;  %v3897_v40 = vmul.f32 %v3852_v39, %v3883_v32  ;;  %v1382_v33 = vmul.f32 %v3659_v30, %v1741_v35  ;;  %v3916_v35 = vld [vmem:[#allocation2 + $0xa8] sm:$0xff] }
 0x129   : > { %v1685_v58 = vadd.f32 %v1669_v56, %v1611_v61  ;;  %6438 = vst [vmem:[#allocation27_spill] sm:$0xff] %v3883_v32  ;;  %v1234_v61 = vmul.f32 %v3638_v14, %v3640_v15  ;;  %v1308_v56 = vmul.f32 %v3648_v22, %v3742_v19  ;;  %v1142_v0 = vadd.f32 %v1126_v20, %v1035_v62  ;;  %v2143_v19 = vld [vmem:[#allocation2 + $0xa0] sm:$0xff] }
 0x12a   : > { %v3889_v23 = vsel %vm999_vm5, %v2428_v11, %v6439_v7  ;;  %v1489_v7 = vmul.f32 %v3668_v55, %v3774_v36  ;;  %v1563_v11 = vmul.f32 %v3680_v29, %v3784_v9  ;;  %v1671_v15 = vmul.f32 %v3709_v63, %v3808_v45  ;;  %6441 = vst [vmem:[#allocation29_spill] sm:$0xff] %v3916_v35  ;;  %v684_v45 = vld [vmem:[#allocation2 + $0x18] sm:$0xff] }
 0x12b   : > { %6440 = vst [vmem:[#allocation28_spill] sm:$0xff] %v3889_v23  ;;  %v1759_v10 = vadd.f32 %v1743_v51, %v1685_v58  ;;  %v3901_v6 = vmul.f32 %v3857_v44, %v3889_v23  ;;  %v1597_v51 = vmul.f32 %v3685_v38, %v3698_v37  ;;  %v1216_v4 = vadd.f32 %v1200_v17, %v1142_v0 }
 0x12c   : > { %v3914_v20 = vmul.f32 %v3725_v5, %v3814_v18  ;;  %v3920_v62 = vmul.f32 %v3736_v16, %v3830_v54  ;;  %v3924_v9 = vmul.f32 %v3757_v48, %v3847_v34  ;;  %v3932_v17 = vmul.f32 %v3789_v1, %v3883_v32 }
 0x12d   : > { %v1866_v58 = vadd.f32 %v1850_v21, %v1759_v10  ;;  %v3928_v21 = vmul.f32 %v3762_v26, %v3764_v43  ;;  %v1250_v0 = vadd.f32 %v1234_v61, %v1216_v4  ;;  %v3936_v18 = vmul.f32 %v3794_v13, %v3889_v23 }
 0x12e   : > { %v2175_v54 = vrot.slane %v2143_v19, 6  ;;  %v3939_v36 = vrot.slane %v3916_v35, 6  ;;  %v2249_v34 = vrot.slane %v2143_v19, 7  ;;  %v716_v48 = vrot.slane %v3554_v42, 6 }
 0x12f   : > { %v1940_v10 = vadd.f32 %v1924_v41, %v1866_v58  ;;  %v793_v43 = vrot.slane %v3554_v42, 7  ;;  %v1324_v5 = vadd.f32 %v1308_v56, %v1250_v0  ;;  %v3944_v32 = vrot.slane %v3916_v35, 7 }
 0x130   : > { %6442 = vst [vmem:[#allocation30_spill] sm:$0xff] %v3939_v36  ;;  %v3948_v4 = vmul.f32 %v3835_v31, %v3916_v35  ;;  %v2357_v41 = vrot.slane %v3916_v35, 1  ;;  %v6445_v61 = vrot.slane %v3552_v60, 6  ;;  %v6446_v58 = vrot.slane %v3552_v60, 7 }
 0x131   : > { %v1974_v16 = vadd.f32 %v1958_v49, %v1940_v10  ;;  %6443 = vst [vmem:[#allocation31_spill] sm:$0xff] %v3944_v32  ;;  %v902_v56 = vrot.slane %v684_v45, 1  ;;  %v1398_v0 = vadd.f32 %v1382_v33, %v1324_v5  ;;  %v868_v31 = vmul.f32 %v3574_v53, %v3554_v42 }
 0x132   : > { %6444 = vst [vmem:[#allocation32_spill] sm:$0xff] %v3948_v4  ;;  %v755_v19 = vsel %vm740_vm2, %v6445_v61, %v716_v48  ;;  %v830_v49 = vsel %vm815_vm3, %v6446_v58, %v793_v43  ;;  %v6447_v13 = vrot.slane %v3554_v42, 1  ;;  %v977_v61 = vrot.slane %v684_v45, 2  ;;  %v3968_v58 = vld [vmem:[#allocation2 + $0xb0] sm:$0xff] }
 0x133   : > { %v2048_v10 = vadd.f32 %v2032_v24, %v1974_v16  ;;  %v759_v23 = vmul.f32 %v3560_v46, %v755_v19  ;;  %v834_v4 = vmul.f32 %v3569_v52, %v830_v49  ;;  %v1085_v60 = vrot.slane %v3622_v8, 6  ;;  %6448 = vst [vmem:[#allocation33_spill] sm:$0xff] %v3968_v58  ;;  %v1053_v19 = vld [vmem:[#allocation2 + $0x38] sm:$0xff] }
 0x134   : > { %v939_v48 = vsel %vm924_vm4, %v6447_v13, %v902_v56  ;;  %v1505_v43 = vadd.f32 %v1489_v7, %v1398_v0  ;;  %v3973_v5 = vsel %vm740_vm2, %v2175_v54, %v3939_v36  ;;  %v3978_v16 = vsel %vm815_vm3, %v2249_v34, %v3944_v32 }
 0x135   : > { %v2122_v1 = vadd.f32 %v2106_v2, %v2048_v10  ;;  %6449 = vst [vmem:[#allocation34_spill] sm:$0xff] %v3973_v5  ;;  %v3981_v24 = vrot.slane %v3968_v58, 1  ;;  %v850_v45 = vadd.f32 %v834_v4, %v759_v23  ;;  %v943_v13 = vmul.f32 %v3593_v59, %v939_v48 }
 0x136   : > { %6450 = vst [vmem:[#allocation35_spill] sm:$0xff] %v3978_v16  ;;  %v6452_v2 = vrot.slane %v3554_v42, 2  ;;  %v1579_v54 = vadd.f32 %v1563_v11, %v1505_v43  ;;  %v6453_v49 = vrot.slane %v3608_v3, 6  ;;  %v1159_v56 = vrot.slane %v3622_v8, 7  ;;  %v6454_v11 = vld [vmem:[#allocation23_spill] sm:$0xff] }
 0x137   : > { %6451 = vst [vmem:[#allocation36_spill] sm:$0xff] %v3981_v24  ;;  %v2229_v7 = vadd.f32 %v3867_v57, %v2122_v1  ;;  %v3998_v23 = vmul.f32 %v3819_v28, %v3973_v5  ;;  %v2431_v42 = vrot.slane %v3916_v35, 2  ;;  %v884_v4 = vadd.f32 %v868_v31, %v850_v45  ;;  %v6457_v31 = vld [vmem:[#allocation6_spill] sm:$0xff] }
 0x138   : > { %v1014_v33 = vsel %vm999_vm5, %v6452_v2, %v977_v61  ;;  %v3993_v34 = vsel %vm740_vm2, %v6453_v49, %v1085_v60  ;;  %v1613_v57 = vadd.f32 %v1597_v51, %v1579_v54  ;;  %v4005_v0 = vmul.f32 %v6454_v11, %v3978_v16  ;;  %v6460_v49 = vld [vmem:[#allocation8_spill] sm:$0xff]  ;;  %v6467_v16 = vld [vmem:[#allocation11_spill] sm:$0xff] }
 0x139   : > { %v1018_v10 = vmul.f32 %v3606_v25, %v1014_v33  ;;  %v2303_v1 = vadd.f32 %v3871_v50, %v2229_v7  ;;  %v4010_v48 = vsel %vm924_vm4, %v2357_v41, %v3981_v24  ;;  %v4013_v61 = vrot.slane %v3968_v58, 2  ;;  %v6473_v24 = vld [vmem:[#allocation10_spill] sm:$0xff]  ;;  %v6475_v58 = vld [vmem:[#allocation19_spill] sm:$0xff] }
 0x13a   : > { %6455 = vst [vmem:[#allocation23_spill] sm:$0xff] %v4010_v48  ;;  %v959_v60 = vadd.f32 %v943_v13, %v884_v4  ;;  %v1125_v43 = vmul.f32 %v6457_v31, %v3993_v34  ;;  %v1267_v45 = vrot.slane %v1053_v19, 1  ;;  %v1687_v51 = vadd.f32 %v1671_v15, %v1613_v57 }
 0x13b   : > { %6456 = vst [vmem:[#allocation37_spill] sm:$0xff] %v4013_v61  ;;  %v2337_v50 = vadd.f32 %v3875_v27, %v2303_v1  ;;  %v6458_v2 = vrot.slane %v3608_v3, 7  ;;  %v1341_v7 = vrot.slane %v1053_v19, 2  ;;  %v4025_v41 = vsel %vm999_vm5, %v2431_v42, %v4013_v61  ;;  %v4033_v3 = vld [vmem:[%s6135_s4] ss:$0 sm:$0xff] }
 0x13c   : > { %6459 = vst [vmem:[#allocation6_spill] sm:$0xff] %v4025_v41  ;;  %v1034_v54 = vadd.f32 %v1018_v10, %v959_v60  ;;  %v1448_v4 = vrot.slane %v6460_v49, 6  ;;  %v1761_v15 = vadd.f32 %v3914_v20, %v1687_v51  ;;  %v4038_v27 = vmul.f32 %v3852_v39, %v4010_v48 }
 0x13d   : > { %v1195_v33 = vsel %vm815_vm3, %v6458_v2, %v1159_v56  ;;  %v2411_v35 = vadd.f32 %v3897_v40, %v2337_v50  ;;  %6461 = vst [vmem:[#allocation8_spill] sm:$0xff] %v4033_v3  ;;  %v4042_v19 = vmul.f32 %v3857_v44, %v4025_v41  ;;  %v1416_v56 = vld [vmem:[#allocation2 + $0x58] sm:$0xff]  ;;  %v1233_v40 = vmul.f32 %v3638_v14, %v3622_v8  ;;  %v6464_v41 = vld [vmem:[#allocation7_spill] sm:$0xff] }
 0x13e   : > { %v1199_v13 = vmul.f32 %v3633_v12, %v1195_v33  ;;  %v1141_v42 = vadd.f32 %v1125_v43, %v1034_v54  ;;  %v6462_v10 = vrot.slane %v3622_v8, 1  ;;  %v1522_v20 = vrot.slane %v6460_v49, 7 }
 0x13f   : > { %v2485_v57 = vadd.f32 %v3901_v6, %v2411_v35  ;;  %v1868_v60 = vadd.f32 %v3920_v62, %v1761_v15  ;;  %v6463_v51 = vrot.slane %v3622_v8, 2  ;;  %v6465_v48 = vrot.slane %v6464_v41, 6  ;;  %v1779_v15 = vld [vmem:[#allocation2 + $0x78] sm:$0xff] }
 0x140   : > { %v1303_v1 = vsel %vm924_vm4, %v6462_v10, %v1267_v45  ;;  %v1215_v2 = vadd.f32 %v1199_v13, %v1141_v42  ;;  %v1630_v10 = vrot.slane %v1416_v56, 1  ;;  %v1704_v62 = vrot.slane %v1416_v56, 2 }
 0x141   : > { %v1307_v50 = vmul.f32 %v3648_v22, %v1303_v1  ;;  %v1377_v43 = vsel %vm999_vm5, %v6463_v51, %v1341_v7  ;;  %v4063_v45 = vsel %vm740_vm2, %v6465_v48, %v1448_v4  ;;  %v4066_v6 = vadd.f32 %v4033_v3, %v2485_v57 }
 0x142   : > { %v1381_v54 = vmul.f32 %v3659_v30, %v1377_v43  ;;  %v1942_v35 = vadd.f32 %v3924_v9, %v1868_v60  ;;  %v1811_v5 = vrot.slane %v6467_v16, 6  ;;  %v1249_v7 = vadd.f32 %v1233_v40, %v1215_v2 }
 0x143   : > { %6466 = vst [vmem:[#allocation7_spill] sm:$0xff] %v4066_v6  ;;  %v1488_v13 = vmul.f32 %v3668_v55, %v4063_v45  ;;  %v6468_v42 = vrot.slane %v6464_v41, 7  ;;  %v1596_v4 = vmul.f32 %v3685_v38, %v6460_v49  ;;  %v2521_v57 = vsub.f32 0.0, %v4066_v6 }
 0x144   : > { %v1976_v9 = vadd.f32 %v3928_v21, %v1942_v35  ;;  %v1885_v40 = vrot.slane %v6467_v16, 7  ;;  %v1323_v60 = vadd.f32 %v1307_v50, %v1249_v7  ;;  %v6469_v51 = vrot.slane %v6460_v49, 1 }
 0x145   : > { %v4076_v48 = vsel %vm815_vm3, %v6468_v42, %v1522_v20  ;;  %v4091_v20 = vmul.f32 %v3762_v26, %v6467_v16  ;;  %v1993_v2 = vrot.slane %v1779_v15, 1  ;;  %v2537_v42 = vmul.f32 1.442695, %v2521_v57  ;;  %v6474_v57 = vld [vmem:[#allocation12_spill] sm:$0xff] }
 0x146   : > { %v1562_v56 = vmul.f32 %v3680_v29, %v4076_v48  ;;  %v1666_v41 = vsel %vm924_vm4, %v6469_v51, %v1630_v10  ;;  %v2050_v61 = vadd.f32 %v3932_v17, %v1976_v9  ;;  %v6470_v21 = vrot.slane %v6460_v49, 2 }
 0x147   : > { %v6471_v50 = vrot.slane %v3698_v37, 6  ;;  %v1397_v10 = vadd.f32 %v1381_v54, %v1323_v60  ;;  %v1670_v51 = vmul.f32 %v3709_v63, %v1666_v41  ;;  %v2067_v36 = vrot.slane %v1779_v15, 2 }
 0x148   : > { %v1740_v35 = vsel %vm999_vm5, %v6470_v21, %v1704_v62  ;;  %3003 = vpow2.f32 %v2537_v42  ;;  %v2124_v17 = vadd.f32 %v3936_v18, %v2050_v61  ;;  %v2174_v62 = vrot.slane %v6475_v58, 6 }
 0x149   : > { %v4102_v7 = vsel %vm740_vm2, %v6471_v50, %v1811_v5  ;;  %v1744_v32 = vmul.f32 %v6473_v24, %v1740_v35  ;;  %v1504_v21 = vadd.f32 %v1488_v13, %v1397_v10  ;;  %v6476_v6 = vrot.slane %v3698_v37, 7  ;;  %v6481_v10 = vld [vmem:[#allocation17_spill] sm:$0xff] }
 0x14a   : > { %6472 = vst [vmem:[#allocation38_spill] sm:$0xff] %v4102_v7  ;;  %v1851_v9 = vmul.f32 %v6474_v57, %v4102_v7  ;;  %v6478_v54 = vrot.slane %v6467_v16, 1  ;;  %v2248_v18 = vrot.slane %v6475_v58, 7  ;;  %v2231_v61 = vadd.f32 %v3998_v23, %v2124_v17  ;;  %v4140_v17 = vld [vmem:[#allocation2 + $0x98] sm:$0xff] }
 0x14b   : > { %v4114_v5 = vsel %vm815_vm3, %v6476_v6, %v1885_v40  ;;  %v761_v60 = vmul.f32 %v3560_v46, %v3993_v34  ;;  %v836_v13 = vmul.f32 %v3569_v52, %v1195_v33  ;;  %v870_v42 = vmul.f32 %v3574_v53, %v3622_v8  ;;  %v6480_v40 = vld [vmem:[#allocation13_spill] sm:$0xff]  ;;  %6484 = vst [vmem:[#allocation40_spill] sm:$0xff] %v4140_v17  ;;  %v6485_v33 = vld [vmem:[#allocation14_spill] sm:$0xff] }
 0x14c   : > { %6477 = vst [vmem:[#allocation10_spill] sm:$0xff] %v4114_v5  ;;  %v4120_v15 = vsel %vm924_vm4, %v6478_v54, %v1993_v2  ;;  %v1578_v6 = vadd.f32 %v1562_v56, %v1504_v21  ;;  %v1925_v50 = vmul.f32 %v6480_v40, %v4114_v5  ;;  %v6482_v54 = vrot.slane %v6467_v16, 2  ;;  %v6488_v52 = vld [vmem:[#allocation18_spill] sm:$0xff] }
 0x14d   : > { %6479 = vst [vmem:[#allocation39_spill] sm:$0xff] %v4120_v15  ;;  %v2033_v2 = vmul.f32 %v6481_v10, %v4120_v15  ;;  %v2305_v34 = vadd.f32 %v4005_v0, %v2231_v61  ;;  %v6486_v37 = vrot.slane %v6485_v33, 6  ;;  %v852_v56 = vadd.f32 %v836_v13, %v761_v60 }
 0x14e   : > { %v4137_v23 = vsel %vm999_vm5, %v6482_v54, %v2067_v36  ;;  %v945_v21 = vmul.f32 %v3593_v59, %v1303_v1  ;;  %v1612_v53 = vadd.f32 %v1596_v4, %v1578_v6  ;;  %v6490_v0 = vrot.slane %v6485_v33, 7  ;;  %v3004_v54 = vpop.eup %3003 }
 0x14f   : > { %6483 = vst [vmem:[#allocation13_spill] sm:$0xff] %v4137_v23  ;;  %v4146_v8 = vsel %vm740_vm2, %v6486_v37, %v2174_v62  ;;  %v2107_v46 = vmul.f32 %v6488_v52, %v4137_v23  ;;  %v6492_v37 = vld [vmem:[#allocation32_spill] sm:$0xff]  ;;  %v886_v4 = vadd.f32 %v870_v42, %v852_v56  ;;  %v1020_v60 = vmul.f32 %v3606_v25, %v1377_v43 }
 0x150   : > { %6487 = vst [vmem:[#allocation41_spill] sm:$0xff] %v4146_v8  ;;  %v4153_v36 = vmul.f32 %v3819_v28, %v4146_v8  ;;  %v4159_v61 = vsel %vm815_vm3, %v6490_v0, %v2248_v18  ;;  %v2339_v62 = vadd.f32 %v6492_v37, %v2305_v34  ;;  %v2569_v13 = vadd.f32 1.0, %v3004_v54  ;;  %v6493_v18 = vld [vmem:[#allocation25_spill] sm:$0xff] }
 0x151   : > { %6491 = vst [vmem:[#allocation42_spill] sm:$0xff] %v4159_v61  ;;  %v4164_v1 = vmul.f32 %v6454_v11, %v4159_v61  ;;  %v1686_v6 = vadd.f32 %v1670_v51, %v1612_v53  ;;  %v6215_v28 = vrot.slane %v4140_v17, 1  ;;  %v6214_v33 = vrot.slane %v4140_v17, 2  ;;  %v6499_v17 = vld [vmem:[#allocation33_spill] sm:$0xff] }
 0x152   : > { %6489 = vst [vmem:[#allocation18_spill] sm:$0xff] %v4153_v36  ;;  %v2413_v36 = vadd.f32 %v4038_v27, %v2339_v62  ;;  %v4172_v0 = vmul.f32 %v6493_v18, %v6475_v58  ;;  %v961_v34 = vadd.f32 %v945_v21, %v886_v4  ;;  %v1127_v37 = vmul.f32 %v6457_v31, %v4063_v45 }
 0x153   : > { %3005 = vrcp.f32 %v2569_v13  ;;  %v1760_v42 = vadd.f32 %v1744_v32, %v1686_v6  ;;  %v6494_v53 = vrot.slane %v6475_v58, 1  ;;  %v6496_v27 = vrot.slane %v6475_v58, 2 }
 0x154   : > { %v2487_v45 = vadd.f32 %v4042_v19, %v2413_v36  ;;  %v1036_v56 = vadd.f32 %v1020_v60, %v961_v34  ;;  %v1201_v21 = vmul.f32 %v3633_v12, %v4076_v48  ;;  %v1235_v4 = vmul.f32 %v3638_v14, %v6460_v49 }
 0x155   : > { %v4182_v43 = vsel %vm924_vm4, %v6494_v53, %v6215_v28  ;;  %v4190_v51 = vsel %vm999_vm5, %v6496_v27, %v6214_v33  ;;  %v1867_v54 = vadd.f32 %v1851_v9, %v1760_v42  ;;  %v1309_v13 = vmul.f32 %v3648_v22, %v1666_v41 }
 0x156   : > { %6495 = vst [vmem:[#allocation32_spill] sm:$0xff] %v4182_v43  ;;  %v4195_v32 = vmul.f32 %v3852_v39, %v4182_v43  ;;  %v4201_v62 = vmul.f32 %v3857_v44, %v4190_v51  ;;  %v4207_v19 = vadd.f32 %v4033_v3, %v2487_v45  ;;  %v1143_v36 = vadd.f32 %v1127_v37, %v1036_v56 }
 0x157   : > { %v1383_v6 = vmul.f32 %v3659_v30, %v1740_v35  ;;  %v1490_v60 = vmul.f32 %v3668_v55, %v4102_v7  ;;  %v1941_v48 = vadd.f32 %v1925_v50, %v1867_v54  ;;  %v1564_v9 = vmul.f32 %v3680_v29, %v4114_v5  ;;  %v6498_v54 = vld [vmem:[#allocation7_spill] sm:$0xff] }
 0x158   : > { %v1598_v34 = vmul.f32 %v3685_v38, %v6467_v16  ;;  %v4218_v49 = vmul.f32 %v3709_v63, %v4120_v15  ;;  %v2523_v41 = vsub.f32 0.0, %v4207_v19  ;;  %v1217_v42 = vadd.f32 %v1201_v21, %v1143_v36  ;;  %v2146_v21 = vld [vmem:[#allocation2 + $0xb8] sm:$0xff]  ;;  %v6502_v16 = vld [vmem:[#allocation16_spill] sm:$0xff] }
 0x159   : > { %v4223_v35 = vmul.f32 %v6473_v24, %v4137_v23  ;;  %v4227_v50 = vmul.f32 %v6474_v57, %v4146_v8  ;;  %v3006_v37 = vpop.eup %3005  ;;  %v1975_v53 = vadd.f32 %v4091_v20, %v1941_v48  ;;  %v4232_v27 = vmul.f32 %v6480_v40, %v4159_v61  ;;  %v6500_v61 = vld [vmem:[#allocation15_spill] sm:$0xff] }
 0x15a   : > { %v4236_v45 = vmul.f32 %v3762_v26, %v6475_v58  ;;  %v4240_v56 = vmul.f32 %v6481_v10, %v4182_v43  ;;  %v2601_v36 = vmul.f32 %v3006_v37, %v6498_v54  ;;  %v2541_v33 = vmul.f32 1.442695, %v2523_v41  ;;  %v6501_v23 = vld [vmem:[#allocation3_spill] sm:$0xff]  ;;  %v6503_v58 = vld [vmem:[#allocation4_spill] sm:$0xff]  ;;  %v6504_v37 = vld [vmem:[#allocation9_spill] sm:$0xff] }
 0x15b   : > { %v1251_v28 = vadd.f32 %v1235_v4, %v1217_v42  ;;  %v2177_v8 = vrot.slane %v6499_v17, 6  ;;  %v2049_v20 = vadd.f32 %v2033_v2, %v1975_v53  ;;  %v2251_v48 = vrot.slane %v6499_v17, 7  ;;  %v6505_v41 = vld [vmem:[#allocation5_spill] sm:$0xff]  ;;  %v6506_v53 = vld [vmem:[#allocation20_spill] sm:$0xff] }
 0x15c   : > { %6497 = vst [vmem:[#allocation25_spill] sm:$0xff] %v4240_v56  ;;  %v764_v15 = vmul.f32 %v6501_v23, %v6500_v61  ;;  %v839_v5 = vmul.f32 %v6503_v58, %v6502_v16  ;;  %2633 = vrot.lane.b32.xlu0 %v2601_v36, %s3175_s12  ;;  %3007 = vpow2.f32 %v2541_v33  ;;  %v2359_v56 = vrot.slane %v2146_v21, 1  ;;  %v6507_v16 = vld [vmem:[#allocation30_spill] sm:$0xff] }
 0x15d   : > { %v1325_v43 = vadd.f32 %v1309_v13, %v1251_v28  ;;  %v873_v4 = vmul.f32 %v6505_v41, %v6504_v37  ;;  %v2123_v42 = vadd.f32 %v2107_v46, %v2049_v20  ;;  %v2433_v54 = vrot.slane %v2146_v21, 2  ;;  %v6509_v46 = vld [vmem:[#allocation18_spill] sm:$0xff] }
 0x15e   : > { %v855_v2 = vadd.f32 %v839_v5, %v764_v15  ;;  %v948_v7 = vmul.f32 %v3593_v59, %v6506_v53  ;;  %v4256_v61 = vmul.f32 %v6488_v52, %v4190_v51  ;;  %v4261_v33 = vsel %vm740_vm2, %v6507_v16, %v2177_v8  ;;  %v6510_v5 = vld [vmem:[#allocation31_spill] sm:$0xff]  ;;  %v6513_v20 = vld [vmem:[#allocation22_spill] sm:$0xff]  ;;  %v6514_v53 = vld [vmem:[#allocation36_spill] sm:$0xff] }
 0x15f   : > { %v1399_v10 = vadd.f32 %v1383_v6, %v1325_v43  ;;  %6508 = vst [vmem:[#allocation7_spill] sm:$0xff] %v4261_v33  ;;  %v4265_v28 = vmul.f32 %v6493_v18, %v6499_v17  ;;  %v2230_v13 = vadd.f32 %v6509_v46, %v2123_v42  ;;  %v4271_v15 = vsel %vm815_vm3, %v6510_v5, %v2251_v48  ;;  %v6512_v6 = vld [vmem:[#allocation21_spill] sm:$0xff] }
 0x160   : > { %6511 = vst [vmem:[#allocation15_spill] sm:$0xff] %v4271_v15  ;;  %v889_v43 = vadd.f32 %v873_v4, %v855_v2  ;;  %v1023_v21 = vmul.f32 %v3606_v25, %v6512_v6  ;;  %v4277_v8 = vmul.f32 %v6513_v20, %v4261_v33  ;;  %v4281_v37 = vmul.f32 %v6454_v11, %v4271_v15  ;;  %v6516_v4 = vld [vmem:[#allocation37_spill] sm:$0xff]  ;;  %v1788_v6 = vld [vmem:[#allocation2 + $0xc0] sm:$0xff]  ;;  %v6524_v15 = vld [vmem:[#allocation28_spill] sm:$0xff] }
 0x161   : > { %v1506_v36 = vadd.f32 %v1490_v60, %v1399_v10  ;;  %v4286_v42 = vsel %vm924_vm4, %v6514_v53, %v2359_v56  ;;  %v2304_v48 = vadd.f32 %v4164_v1, %v2230_v13  ;;  %v4292_v2 = vsel %vm999_vm5, %v6516_v4, %v2433_v54  ;;  %v6518_v60 = vld [vmem:[#allocation24_spill] sm:$0xff]  ;;  %v6520_v1 = vld [vmem:[#allocation26_spill] sm:$0xff]  ;;  %v6523_v53 = vld [vmem:[#allocation27_spill] sm:$0xff] }
 0x162   : > { %6515 = vst [vmem:[#allocation3_spill] sm:$0xff] %v4286_v42  ;;  %v964_v10 = vadd.f32 %v948_v7, %v889_v43  ;;  %v1130_v46 = vmul.f32 %v6457_v31, %v6518_v60  ;;  %v3008_v5 = vpop.eup %3007  ;;  %v4298_v17 = vmul.f32 %v3852_v39, %v4286_v42  ;;  %v4302_v56 = vmul.f32 %v3857_v44, %v4292_v2  ;;  %v4306_v54 = vld [vmem:[#allocation2 + $0xc8] sm:$0xff]  ;;  %v6522_v4 = vld [vmem:[#allocation14_spill] sm:$0xff] }
 0x163   : > { %6517 = vst [vmem:[#allocation16_spill] sm:$0xff] %v4292_v2  ;;  %v1580_v16 = vadd.f32 %v1564_v9, %v1506_v36  ;;  %v1204_v13 = vmul.f32 %v3633_v12, %v6520_v1  ;;  %v2571_v7 = vadd.f32 1.0, %v3008_v5  ;;  %v2338_v43 = vadd.f32 %v4172_v0, %v2304_v48 }
 0x164   : > { %6519 = vst [vmem:[#allocation4_spill] sm:$0xff] %v4302_v56  ;;  %v1039_v60 = vadd.f32 %v1023_v21, %v964_v10  ;;  %v1238_v9 = vmul.f32 %v3638_v14, %v6522_v4  ;;  %v1312_v42 = vmul.f32 %v3648_v22, %v6523_v53  ;;  %v1386_v2 = vmul.f32 %v3659_v30, %v6524_v15  ;;  %v6526_v21 = vld [vmem:[#allocation34_spill] sm:$0xff]  ;;  %v6528_v53 = vld [vmem:[#allocation29_spill] sm:$0xff] }
 0x165   : > { %6521 = vst [vmem:[#allocation9_spill] sm:$0xff] %v4306_v54  ;;  %v1614_v36 = vadd.f32 %v1598_v34, %v1580_v16  ;;  %v1818_v56 = vrot.slane %v1788_v6, 6  ;;  %3009 = vrcp.f32 %v2571_v7  ;;  %v2412_v1 = vadd.f32 %v4195_v32, %v2338_v43  ;;  %v6527_v34 = vld [vmem:[#allocation35_spill] sm:$0xff]  ;;  %v4327_v7 = vld [vmem:[#allocation2 + $0xd0] sm:$0xff] }
 0x166   : > { %v1146_v33 = vadd.f32 %v1130_v46, %v1039_v60  ;;  %v4317_v5 = vrot.slane %v4306_v54, 6  ;;  %v1493_v48 = vmul.f32 %v3668_v55, %v6526_v21  ;;  %v1567_v16 = vmul.f32 %v3680_v29, %v6527_v34  ;;  %v6530_v43 = vld [vmem:[#allocation23_spill] sm:$0xff] }
 0x167   : > { %v1688_v0 = vadd.f32 %v4218_v49, %v1614_v36  ;;  %v1601_v4 = vmul.f32 %v3685_v38, %v6528_v53  ;;  %v2486_v15 = vadd.f32 %v4201_v62, %v2412_v1  ;;  %v1892_v32 = vrot.slane %v1788_v6, 7 }
 0x168   : > { %6525 = vst [vmem:[#allocation5_spill] sm:$0xff] %v4317_v5  ;;  %v1220_v10 = vadd.f32 %v1204_v13, %v1146_v33  ;;  %v4330_v46 = vrot.slane %v4306_v54, 7  ;;  %v1675_v60 = vmul.f32 %v3709_v63, %v6530_v43  ;;  %v2000_v36 = vrot.slane %v4306_v54, 1  ;;  %v6533_v33 = vld [vmem:[#allocation6_spill] sm:$0xff] }
 0x169   : > { %v1762_v49 = vadd.f32 %v4223_v35, %v1688_v0  ;;  %v4337_v21 = vrot.slane %v4327_v7, 1  ;;  %v4340_v34 = vadd.f32 %v4033_v3, %v2486_v15  ;;  %v1749_v6 = vmul.f32 %v6473_v24, %v6533_v33  ;;  %v4358_v15 = vld [vmem:[#allocation2 + $0xe8] sm:$0xff] }
 0x16a   : > { %6529 = vst [vmem:[#allocation20_spill] sm:$0xff] %v4330_v46  ;;  %v1254_v62 = vadd.f32 %v1238_v9, %v1220_v10  ;;  %v4347_v13 = vsel %vm740_vm2, %v1818_v56, %v4317_v5  ;;  %v4352_v1 = vmul.f32 %v3762_v26, %v4306_v54  ;;  %v2074_v0 = vrot.slane %v4306_v54, 2  ;;  %v2151_v9 = vld [vmem:[#allocation2 + $0xe0] sm:$0xff] }
 0x16b   : > { %6531 = vst [vmem:[#allocation18_spill] sm:$0xff] %v4337_v21  ;;  %v1869_v35 = vadd.f32 %v4227_v50, %v1762_v49  ;;  %v4356_v53 = vrot.slane %v4327_v7, 2  ;;  %v3010_v10 = vpop.eup %3009  ;;  %v2522_v43 = vsub.f32 0.0, %v4340_v34  ;;  %v1856_v56 = vmul.f32 %v6474_v57, %v4347_v13 }
 0x16c   : > { %6532 = vst [vmem:[#allocation21_spill] sm:$0xff] %v4340_v34  ;;  %v1328_v33 = vadd.f32 %v1312_v42, %v1254_v62  ;;  %v4366_v50 = vsel %vm815_vm3, %v1892_v32, %v4330_v46  ;;  %v2603_v49 = vmul.f32 %v3010_v10, %v4207_v19  ;;  %v4375_v34 = vsel %vm924_vm4, %v2000_v36, %v4337_v21  ;;  %v4391_v10 = vld [vmem:[#allocation2 + $0xf0] sm:$0xff] }
 0x16d   : > { %6534 = vst [vmem:[#allocation22_spill] sm:$0xff] %v4347_v13  ;;  %v1943_v54 = vadd.f32 %v4232_v27, %v1869_v35  ;;  %v1930_v3 = vmul.f32 %v6480_v40, %v4366_v50  ;;  %v2539_v42 = vmul.f32 1.442695, %v2522_v43  ;;  %v2181_v13 = vrot.slane %v2151_v9, 6  ;;  %v6540_v27 = vld [vmem:[#allocation17_spill] sm:$0xff] }
 0x16e   : > { %6535 = vst [vmem:[#allocation24_spill] sm:$0xff] %v4356_v53  ;;  %v1402_v62 = vadd.f32 %v1386_v2, %v1328_v33  ;;  %v4378_v57 = vrot.slane %v4358_v15, 6  ;;  %2637 = vrot.lane.b32.xlu1 %v2603_v49, %s3175_s12  ;;  %v4384_v32 = vmul.f32 %v6540_v27, %v4375_v34  ;;  %v4389_v35 = vsel %vm999_vm5, %v2074_v0, %v4356_v53  ;;  %v6543_v33 = vld [vmem:[#allocation38_spill] sm:$0xff]  ;;  %v6548_v27 = vld [vmem:[#allocation11_spill] sm:$0xff] }
 0x16f   : > { %6536 = vst [vmem:[#allocation26_spill] sm:$0xff] %v4358_v15  ;;  %v1977_v19 = vadd.f32 %v4236_v45, %v1943_v54  ;;  %v2255_v36 = vrot.slane %v2151_v9, 7  ;;  %3011 = vpow2.f32 %v2539_v42  ;;  %v4394_v43 = vrot.slane %v4358_v15, 7  ;;  %v6544_v54 = vld [vmem:[#allocation25_spill] sm:$0xff]  ;;  %v6546_v0 = vld [vmem:[#allocation10_spill] sm:$0xff] }
 0x170   : > { %6537 = vst [vmem:[#allocation14_spill] sm:$0xff] %v4366_v50  ;;  %v1509_v2 = vadd.f32 %v1493_v48, %v1402_v62  ;;  %v765_v45 = vmul.f32 %v6501_v23, %v6543_v33  ;;  %v4401_v50 = vrot.slane %v4391_v10, 1  ;;  %v840_v9 = vmul.f32 %v6503_v58, %v6546_v0 }
 0x171   : > { %6538 = vst [vmem:[#allocation27_spill] sm:$0xff] %v4375_v34  ;;  %v2051_v49 = vadd.f32 %v6544_v54, %v1977_v19  ;;  %v2363_v34 = vrot.slane %v4358_v15, 1  ;;  %v2437_v48 = vrot.slane %v4358_v15, 2  ;;  %v4407_v62 = vrot.slane %v4391_v10, 2  ;;  %v6550_v54 = vld [vmem:[#allocation39_spill] sm:$0xff] }
 0x172   : > { %6539 = vst [vmem:[#allocation28_spill] sm:$0xff] %v4378_v57  ;;  %v1583_v42 = vadd.f32 %v1567_v16, %v1509_v2  ;;  %v874_v53 = vmul.f32 %v6505_v41, %v6548_v27  ;;  %v4415_v19 = vsel %vm740_vm2, %v2181_v13, %v4378_v57  ;;  %v856_v33 = vadd.f32 %v840_v9, %v765_v45 }
 0x173   : > { %6541 = vst [vmem:[#allocation34_spill] sm:$0xff] %v4389_v35  ;;  %v2125_v23 = vadd.f32 %v4256_v61, %v2051_v49  ;;  %v949_v58 = vmul.f32 %v3593_v59, %v6550_v54  ;;  %v2112_v2 = vmul.f32 %v6488_v52, %v4389_v35  ;;  %v4423_v0 = vmul.f32 %v6513_v20, %v4415_v19 }
 0x174   : > { %6542 = vst [vmem:[#allocation35_spill] sm:$0xff] %v4394_v43  ;;  %v1617_v16 = vadd.f32 %v1601_v4, %v1583_v42  ;;  %v4427_v41 = vmul.f32 %v6493_v18, %v4358_v15  ;;  %v4433_v13 = vsel %vm815_vm3, %v2255_v36, %v4394_v43  ;;  %v890_v59 = vadd.f32 %v874_v53, %v856_v33  ;;  %v6552_v4 = vld [vmem:[#allocation13_spill] sm:$0xff] }
 0x175   : > { %6545 = vst [vmem:[#allocation29_spill] sm:$0xff] %v4401_v50  ;;  %v2232_v61 = vadd.f32 %v4277_v8, %v2125_v23  ;;  %v1024_v27 = vmul.f32 %v3606_v25, %v6552_v4  ;;  %v3012_v45 = vpop.eup %3011  ;;  %v4439_v9 = vmul.f32 %v6454_v11, %v4433_v13  ;;  %v4444_v42 = vsel %vm924_vm4, %v2363_v34, %v4401_v50  ;;  %v6555_v23 = vld [vmem:[#allocation41_spill] sm:$0xff] }
 0x176   : > { %6547 = vst [vmem:[#allocation23_spill] sm:$0xff] %v4407_v62  ;;  %v1691_v49 = vadd.f32 %v1675_v60, %v1617_v16  ;;  %v4449_v8 = vsel %vm999_vm5, %v2437_v48, %v4407_v62  ;;  %v2570_v53 = vadd.f32 1.0, %v3012_v45  ;;  %v965_v25 = vadd.f32 %v949_v58, %v890_v59  ;;  %v6556_v16 = vld [vmem:[#allocation42_spill] sm:$0xff]  ;;  %v6557_v58 = vld [vmem:[#allocation19_spill] sm:$0xff]  ;;  %v6558_v59 = vld [vmem:[#allocation32_spill] sm:$0xff] }
 0x177   : > { %6549 = vst [vmem:[#allocation6_spill] sm:$0xff] %v4415_v19  ;;  %v2306_v36 = vadd.f32 %v4281_v37, %v2232_v61  ;;  %v1131_v60 = vmul.f32 %v6457_v31, %v6555_v23  ;;  %v4456_v54 = vmul.f32 %v3852_v39, %v4444_v42  ;;  %v4460_v34 = vmul.f32 %v3857_v44, %v4449_v8  ;;  %v1791_v31 = vld [vmem:[#allocation2 + $0xd8] sm:$0xff] }
 0x178   : > { %6551 = vst [vmem:[#allocation38_spill] sm:$0xff] %v4433_v13  ;;  %v1765_v33 = vadd.f32 %v1749_v6, %v1691_v49  ;;  %v1205_v48 = vmul.f32 %v3633_v12, %v6556_v16  ;;  %3013 = vrcp.f32 %v2570_v53  ;;  %v1040_v37 = vadd.f32 %v1024_v27, %v965_v25  ;;  %v6559_v53 = vld [vmem:[#allocation7_spill] sm:$0xff]  ;;  %v6561_v25 = vld [vmem:[#allocation33_spill] sm:$0xff]  ;;  %v6562_v16 = vld [vmem:[#allocation4_spill] sm:$0xff] }
 0x179   : > { %6553 = vst [vmem:[#allocation25_spill] sm:$0xff] %v4444_v42  ;;  %v2340_v4 = vadd.f32 %v4265_v28, %v2306_v36  ;;  %v1239_v61 = vmul.f32 %v3638_v14, %v6557_v58  ;;  %v1313_v45 = vmul.f32 %v3648_v22, %v6558_v59  ;;  %v1387_v49 = vmul.f32 %v3659_v30, %v4190_v51  ;;  %v6560_v14 = vld [vmem:[#allocation15_spill] sm:$0xff]  ;;  %v4511_v59 = vld [vmem:[#allocation2 + $0x88] sm:$0xff] }
 0x17a   : > { %6554 = vst [vmem:[#allocation10_spill] sm:$0xff] %v4449_v8  ;;  %v1872_v6 = vadd.f32 %v1856_v56, %v1765_v33  ;;  %v1820_v23 = vrot.slane %v4327_v7, 6  ;;  %v1147_v12 = vadd.f32 %v1131_v60, %v1040_v37  ;;  %v1494_v28 = vmul.f32 %v3668_v55, %v6559_v53  ;;  %v6563_v58 = vld [vmem:[#allocation3_spill] sm:$0xff] }
 0x17b   : > { %v2414_v8 = vadd.f32 %v4298_v17, %v2340_v4  ;;  %v1894_v27 = vrot.slane %v4327_v7, 7  ;;  %v1568_v56 = vmul.f32 %v3680_v29, %v6560_v14  ;;  %v1602_v22 = vmul.f32 %v3685_v38, %v6561_v25  ;;  %v6564_v4 = vld [vmem:[#allocation16_spill] sm:$0xff]  ;;  %6567 = vst [vmem:[#allocation11_spill] sm:$0xff] %v4511_v59 }
 0x17c   : > { %v1946_v36 = vadd.f32 %v1930_v3, %v1872_v6  ;;  %v2002_v33 = vrot.slane %v1791_v31, 1  ;;  %v1221_v51 = vadd.f32 %v1205_v48, %v1147_v12  ;;  %v4483_v17 = vmul.f32 %v3709_v63, %v6563_v58  ;;  %v6565_v48 = vld [vmem:[#allocation8_spill] sm:$0xff] }
 0x17d   : > { %v2488_v30 = vadd.f32 %v6562_v16, %v2414_v8  ;;  %v2076_v60 = vrot.slane %v1791_v31, 2  ;;  %v4488_v3 = vmul.f32 %v6473_v24, %v6564_v4  ;;  %v4493_v29 = vsel %vm740_vm2, %v4317_v5, %v1820_v23  ;;  %v6568_v23 = vld [vmem:[#allocation21_spill] sm:$0xff] }
 0x17e   : > { %v1980_v55 = vadd.f32 %v4352_v1, %v1946_v36  ;;  %v4497_v38 = vmul.f32 %v3762_v26, %v4327_v7  ;;  %v3014_v8 = vpop.eup %3013  ;;  %v1255_v37 = vadd.f32 %v1239_v61, %v1221_v51  ;;  %v6566_v1 = vld [vmem:[#allocation12_spill] sm:$0xff]  ;;  %v4509_v6 = vsel %vm815_vm3, %v4330_v46, %v1894_v27  ;;  %v6571_v5 = vld [vmem:[#allocation17_spill] sm:$0xff] }
 0x17f   : > { %v4500_v63 = vadd.f32 %v6565_v48, %v2488_v30  ;;  %v4504_v31 = vmul.f32 %v6566_v1, %v4493_v29  ;;  %v2602_v12 = vmul.f32 %v3014_v8, %v6568_v23  ;;  %v4517_v16 = vmul.f32 %v6480_v40, %v4509_v6  ;;  %v4524_v30 = vld [vmem:[#allocation2 + $0x90] sm:$0xff]  ;;  %v6570_v46 = vld [vmem:[#allocation24_spill] sm:$0xff] }
 0x180   : > { %v2054_v36 = vadd.f32 %v4384_v32, %v1980_v55  ;;  %v4522_v61 = vsel %vm924_vm4, %v4337_v21, %v2002_v33  ;;  %6569 = vst [vmem:[#allocation39_spill] sm:$0xff] %v4524_v30  ;;  %v1329_v51 = vadd.f32 %v1313_v45, %v1255_v37  ;;  %v4530_v8 = vsel %vm999_vm5, %v6570_v46, %v2076_v60  ;;  %v2154_v32 = vld [vmem:[#allocation2 + $0xf8] sm:$0xff] }
 0x181   : > { %v2524_v27 = vsub.f32 0.0, %v4500_v63  ;;  %v2183_v55 = vrot.slane %v4391_v10, 6  ;;  %2635 = vrot.lane.b32.xlu0 %v2602_v12, %s3175_s12  ;;  %v4536_v33 = vmul.f32 %v6571_v5, %v4522_v61  ;;  %v4540_v21 = vmul.f32 %v6488_v52, %v4530_v8 }
 0x182   : > { %v2128_v23 = vadd.f32 %v2112_v2, %v2054_v36  ;;  %v4543_v45 = vrot.slane %v4511_v59, 6  ;;  %v1403_v60 = vadd.f32 %v1387_v49, %v1329_v51  ;;  %v2257_v46 = vrot.slane %v4391_v10, 7 }
 0x183   : > { %v2543_v37 = vmul.f32 1.442695, %v2524_v27  ;;  %v728_v42 = vrot.slane %v4524_v30, 6  ;;  %v2365_v2 = vrot.slane %v2154_v32, 1  ;;  %v4549_v36 = vrot.slane %v4511_v59, 7 }
 0x184   : > { %6572 = vst [vmem:[#allocation13_spill] sm:$0xff] %v4543_v45  ;;  %v2235_v12 = vadd.f32 %v4423_v0, %v2128_v23  ;;  %v805_v15 = vrot.slane %v4524_v30, 7  ;;  %v1510_v13 = vadd.f32 %v1494_v28, %v1403_v60  ;;  %v4558_v49 = vrot.slane %v4524_v30, 1  ;;  %v4564_v0 = vld [vmem:[%s6134_s3] ss:$0 sm:$0xff] }
 0x185   : > { %6573 = vst [vmem:[#allocation41_spill] sm:$0xff] %v4549_v36  ;;  %3015 = vpow2.f32 %v2543_v37  ;;  %v4555_v19 = vsel %vm740_vm2, %v4543_v45, %v728_v42  ;;  %v4574_v42 = vrot.slane %v4524_v30, 2  ;;  %v4586_v60 = vld [vmem:[%s6134_s3 + $0x2] ss:$0 sm:$0xff]  ;;  %v2439_v35 = vrot.slane %v2154_v32, 2 }
 0x186   : > { %6574 = vst [vmem:[#allocation42_spill] sm:$0xff] %v4555_v19  ;;  %v2309_v27 = vadd.f32 %v4439_v9, %v2235_v12  ;;  %v767_v51 = vmul.f32 %v4564_v0, %v4555_v19  ;;  %v4571_v28 = vsel %vm815_vm3, %v4549_v36, %v805_v15  ;;  %v1584_v23 = vadd.f32 %v1568_v56, %v1510_v13  ;;  %v4579_v9 = vld [vmem:[%s6134_s3 + $0x1] ss:$0 sm:$0xff]  ;;  %v6581_v12 = vld [vmem:[#allocation40_spill] sm:$0xff] }
 0x187   : > { %6575 = vst [vmem:[#allocation19_spill] sm:$0xff] %v4558_v49  ;;  %v842_v37 = vmul.f32 %v4579_v9, %v4571_v28  ;;  %v876_v15 = vmul.f32 %v4586_v60, %v4524_v30  ;;  %v6582_v19 = vrot.slane %v6581_v12, 1  ;;  %v6583_v59 = vrot.slane %v6581_v12, 2 }
 0x188   : > { %6576 = vst [vmem:[#allocation32_spill] sm:$0xff] %v4564_v0  ;;  %v2343_v56 = vadd.f32 %v4427_v41, %v2309_v27  ;;  %v1618_v30 = vadd.f32 %v1602_v22, %v1584_v23  ;;  %v2278_v45 = vsel %vm815_vm3, %v4394_v43, %v2257_v46  ;;  %v4622_v22 = vmul.f32 %v6493_v18, %v4391_v10 }
 0x189   : > { %6577 = vst [vmem:[#allocation7_spill] sm:$0xff] %v4571_v28  ;;  %v931_v13 = vsel %vm924_vm4, %v4558_v49, %v6582_v19  ;;  %v2204_v28 = vsel %vm740_vm2, %v4378_v57, %v2183_v55  ;;  %v1006_v36 = vsel %vm999_vm5, %v4574_v42, %v6583_v59  ;;  %v4610_v19 = vld [vmem:[%s6134_s3 + $0x3] ss:$0 sm:$0xff]  ;;  %v4618_v59 = vmul.f32 %v6454_v11, %v2278_v45 }
 0x18a   : > { %6578 = vst [vmem:[#allocation15_spill] sm:$0xff] %v4574_v42  ;;  %v951_v41 = vmul.f32 %v4610_v19, %v931_v13  ;;  %v2417_v32 = vadd.f32 %v4456_v54, %v2343_v56  ;;  %v4615_v55 = vmul.f32 %v6513_v20, %v2204_v28  ;;  %v1692_v27 = vadd.f32 %v4483_v17, %v1618_v30  ;;  %v4631_v20 = vld [vmem:[%s6134_s3 + $0x4] ss:$0 sm:$0xff]  ;;  %v4673_v13 = vld [vmem:[%s6134_s3 + $0x8] ss:$0 sm:$0xff] }
 0x18b   : > { %6579 = vst [vmem:[#allocation33_spill] sm:$0xff] %v4579_v9  ;;  %v858_v9 = vadd.f32 %v842_v37, %v767_v51  ;;  %v3016_v46 = vpop.eup %3015  ;;  %v2386_v51 = vsel %vm924_vm4, %v4401_v50, %v2365_v2  ;;  %v1026_v11 = vmul.f32 %v4631_v20, %v1006_v36  ;;  %v2460_v17 = vsel %vm999_vm5, %v4407_v62, %v2439_v35  ;;  %v4648_v36 = vld [vmem:[%s6134_s3 + $0x5] ss:$0 sm:$0xff]  ;;  %v4658_v35 = vld [vmem:[%s6134_s3 + $0x6] ss:$0 sm:$0xff] }
 0x18c   : > { %6580 = vst [vmem:[#allocation4_spill] sm:$0xff] %v4586_v60  ;;  %v2572_v54 = vadd.f32 1.0, %v3016_v46  ;;  %v2491_v37 = vadd.f32 %v4460_v34, %v2417_v32  ;;  %v4636_v18 = vmul.f32 %v3852_v39, %v2386_v51  ;;  %v1766_v30 = vadd.f32 %v4488_v3, %v1692_v27  ;;  %v4665_v3 = vld [vmem:[%s6134_s3 + $0x7] ss:$0 sm:$0xff] }
 0x18d   : > { %6584 = vst [vmem:[#allocation3_spill] sm:$0xff] %v4610_v19  ;;  %v892_v23 = vadd.f32 %v876_v15, %v858_v9  ;;  %v4643_v2 = vmul.f32 %v3857_v44, %v2460_v17  ;;  %v1133_v34 = vmul.f32 %v4648_v36, %v6559_v53  ;;  %v1207_v44 = vmul.f32 %v4658_v35, %v6560_v14  ;;  %v4680_v14 = vld [vmem:[%s6134_s3 + $0x9] ss:$0 sm:$0xff] }
 0x18e   : > { %3017 = vrcp.f32 %v2572_v54  ;;  %v4653_v39 = vadd.f32 %v6565_v48, %v2491_v37  ;;  %v1241_v53 = vmul.f32 %v4665_v3, %v6561_v25  ;;  %v1873_v15 = vadd.f32 %v4504_v31, %v1766_v30  ;;  %v4688_v31 = vld [vmem:[%s6134_s3 + $0xa] ss:$0 sm:$0xff] }
 0x18f   : > { %v967_v9 = vadd.f32 %v951_v41, %v892_v23  ;;  %v1315_v56 = vmul.f32 %v4673_v13, %v6563_v58  ;;  %v1389_v41 = vmul.f32 %v4680_v14, %v6564_v4  ;;  %v1496_v32 = vmul.f32 %v4688_v31, %v4493_v29  ;;  %v4695_v58 = vld [vmem:[%s6134_s3 + $0xb] ss:$0 sm:$0xff]  ;;  %v4704_v4 = vld [vmem:[%s6134_s3 + $0xc] ss:$0 sm:$0xff] }
 0x190   : > { %v2527_v25 = vsub.f32 0.0, %v4653_v39  ;;  %v4699_v46 = vmul.f32 %v4695_v58, %v4509_v6  ;;  %v4708_v27 = vmul.f32 %v4704_v4, %v4327_v7  ;;  %v1947_v29 = vadd.f32 %v4517_v16, %v1873_v15  ;;  %v4724_v37 = vld [vmem:[#allocation2 + $0x108] sm:$0xff] }
 0x191   : > { %v1042_v12 = vadd.f32 %v1026_v11, %v967_v9  ;;  %v4714_v11 = vld [vmem:[%s6134_s3 + $0xd] ss:$0 sm:$0xff]  ;;  %v4722_v54 = vmul.f32 %v6473_v24, %v4530_v8  ;;  %v4727_v30 = vmul.f32 %v6566_v1, %v2204_v28  ;;  %v4730_v16 = vmul.f32 %v6480_v40, %v2278_v45 }
 0x192   : > { %v4718_v6 = vmul.f32 %v4714_v11, %v4522_v61  ;;  %v2549_v7 = vmul.f32 1.442695, %v2527_v25  ;;  %v4734_v9 = vmul.f32 %v3762_v26, %v4391_v10  ;;  %v1981_v61 = vadd.f32 %v4497_v38, %v1947_v29  ;;  %v4743_v1 = vld [vmem:[#allocation2 + $0x48] sm:$0xff] }
 0x193   : > { %v1149_v23 = vadd.f32 %v1133_v34, %v1042_v12  ;;  %v4736_v34 = vld [vmem:[#allocation2 + $0x110] sm:$0xff]  ;;  %v4740_v24 = vmul.f32 %v6571_v5, %v2386_v51  ;;  %v689_v12 = vld [vmem:[#allocation2 + $0x40] sm:$0xff]  ;;  %6586 = vst [vmem:[#allocation8_spill] sm:$0xff] %v4743_v1  ;;  %v4746_v40 = vmul.f32 %v6488_v52, %v2460_v17  ;;  %v4749_v26 = vrot.slane %v4724_v37, 6 }
 0x194   : > { %6585 = vst [vmem:[#allocation16_spill] sm:$0xff] %v4736_v34  ;;  %v2186_v8 = vrot.slane %v4736_v34, 6  ;;  %v3018_v28 = vpop.eup %3017  ;;  %3019 = vpow2.f32 %v2549_v7  ;;  %v4752_v10 = vrot.slane %v4724_v37, 7  ;;  %v2055_v5 = vadd.f32 %v4536_v33, %v1981_v61 }
 0x195   : > { %v1223_v15 = vadd.f32 %v1207_v44, %v1149_v23  ;;  %6587 = vst [vmem:[#allocation12_spill] sm:$0xff] %v4749_v26  ;;  %v2604_v38 = vmul.f32 %v3018_v28, %v4500_v63  ;;  %v2260_v51 = vrot.slane %v4736_v34, 7  ;;  %v4757_v44 = vld [vmem:[#allocation2 + $0x50] sm:$0xff]  ;;  %v4760_v25 = vrot.slane %v4736_v34, 1 }
 0x196   : > { %6588 = vst [vmem:[#allocation21_spill] sm:$0xff] %v4752_v10  ;;  %v720_v52 = vrot.slane %v689_v12, 6  ;;  %v6275_v17 = vrot.slane %v4743_v1, 6  ;;  %v797_v29 = vrot.slane %v689_v12, 7  ;;  %v2129_v23 = vadd.f32 %v4540_v21, %v2055_v5  ;;  %v4785_v5 = vld [vmem:[#allocation2 + $0x68] sm:$0xff] }
 0x197   : > { %v1257_v45 = vadd.f32 %v1241_v53, %v1223_v15  ;;  %6589 = vst [vmem:[#allocation17_spill] sm:$0xff] %v4757_v44  ;;  %2639 = vrot.lane.b32.xlu1 %v2604_v38, %s3175_s12  ;;  %v4768_v63 = vsel %vm740_vm2, %v4749_v26, %v2186_v8  ;;  %v6278_v33 = vrot.slane %v4743_v1, 7  ;;  %v871_v61 = vmul.f32 %v4586_v60, %v4743_v1  ;;  %v1058_v38 = vld [vmem:[#allocation2 + $0x60] sm:$0xff] }
 0x198   : > { %6590 = vst [vmem:[#allocation40_spill] sm:$0xff] %v4760_v25  ;;  %v752_v53 = vsel %vm740_vm2, %v720_v52, %v6275_v17  ;;  %v906_v15 = vrot.slane %v4743_v1, 1  ;;  %v6283_v21 = vrot.slane %v4757_v44, 1  ;;  %v6593_v52 = vld [vmem:[#allocation33_spill] sm:$0xff]  ;;  %v1089_v50 = vrot.slane %v1058_v38, 6 }
 0x199   : > { %v1331_v7 = vadd.f32 %v1315_v56, %v1257_v45  ;;  %6591 = vst [vmem:[#allocation43_spill] sm:$0xff] %v4768_v63  ;;  %v2236_v56 = vadd.f32 %v4615_v55, %v2129_v23  ;;  %v762_v8 = vmul.f32 %v4564_v0, %v752_v53  ;;  %v827_v28 = vsel %vm815_vm3, %v797_v29, %v6278_v33 }
 0x19a   : > { %6592 = vst [vmem:[#allocation44_spill] sm:$0xff] %v4785_v5  ;;  %v3020_v45 = vpop.eup %3019  ;;  %v837_v17 = vmul.f32 %v6593_v52, %v827_v28  ;;  %v936_v62 = vsel %vm924_vm4, %v906_v15, %v6283_v21  ;;  %v981_v55 = vrot.slane %v4743_v1, 2  ;;  %v6287_v43 = vrot.slane %v4785_v5, 6  ;;  %v6614_v1 = vld [vmem:[#allocation26_spill] sm:$0xff] }
 0x19b   : > { %v1405_v12 = vadd.f32 %v1389_v41, %v1331_v7  ;;  %v6288_v41 = vrot.slane %v4757_v44, 2  ;;  %v2575_v23 = vadd.f32 1.0, %v3020_v45  ;;  %v2310_v7 = vadd.f32 %v4618_v59, %v2236_v56  ;;  %v4804_v59 = vld [vmem:[#allocation2 + $0x70] sm:$0xff] }
 0x19c   : > { %v946_v29 = vmul.f32 %v4610_v19, %v936_v62  ;;  %v853_v33 = vadd.f32 %v837_v17, %v762_v8  ;;  %6594 = vst [vmem:[#allocation33_spill] sm:$0xff] %v4804_v59  ;;  %v1118_v17 = vsel %vm740_vm2, %v1089_v50, %v6287_v43  ;;  %v1163_v56 = vrot.slane %v1058_v38, 7  ;;  %v6598_v43 = vld [vmem:[#allocation41_spill] sm:$0xff] }
 0x19d   : > { %v1512_v53 = vadd.f32 %v1496_v32, %v1405_v12  ;;  %v1011_v28 = vsel %vm999_vm5, %v981_v55, %v6288_v41  ;;  %3021 = vrcp.f32 %v2575_v23  ;;  %v2344_v15 = vadd.f32 %v4622_v22, %v2310_v7  ;;  %v4806_v32 = vld [vmem:[#allocation2 + $0x118] sm:$0xff] }
 0x19e   : > { %v1021_v45 = vmul.f32 %v4631_v20, %v1011_v28  ;;  %v887_v62 = vadd.f32 %v871_v61, %v853_v33  ;;  %v6286_v12 = vrot.slane %v4785_v5, 7  ;;  %v1128_v55 = vmul.f32 %v4648_v36, %v1118_v17 }
 0x19f   : > { %v1586_v21 = vadd.f32 %v4699_v46, %v1512_v53  ;;  %v2418_v8 = vadd.f32 %v4636_v18, %v2344_v15  ;;  %v4818_v46 = vsel %vm815_vm3, %v4752_v10, %v2260_v51  ;;  %v1271_v61 = vrot.slane %v4785_v5, 1  ;;  %v1421_v18 = vld [vmem:[#allocation2 + $0x80] sm:$0xff] }
 0x1a0   : > { %6595 = vst [vmem:[#allocation45_spill] sm:$0xff] %v4818_v46  ;;  %v962_v33 = vadd.f32 %v946_v29, %v887_v62  ;;  %v1192_v50 = vsel %vm815_vm3, %v1163_v56, %v6286_v12  ;;  %v6285_v38 = vrot.slane %v4804_v59, 1  ;;  %v2368_v51 = vrot.slane %v4806_v32, 1 }
 0x1a1   : > { %v1620_v22 = vadd.f32 %v4708_v27, %v1586_v21  ;;  %v2492_v27 = vadd.f32 %v4643_v2, %v2418_v8  ;;  %v1345_v23 = vrot.slane %v4785_v5, 2  ;;  %v1202_v53 = vmul.f32 %v4658_v35, %v1192_v50 }
 0x1a2   : > { %v1037_v7 = vadd.f32 %v1021_v45, %v962_v33  ;;  %v1236_v29 = vmul.f32 %v4665_v3, %v4785_v5  ;;  %v6284_v28 = vrot.slane %v4804_v59, 2  ;;  %v1452_v17 = vrot.slane %v1421_v18, 6 }
 0x1a3   : > { %v1694_v21 = vadd.f32 %v4718_v6, %v1620_v22  ;;  %v3022_v15 = vpop.eup %3021  ;;  %v4836_v62 = vadd.f32 %v6565_v48, %v2492_v27  ;;  %v1300_v6 = vsel %vm924_vm4, %v1271_v61, %v6285_v38  ;;  %v1526_v22 = vrot.slane %v1421_v18, 7  ;;  %v1784_v61 = vld [vmem:[#allocation2 + $0xa0] sm:$0xff]  ;;  %v4864_v18 = vld [vmem:[#allocation2 + $0xa8] sm:$0xff] }
 0x1a4   : > { %v2607_v45 = vmul.f32 %v3022_v15, %v4653_v39  ;;  %v1144_v56 = vadd.f32 %v1128_v55, %v1037_v7  ;;  %v1374_v8 = vsel %vm999_vm5, %v1345_v23, %v6284_v28  ;;  %v4860_v39 = vld [vmem:[%s6134_s3 + $0x16] ss:$0 sm:$0xff]  ;;  %6596 = vst [vmem:[#allocation46_spill] sm:$0xff] %v4864_v18  ;;  %v1310_v7 = vmul.f32 %v4673_v13, %v1300_v6 }
 0x1a5   : > { %v1768_v2 = vadd.f32 %v4722_v54, %v1694_v21  ;;  %v2528_v48 = vsub.f32 0.0, %v4836_v62  ;;  %v4853_v54 = vld [vmem:[%s6134_s3 + $0x14] ss:$0 sm:$0xff]  ;;  %v2330_v55 = vmul.f32 %v4860_v39, %v4736_v34  ;;  %v2384_v21 = vsel %vm924_vm4, %v4760_v25, %v2368_v51 }
 0x1a6   : > { %v2222_v50 = vmul.f32 %v4853_v54, %v4768_v63  ;;  %2645 = vrot.lane.b32.xlu0 %v2607_v45, %s3175_s12  ;;  %v1218_v23 = vadd.f32 %v1202_v53, %v1144_v56  ;;  %v1384_v45 = vmul.f32 %v4680_v14, %v1374_v8  ;;  %v6597_v28 = vld [vmem:[#allocation13_spill] sm:$0xff]  ;;  %v1555_v41 = vsel %vm815_vm3, %v1526_v22, %v6598_v43 }
 0x1a7   : > { %v1875_v33 = vadd.f32 %v4727_v30, %v1768_v2  ;;  %v4870_v30 = vld [vmem:[%s6134_s3 + $0x15] ss:$0 sm:$0xff]  ;;  %v2551_v15 = vmul.f32 1.442695, %v2528_v48  ;;  %v1481_v38 = vsel %vm740_vm2, %v1452_v17, %v6597_v28  ;;  %v1815_v57 = vrot.slane %v1784_v61, 6 }
 0x1a8   : > { %v2296_v27 = vmul.f32 %v4870_v30, %v4818_v46  ;;  %v1252_v12 = vadd.f32 %v1236_v29, %v1218_v23  ;;  %v6291_v51 = vrot.slane %v4864_v18, 6  ;;  %v2442_v6 = vrot.slane %v4806_v32, 2  ;;  %v4890_v8 = vld [vmem:[#allocation2 + $0xb0] sm:$0xff]  ;;  %v6610_v46 = vld [vmem:[#allocation27_spill] sm:$0xff] }
 0x1a9   : > { %v1949_v2 = vadd.f32 %v4730_v16, %v1875_v33  ;;  %3023 = vpow2.f32 %v2551_v15  ;;  %v6599_v16 = vld [vmem:[#allocation11_spill] sm:$0xff]  ;;  %v4893_v48 = vrot.slane %v4736_v34, 2  ;;  %v1491_v17 = vmul.f32 %v4688_v31, %v1481_v38 }
 0x1aa   : > { %v1634_v56 = vrot.slane %v6599_v16, 1  ;;  %6600 = vst [vmem:[#allocation11_spill] sm:$0xff] %v4890_v8  ;;  %v1326_v29 = vadd.f32 %v1310_v7, %v1252_v12  ;;  %v1889_v33 = vrot.slane %v1784_v61, 7  ;;  %v1565_v23 = vmul.f32 %v4695_v58, %v1555_v41 }
 0x1ab   : > { %v1983_v53 = vadd.f32 %v4734_v9, %v1949_v2  ;;  %6601 = vst [vmem:[#allocation47_spill] sm:$0xff] %v4893_v48  ;;  %v1708_v15 = vrot.slane %v6599_v16, 2  ;;  %v6294_v9 = vrot.slane %v4864_v18, 7  ;;  %v1844_v2 = vsel %vm740_vm2, %v1815_v57, %v6291_v51 }
 0x1ac   : > { %v1400_v32 = vadd.f32 %v1384_v45, %v1326_v29  ;;  %v1997_v43 = vrot.slane %v4864_v18, 1  ;;  %v6293_v12 = vrot.slane %v4890_v8, 1  ;;  %v1663_v41 = vsel %vm924_vm4, %v1634_v56, %v4558_v49 }
 0x1ad   : > { %v2057_v22 = vadd.f32 %v4740_v24, %v1983_v53  ;;  %v2458_v24 = vsel %vm999_vm5, %v4893_v48, %v2442_v6  ;;  %v1918_v61 = vsel %vm815_vm3, %v1889_v33, %v6294_v9  ;;  %v1599_v7 = vmul.f32 %v4704_v4, %v6599_v16 }
 0x1ae   : > { %v1507_v57 = vadd.f32 %v1491_v17, %v1400_v32  ;;  %v2071_v45 = vrot.slane %v4864_v18, 2  ;;  %v1737_v6 = vsel %vm999_vm5, %v1708_v15, %v4574_v42  ;;  %v768_v56 = vmul.f32 %v4564_v0, %v1844_v2 }
 0x1af   : > { %v2131_v38 = vadd.f32 %v4746_v40, %v2057_v22  ;;  %v6292_v40 = vrot.slane %v4890_v8, 2  ;;  %v3024_v53 = vpop.eup %3023  ;;  %v843_v22 = vmul.f32 %v6593_v52, %v1918_v61  ;;  %v1673_v17 = vmul.f32 %v4714_v11, %v1663_v41  ;;  %v4942_v41 = vld [vmem:[%s6134_s3 + $0xe] ss:$0 sm:$0xff] }
 0x1b0   : > { %v2576_v51 = vadd.f32 1.0, %v3024_v53  ;;  %v1581_v33 = vadd.f32 %v1565_v23, %v1507_v57  ;;  %v2026_v16 = vsel %vm924_vm4, %v1997_v43, %v6293_v12  ;;  %v1747_v43 = vmul.f32 %v4942_v41, %v1737_v6  ;;  %v4959_v6 = vld [vmem:[%s6134_s3 + $0xf] ss:$0 sm:$0xff]  ;;  %v6608_v12 = vld [vmem:[#allocation14_spill] sm:$0xff] }
 0x1b1   : > { %v2238_v29 = vadd.f32 %v2222_v50, %v2131_v38  ;;  %v4934_v50 = vld [vmem:[%s6134_s3 + $0x17] ss:$0 sm:$0xff]  ;;  %v877_v38 = vmul.f32 %v4586_v60, %v4864_v18  ;;  %v952_v53 = vmul.f32 %v4610_v19, %v2026_v16  ;;  %6602 = vst [vmem:[#allocation48_spill] sm:$0xff] %v4959_v6  ;;  %v2291_v9 = vmul.f32 %v4870_v30, %v6608_v12 }
 0x1b2   : > { %v2404_v15 = vmul.f32 %v4934_v50, %v2384_v21  ;;  %3025 = vrcp.f32 %v2576_v51  ;;  %v1615_v23 = vadd.f32 %v1599_v7, %v1581_v33  ;;  %v4952_v21 = vld [vmem:[%s6134_s3 + $0x18] ss:$0 sm:$0xff]  ;;  %v859_v7 = vadd.f32 %v843_v22, %v768_v56  ;;  %v4972_v22 = vld [vmem:[%s6134_s3 + $0x11] ss:$0 sm:$0xff] }
 0x1b3   : > { %v2312_v32 = vadd.f32 %v2296_v27, %v2238_v29  ;;  %v2100_v27 = vsel %vm999_vm5, %v2071_v45, %v6292_v40  ;;  %v2478_v51 = vmul.f32 %v4952_v21, %v2458_v24  ;;  %v1854_v33 = vmul.f32 %v4959_v6, %v1844_v2  ;;  %v4966_v24 = vld [vmem:[%s6134_s3 + $0x10] ss:$0 sm:$0xff]  ;;  %6604 = vst [vmem:[#allocation50_spill] sm:$0xff] %v4972_v22 }
 0x1b4   : > { %v1689_v29 = vadd.f32 %v1673_v17, %v1615_v23  ;;  %6603 = vst [vmem:[#allocation49_spill] sm:$0xff] %v4966_v24  ;;  %v1928_v56 = vmul.f32 %v4966_v24, %v1918_v61  ;;  %v1962_v2 = vmul.f32 %v4972_v22, %v4864_v18  ;;  %v2006_v8 = vrot.slane %v4724_v37, 1 }
 0x1b5   : > { %v2346_v57 = vadd.f32 %v2330_v55, %v2312_v32  ;;  %v893_v55 = vadd.f32 %v877_v38, %v859_v7  ;;  %v1027_v32 = vmul.f32 %v4631_v20, %v2100_v27 }
 0x1b6   : > { %v1763_v40 = vadd.f32 %v1747_v43, %v1689_v29  ;;  %v6606_v43 = vld [vmem:[#allocation22_spill] sm:$0xff]  ;;  %v4987_v29 = vld [vmem:[%s6134_s3 + $0x13] ss:$0 sm:$0xff] }
 0x1b7   : > { %v2420_v45 = vadd.f32 %v2404_v15, %v2346_v57  ;;  %v4979_v15 = vld [vmem:[%s6134_s3 + $0x12] ss:$0 sm:$0xff]  ;;  %v968_v23 = vadd.f32 %v952_v53, %v893_v55  ;;  %v1134_v61 = vmul.f32 %v4648_v36, %v6606_v43  ;;  %6607 = vst [vmem:[#allocation22_spill] sm:$0xff] %v4987_v29  ;;  %v4998_v53 = vld [vmem:[%s6135_s4] ss:$0 sm:$0xff] }
 0x1b8   : > { %6605 = vst [vmem:[#allocation51_spill] sm:$0xff] %v4979_v15  ;;  %v2036_v38 = vmul.f32 %v4979_v15, %v2026_v16  ;;  %v3026_v57 = vpop.eup %3025  ;;  %v1870_v7 = vadd.f32 %v1854_v33, %v1763_v40  ;;  %v1796_v55 = vld [vmem:[#allocation2 + $0x100] sm:$0xff] }
 0x1b9   : > { %v2494_v17 = vadd.f32 %v2478_v51, %v2420_v45  ;;  %v2110_v51 = vmul.f32 %v4987_v29, %v2100_v27  ;;  %v2217_v45 = vmul.f32 %v4853_v54, %v6606_v43  ;;  %v2608_v16 = vmul.f32 %v3026_v57, %v4836_v62  ;;  %v6609_v43 = vld [vmem:[#allocation9_spill] sm:$0xff]  ;;  %v6611_v57 = vld [vmem:[#allocation34_spill] sm:$0xff] }
 0x1ba   : > { %v1043_v33 = vadd.f32 %v1027_v32, %v968_v23  ;;  %v1208_v27 = vmul.f32 %v4658_v35, %v6608_v12  ;;  %v1944_v28 = vadd.f32 %v1928_v56, %v1870_v7  ;;  %v2325_v34 = vmul.f32 %v4860_v39, %v6609_v43 }
 0x1bb   : > { %v5001_v40 = vadd.f32 %v4998_v53, %v2494_v17  ;;  %v5009_v62 = vmul.f32 %v4934_v50, %v6610_v46  ;;  %v5013_v63 = vmul.f32 %v4952_v21, %v6611_v57  ;;  %2647 = vrot.lane.b32.xlu1 %v2608_v16, %s3175_s12  ;;  %v1242_v12 = vmul.f32 %v4665_v3, %v6609_v43  ;;  %v6612_v16 = vld [vmem:[#allocation6_spill] sm:$0xff] }
 0x1bc   : > { %v1150_v17 = vadd.f32 %v1134_v61, %v1043_v33  ;;  %v1316_v56 = vmul.f32 %v4673_v13, %v6610_v46  ;;  %v1978_v23 = vadd.f32 %v1962_v2, %v1944_v28  ;;  %v1824_v7 = vrot.slane %v1796_v55, 6  ;;  %v6613_v33 = vld [vmem:[#allocation38_spill] sm:$0xff]  ;;  %v6615_v28 = vld [vmem:[#allocation25_spill] sm:$0xff] }
 0x1bd   : > { %v2530_v32 = vsub.f32 0.0, %v5001_v40  ;;  %v1898_v18 = vrot.slane %v1796_v55, 7  ;;  %v1390_v5 = vmul.f32 %v4680_v14, %v6611_v57  ;;  %v1497_v59 = vmul.f32 %v4688_v31, %v6612_v16  ;;  %v5059_v16 = vld [vmem:[#allocation2 + $0x128] sm:$0xff] }
 0x1be   : > { %v1224_v49 = vadd.f32 %v1208_v27, %v1150_v17  ;;  %v2052_v61 = vadd.f32 %v2036_v38, %v1978_v23  ;;  %v1571_v43 = vmul.f32 %v4695_v58, %v6613_v33  ;;  %v1605_v46 = vmul.f32 %v4704_v4, %v6614_v1  ;;  %v5038_v17 = vld [vmem:[#allocation2 + $0xc0] sm:$0xff]  ;;  %v5040_v38 = vld [vmem:[#allocation2 + $0xc8] sm:$0xff] }
 0x1bf   : > { %v2555_v42 = vmul.f32 1.442695, %v2530_v32  ;;  %v1679_v2 = vmul.f32 %v4714_v11, %v6615_v28  ;;  %v6616_v32 = vld [vmem:[#allocation10_spill] sm:$0xff]  ;;  %v5036_v57 = vmul.f32 %v4972_v22, %v4724_v37  ;;  %6617 = vst [vmem:[#allocation14_spill] sm:$0xff] %v5038_v17  ;;  %v5045_v1 = vsel %vm740_vm2, %v1824_v7, %v4749_v26  ;;  %v5078_v26 = vld [vmem:[#allocation2 + $0xd0] sm:$0xff] }
 0x1c0   : > { %v1258_v55 = vadd.f32 %v1242_v12, %v1224_v49  ;;  %v1753_v27 = vmul.f32 %v4942_v41, %v6616_v32  ;;  %v2126_v23 = vadd.f32 %v2110_v51, %v2052_v61  ;;  %v5050_v49 = vsel %vm815_vm3, %v1898_v18, %v4752_v10  ;;  %v5057_v12 = vld [vmem:[#allocation2 + $0x120] sm:$0xff] }
 0x1c1   : > { %3027 = vpow2.f32 %v2555_v42  ;;  %v5055_v42 = vsel %vm924_vm4, %v2006_v8, %v4760_v25  ;;  %v1860_v61 = vmul.f32 %v4959_v6, %v5045_v1  ;;  %v5065_v7 = vmul.f32 %v4966_v24, %v5050_v49 }
 0x1c2   : > { %v1332_v51 = vadd.f32 %v1316_v56, %v1258_v55  ;;  %v5069_v18 = vmul.f32 %v4979_v15, %v5055_v42  ;;  %v2233_v33 = vadd.f32 %v2217_v45, %v2126_v23  ;;  %v2080_v8 = vrot.slane %v4724_v37, 2 }
 0x1c3   : > { %v6328_v28 = vrot.slane %v5038_v17, 6  ;;  %v6329_v32 = vrot.slane %v5040_v38, 6  ;;  %v2187_v56 = vrot.slane %v5057_v12, 6  ;;  %v5076_v55 = vrot.slane %v5059_v16, 6 }
 0x1c4   : > { %v1406_v10 = vadd.f32 %v1390_v5, %v1332_v51  ;;  %v2307_v44 = vadd.f32 %v2291_v9, %v2233_v33  ;;  %v6334_v5 = vrot.slane %v5040_v38, 7  ;;  %v879_v24 = vmul.f32 %v4586_v60, %v5040_v38  ;;  %v5093_v33 = vld [vmem:[#allocation2 + $0xe0] sm:$0xff]  ;;  %v1075_v60 = vld [vmem:[#allocation2 + $0xe8] sm:$0xff] }
 0x1c5   : > { %6618 = vst [vmem:[#allocation9_spill] sm:$0xff] %v5076_v55  ;;  %v744_v45 = vsel %vm740_vm2, %v6328_v28, %v6329_v32  ;;  %v918_v9 = vrot.slane %v5040_v38, 1  ;;  %v6620_v6 = vrot.slane %v5038_v17, 7  ;;  %v993_v32 = vrot.slane %v5040_v38, 2  ;;  %v5163_v17 = vld [vmem:[#allocation2 + $0x130] sm:$0xff] }
 0x1c6   : > { %v1513_v51 = vadd.f32 %v1497_v59, %v1406_v10  ;;  %v770_v22 = vmul.f32 %v4564_v0, %v744_v45  ;;  %6619 = vst [vmem:[#allocation27_spill] sm:$0xff] %v5093_v33  ;;  %v2341_v25 = vadd.f32 %v2325_v34, %v2307_v44  ;;  %v6335_v10 = vrot.slane %v5078_v26, 1 }
 0x1c7   : > { %v3028_v23 = vpop.eup %3027  ;;  %v819_v28 = vsel %vm815_vm3, %v6620_v6, %v6334_v5  ;;  %v6338_v0 = vrot.slane %v5078_v26, 2  ;;  %v6336_v6 = vrot.slane %v5093_v33, 6  ;;  %6626 = vst [vmem:[#allocation10_spill] sm:$0xff] %v5163_v17 }
 0x1c8   : > { %v2578_v15 = vadd.f32 1.0, %v3028_v23  ;;  %v1587_v59 = vadd.f32 %v1571_v43, %v1513_v51  ;;  %v845_v45 = vmul.f32 %v6593_v52, %v819_v28  ;;  %v2415_v34 = vadd.f32 %v5009_v62, %v2341_v25 }
 0x1c9   : > { %v928_v44 = vsel %vm924_vm4, %v918_v9, %v6335_v10  ;;  %v1003_v28 = vsel %vm999_vm5, %v993_v32, %v6338_v0  ;;  %v5118_v25 = vrot.slane %v5059_v16, 7  ;;  %v5120_v62 = vrot.slane %v1075_v60, 6 }
 0x1ca   : > { %3029 = vrcp.f32 %v2578_v15  ;;  %v1621_v23 = vadd.f32 %v1605_v46, %v1587_v59  ;;  %v861_v5 = vadd.f32 %v845_v45, %v770_v22  ;;  %v954_v43 = vmul.f32 %v4610_v19, %v928_v44 }
 0x1cb   : > { %v2489_v15 = vadd.f32 %v5013_v63, %v2415_v34  ;;  %6621 = vst [vmem:[#allocation34_spill] sm:$0xff] %v5118_v25  ;;  %v6337_v51 = vrot.slane %v5093_v33, 7  ;;  %v1029_v22 = vmul.f32 %v4631_v20, %v1003_v28  ;;  %v5124_v46 = vrot.slane %v1075_v60, 7 }
 0x1cc   : > { %6622 = vst [vmem:[#allocation6_spill] sm:$0xff] %v5120_v62  ;;  %v1695_v9 = vadd.f32 %v1679_v2, %v1621_v23  ;;  %v895_v10 = vadd.f32 %v879_v24, %v861_v5  ;;  %v2094_v63 = vsel %vm999_vm5, %v2080_v8, %v4893_v48  ;;  %v1110_v32 = vsel %vm740_vm2, %v6336_v6, %v5120_v62  ;;  %v5137_v5 = vld [vmem:[#allocation2 + $0xf0] sm:$0xff] }
 0x1cd   : > { %6623 = vst [vmem:[#allocation38_spill] sm:$0xff] %v5124_v46  ;;  %v5127_v59 = vadd.f32 %v4998_v53, %v2489_v15  ;;  %v1283_v45 = vrot.slane %v1075_v60, 1  ;;  %v1136_v34 = vmul.f32 %v4648_v36, %v1110_v32  ;;  %v1184_v44 = vsel %vm815_vm3, %v6337_v51, %v5124_v46 }
 0x1ce   : > { %v1769_v2 = vadd.f32 %v1753_v27, %v1695_v9  ;;  %v970_v24 = vadd.f32 %v954_v43, %v895_v10  ;;  %v2201_v28 = vsel %vm740_vm2, %v2187_v56, %v5076_v55  ;;  %v5150_v27 = vrot.slane %v5137_v5, 1  ;;  %v6633_v55 = vld [vmem:[#allocation51_spill] sm:$0xff] }
 0x1cf   : > { %v2525_v23 = vsub.f32 0.0, %v5127_v59  ;;  %v1357_v10 = vrot.slane %v1075_v60, 2  ;;  %v1210_v32 = vmul.f32 %v4658_v35, %v1184_v44  ;;  %v2369_v51 = vrot.slane %v5059_v16, 1 }
 0x1d0   : > { %v3030_v8 = vpop.eup %3029  ;;  %6624 = vst [vmem:[#allocation26_spill] sm:$0xff] %v5150_v27  ;;  %v1876_v15 = vadd.f32 %v1860_v61, %v1769_v2  ;;  %v1045_v9 = vadd.f32 %v1029_v22, %v970_v24  ;;  %v1292_v0 = vsel %vm924_vm4, %v1283_v45, %v5150_v27  ;;  %v5159_v33 = vrot.slane %v5137_v5, 2 }
 0x1d1   : > { %v2610_v43 = vmul.f32 %v3030_v8, %v5001_v40  ;;  %v2545_v6 = vmul.f32 1.442695, %v2525_v23  ;;  %v2443_v40 = vrot.slane %v5059_v16, 2  ;;  %v1244_v22 = vmul.f32 %v4665_v3, %v1075_v60 }
 0x1d2   : > { %6625 = vst [vmem:[#allocation25_spill] sm:$0xff] %v5159_v33  ;;  %v1950_v56 = vadd.f32 %v5065_v7, %v1876_v15  ;;  %v1152_v61 = vadd.f32 %v1136_v34, %v1045_v9  ;;  %v2116_v2 = vmul.f32 %v4987_v29, %v2094_v63  ;;  %v5169_v24 = vrot.slane %v5163_v17, 1 }
 0x1d3   : > { %2651 = vrot.lane.b32.xlu0 %v2610_v43, %s3175_s12  ;;  %3031 = vpow2.f32 %v2545_v6  ;;  %v1366_v45 = vsel %vm999_vm5, %v1357_v10, %v5159_v33  ;;  %v5176_v7 = vrot.slane %v5163_v17, 2  ;;  %v1318_v34 = vmul.f32 %v4673_v13, %v1292_v0 }
 0x1d4   : > { %6627 = vst [vmem:[#allocation52_spill] sm:$0xff] %v5169_v24  ;;  %v1984_v44 = vadd.f32 %v5036_v57, %v1950_v56  ;;  %v1226_v8 = vadd.f32 %v1210_v32, %v1152_v61  ;;  %v2223_v60 = vmul.f32 %v4853_v54, %v2201_v28  ;;  %v6629_v6 = vrot.slane %v5057_v12, 7 }
 0x1d5   : > { %6628 = vst [vmem:[#allocation53_spill] sm:$0xff] %v5176_v7  ;;  %v2331_v43 = vmul.f32 %v4860_v39, %v5059_v16  ;;  %v2383_v57 = vsel %vm924_vm4, %v2369_v51, %v5169_v24  ;;  %v2457_v0 = vsel %vm999_vm5, %v2443_v40, %v5176_v7  ;;  %v1392_v9 = vmul.f32 %v4680_v14, %v1366_v45  ;;  %v6631_v24 = vld [vmem:[#allocation49_spill] sm:$0xff] }
 0x1d6   : > { %v2275_v23 = vsel %vm815_vm3, %v6629_v6, %v5118_v25  ;;  %v2058_v10 = vadd.f32 %v5069_v18, %v1984_v44  ;;  %v1260_v15 = vadd.f32 %v1244_v22, %v1226_v8  ;;  %v2405_v32 = vmul.f32 %v4934_v50, %v2383_v57  ;;  %v6630_v8 = vld [vmem:[#allocation48_spill] sm:$0xff] }
 0x1d7   : > { %v2297_v12 = vmul.f32 %v4870_v30, %v2275_v23  ;;  %v2479_v56 = vmul.f32 %v4952_v21, %v2457_v0  ;;  %v1499_v61 = vmul.f32 %v4688_v31, %v5045_v1  ;;  %v1573_v18 = vmul.f32 %v4695_v58, %v5050_v49  ;;  %v2163_v1 = vld [vmem:[#allocation2 + $0x140] sm:$0xff]  ;;  %v6632_v49 = vld [vmem:[#allocation50_spill] sm:$0xff] }
 0x1d8   : > { %v2132_v6 = vadd.f32 %v2116_v2, %v2058_v10  ;;  %v1334_v51 = vadd.f32 %v1318_v34, %v1260_v15  ;;  %v1607_v40 = vmul.f32 %v4704_v4, %v4724_v37  ;;  %v1681_v45 = vmul.f32 %v4714_v11, %v5055_v42  ;;  %v692_v37 = vld [vmem:[#allocation2 + $0x58] sm:$0xff] }
 0x1d9   : > { %v3032_v22 = vpop.eup %3031  ;;  %v1755_v44 = vmul.f32 %v4942_v41, %v2094_v63  ;;  %v1862_v7 = vmul.f32 %v6630_v8, %v2201_v28  ;;  %v5209_v25 = vmul.f32 %v6631_v24, %v2275_v23  ;;  %v5213_v15 = vmul.f32 %v6632_v49, %v5059_v16  ;;  %v6634_v63 = vld [vmem:[#allocation17_spill] sm:$0xff] }
 0x1da   : > { %v2573_v2 = vadd.f32 1.0, %v3032_v22  ;;  %v2239_v34 = vadd.f32 %v2223_v60, %v2132_v6  ;;  %v1408_v10 = vadd.f32 %v1392_v9, %v1334_v51  ;;  %v5216_v48 = vmul.f32 %v6633_v55, %v2383_v57  ;;  %v6635_v9 = vld [vmem:[#allocation8_spill] sm:$0xff] }
 0x1db   : > { %v5219_v42 = vmul.f32 %v4987_v29, %v2457_v0  ;;  %v722_v28 = vrot.slane %v6634_v63, 6  ;;  %v799_v23 = vrot.slane %v6634_v63, 7  ;;  %v2190_v60 = vrot.slane %v2163_v1, 6  ;;  %v6638_v0 = vld [vmem:[#allocation4_spill] sm:$0xff] }
 0x1dc   : > { %3033 = vrcp.f32 %v2573_v2  ;;  %v2313_v17 = vadd.f32 %v2297_v12, %v2239_v34  ;;  %v1515_v22 = vadd.f32 %v1499_v61, %v1408_v10  ;;  %v6636_v6 = vrot.slane %v6635_v9, 6  ;;  %v5233_v2 = vld [vmem:[#allocation2 + $0x148] sm:$0xff] }
 0x1dd   : > { %v6637_v51 = vrot.slane %v6635_v9, 7  ;;  %v872_v33 = vmul.f32 %v6638_v0, %v6634_v63  ;;  %v908_v27 = vrot.slane %v692_v37, 1  ;;  %v6639_v12 = vld [vmem:[#allocation32_spill] sm:$0xff]  ;;  %v6640_v10 = vrot.slane %v6634_v63, 1 }
 0x1de   : > { %v751_v16 = vsel %vm740_vm2, %v6636_v6, %v722_v28  ;;  %v2347_v29 = vadd.f32 %v2331_v43, %v2313_v17  ;;  %v1589_v46 = vadd.f32 %v1573_v18, %v1515_v22  ;;  %v983_v9 = vrot.slane %v692_v37, 2  ;;  %v6641_v6 = vld [vmem:[#allocation33_spill] sm:$0xff]  ;;  %v1061_v18 = vld [vmem:[#allocation2 + $0x78] sm:$0xff] }
 0x1df   : > { %v826_v57 = vsel %vm815_vm3, %v6637_v51, %v799_v23  ;;  %v763_v61 = vmul.f32 %v6639_v12, %v751_v16  ;;  %v935_v28 = vsel %vm924_vm4, %v6640_v10, %v908_v27  ;;  %v1091_v23 = vrot.slane %v6641_v6, 6  ;;  %v6644_v27 = vld [vmem:[#allocation44_spill] sm:$0xff] }
 0x1e0   : > { %v838_v34 = vmul.f32 %v6593_v52, %v826_v57  ;;  %v1165_v51 = vrot.slane %v6641_v6, 7  ;;  %v2421_v55 = vadd.f32 %v2405_v32, %v2347_v29  ;;  %v1623_v62 = vadd.f32 %v1607_v40, %v1589_v46 }
 0x1e1   : > { %v947_v43 = vmul.f32 %v4610_v19, %v935_v28  ;;  %v5245_v22 = vrot.slane %v5233_v2, 6  ;;  %v6643_v16 = vrot.slane %v6634_v63, 2  ;;  %v6645_v37 = vrot.slane %v6644_v27, 6 }
 0x1e2   : > { %v854_v17 = vadd.f32 %v838_v34, %v763_v61  ;;  %v6646_v29 = vrot.slane %v6644_v27, 7  ;;  %v3034_v32 = vpop.eup %3033  ;;  %v2495_v40 = vadd.f32 %v2479_v56, %v2421_v55  ;;  %v1697_v61 = vadd.f32 %v1681_v45, %v1623_v62 }
 0x1e3   : > { %6642 = vst [vmem:[#allocation48_spill] sm:$0xff] %v5245_v22  ;;  %v1010_v57 = vsel %vm999_vm5, %v6643_v16, %v983_v9  ;;  %v1117_v10 = vsel %vm740_vm2, %v6645_v37, %v1091_v23  ;;  %v2605_v63 = vmul.f32 %v3034_v32, %v5127_v59  ;;  %v2264_v19 = vrot.slane %v2163_v1, 7  ;;  %v5267_v37 = vld [vmem:[#allocation2 + $0x150] sm:$0xff] }
 0x1e4   : > { %v1191_v46 = vsel %vm815_vm3, %v6646_v29, %v1165_v51  ;;  %v888_v34 = vadd.f32 %v872_v33, %v854_v17  ;;  %v1022_v28 = vmul.f32 %v4631_v20, %v1010_v57  ;;  %v5262_v9 = vrot.slane %v5233_v2, 7 }
 0x1e5   : > { %v1273_v16 = vrot.slane %v1061_v18, 1  ;;  %v5265_v23 = vadd.f32 %v4998_v53, %v2495_v40  ;;  %v1771_v27 = vadd.f32 %v1755_v44, %v1697_v61  ;;  %v1129_v55 = vmul.f32 %v4648_v36, %v1117_v10  ;;  %2641 = vrot.lane.b32.xlu2 %v2605_v63, %s3175_s12 }
 0x1e6   : > { %6647 = vst [vmem:[#allocation49_spill] sm:$0xff] %v5262_v9  ;;  %v963_v51 = vadd.f32 %v947_v43, %v888_v34  ;;  %v2372_v33 = vrot.slane %v5233_v2, 1  ;;  %v5273_v62 = vrot.slane %v5267_v37, 1  ;;  %v1203_v59 = vmul.f32 %v4658_v35, %v1191_v46 }
 0x1e7   : > { %v1347_v56 = vrot.slane %v1061_v18, 2  ;;  %v2531_v45 = vsub.f32 0.0, %v5265_v23  ;;  %v1878_v1 = vadd.f32 %v1862_v7, %v1771_v27  ;;  %v6649_v44 = vrot.slane %v6641_v6, 1  ;;  %v1424_v18 = vld [vmem:[#allocation2 + $0x98] sm:$0xff] }
 0x1e8   : > { %6648 = vst [vmem:[#allocation50_spill] sm:$0xff] %v5273_v62  ;;  %v1038_v17 = vadd.f32 %v1022_v28, %v963_v51  ;;  %v2199_v57 = vsel %vm740_vm2, %v2190_v60, %v5245_v22  ;;  %v2273_v10 = vsel %vm815_vm3, %v2264_v19, %v5262_v9  ;;  %v2446_v29 = vrot.slane %v5233_v2, 2 }
 0x1e9   : > { %v1299_v43 = vsel %vm924_vm4, %v6649_v44, %v1273_v16  ;;  %v2557_v46 = vmul.f32 1.442695, %v2531_v45  ;;  %v1952_v7 = vadd.f32 %v5209_v25, %v1878_v1  ;;  %v1237_v40 = vmul.f32 %v4665_v3, %v6641_v6 }
 0x1ea   : > { %v1145_v32 = vadd.f32 %v1129_v55, %v1038_v17  ;;  %v5292_v61 = vrot.slane %v5267_v37, 2  ;;  %v1311_v34 = vmul.f32 %v4673_v13, %v1299_v43  ;;  %v6651_v60 = vrot.slane %v6641_v6, 2  ;;  %v6652_v17 = vld [vmem:[#allocation42_spill] sm:$0xff]  ;;  %v6653_v43 = vld [vmem:[#allocation19_spill] sm:$0xff] }
 0x1eb   : > { %3035 = vpow2.f32 %v2557_v46  ;;  %v1986_v28 = vadd.f32 %v5213_v15, %v1952_v7  ;;  %v1636_v16 = vrot.slane %v1424_v18, 1  ;;  %v2225_v25 = vmul.f32 %v4853_v54, %v2199_v57 }
 0x1ec   : > { %6650 = vst [vmem:[#allocation17_spill] sm:$0xff] %v5292_v61  ;;  %v1373_v19 = vsel %vm999_vm5, %v6651_v60, %v1347_v56  ;;  %v1219_v63 = vadd.f32 %v1203_v59, %v1145_v32  ;;  %v2381_v27 = vsel %vm924_vm4, %v2372_v33, %v5273_v62  ;;  %v1710_v51 = vrot.slane %v1424_v18, 2  ;;  %v6654_v18 = vld [vmem:[#allocation15_spill] sm:$0xff] }
 0x1ed   : > { %v2060_v55 = vadd.f32 %v5216_v48, %v1986_v28  ;;  %v2455_v6 = vsel %vm999_vm5, %v2446_v29, %v5292_v61  ;;  %v1385_v56 = vmul.f32 %v4680_v14, %v1373_v19  ;;  %v2299_v15 = vmul.f32 %v4870_v30, %v2273_v10  ;;  %v5326_v19 = vld [vmem:[#allocation2 + $0xd8] sm:$0xff]  ;;  %v6657_v28 = vld [vmem:[#allocation39_spill] sm:$0xff] }
 0x1ee   : > { %v1253_v45 = vadd.f32 %v1237_v40, %v1219_v63  ;;  %v1492_v44 = vmul.f32 %v4688_v31, %v6652_v17  ;;  %v1662_v33 = vsel %vm924_vm4, %v6653_v43, %v1636_v16  ;;  %v2333_v48 = vmul.f32 %v4860_v39, %v5233_v2  ;;  %v6655_v31 = vld [vmem:[#allocation7_spill] sm:$0xff]  ;;  %v6658_v17 = vld [vmem:[#allocation46_spill] sm:$0xff] }
 0x1ef   : > { %v2134_v59 = vadd.f32 %v5219_v42, %v2060_v55  ;;  %v2407_v57 = vmul.f32 %v4934_v50, %v2381_v27  ;;  %v2481_v29 = vmul.f32 %v4952_v21, %v2455_v6  ;;  %v1736_v10 = vsel %vm999_vm5, %v6654_v18, %v1710_v51  ;;  %v1787_v42 = vld [vmem:[#allocation2 + $0xb8] sm:$0xff] }
 0x1f0   : > { %v1327_v1 = vadd.f32 %v1311_v34, %v1253_v45  ;;  %v1566_v40 = vmul.f32 %v4695_v58, %v6655_v31  ;;  %v6656_v34 = vld [vmem:[#allocation11_spill] sm:$0xff]  ;;  %v1600_v63 = vmul.f32 %v4704_v4, %v6657_v28  ;;  %v1674_v16 = vmul.f32 %v4714_v11, %v1662_v33 }
 0x1f1   : > { %v3036_v46 = vpop.eup %3035  ;;  %v2241_v7 = vadd.f32 %v2225_v25, %v2134_v59  ;;  %v1817_v60 = vrot.slane %v6656_v34, 6  ;;  %v1891_v27 = vrot.slane %v6656_v34, 7  ;;  %v1748_v25 = vmul.f32 %v4942_v41, %v1736_v10 }
 0x1f2   : > { %v1401_v32 = vadd.f32 %v1385_v56, %v1327_v1  ;;  %v2579_v2 = vadd.f32 1.0, %v3036_v46  ;;  %v1999_v6 = vrot.slane %v1787_v42, 1  ;;  %v2362_v58 = vrot.slane %v5326_v19, 1 }
 0x1f3   : > { %v2315_v51 = vadd.f32 %v2299_v15, %v2241_v7  ;;  %v734_v45 = vrot.slane %v5078_v26, 6  ;;  %v811_v56 = vrot.slane %v5078_v26, 7  ;;  %v6659_v4 = vrot.slane %v6658_v17, 6 }
 0x1f4   : > { %v1508_v55 = vadd.f32 %v1492_v44, %v1401_v32  ;;  %3037 = vrcp.f32 %v2579_v2  ;;  %v2436_v15 = vrot.slane %v5326_v19, 2  ;;  %v6661_v44 = vrot.slane %v6658_v17, 7  ;;  %v6668_v17 = vld [vmem:[#allocation3_spill] sm:$0xff] }
 0x1f5   : > { %v2349_v59 = vadd.f32 %v2333_v48, %v2315_v51  ;;  %v5340_v11 = vsel %vm740_vm2, %v6659_v4, %v1817_v60  ;;  %v2073_v10 = vrot.slane %v1787_v42, 2  ;;  %v6663_v46 = vrot.slane %v5040_v38, 6  ;;  %v5357_v60 = vld [vmem:[#allocation2 + $0xd0] sm:$0xff] }
 0x1f6   : > { %v1582_v1 = vadd.f32 %v1566_v40, %v1508_v55  ;;  %6660 = vst [vmem:[#allocation8_spill] sm:$0xff] %v5340_v11  ;;  %v5347_v33 = vsel %vm815_vm3, %v6661_v44, %v1891_v27  ;;  %v6664_v7 = vrot.slane %v5040_v38, 7  ;;  %v2180_v2 = vrot.slane %v5357_v60, 6 }
 0x1f7   : > { %6662 = vst [vmem:[#allocation4_spill] sm:$0xff] %v5347_v33  ;;  %v743_v48 = vsel %vm740_vm2, %v6663_v46, %v734_v45  ;;  %v2423_v31 = vadd.f32 %v2407_v57, %v2349_v59  ;;  %v1855_v42 = vmul.f32 %v6630_v8, %v5340_v11  ;;  %v880_v51 = vmul.f32 %v6638_v0, %v5078_v26 }
 0x1f8   : > { %v818_v32 = vsel %vm815_vm3, %v6664_v7, %v811_v56  ;;  %v1616_v40 = vadd.f32 %v1600_v63, %v1582_v1  ;;  %6665 = vst [vmem:[#allocation32_spill] sm:$0xff] %v5357_v60  ;;  %v771_v28 = vmul.f32 %v6639_v12, %v743_v48  ;;  %v6666_v38 = vrot.slane %v5078_v26, 1 }
 0x1f9   : > { %v846_v27 = vmul.f32 %v6593_v52, %v818_v32  ;;  %v2497_v63 = vadd.f32 %v2481_v29, %v2423_v31  ;;  %v6667_v12 = vrot.slane %v5078_v26, 2  ;;  %v1103_v52 = vrot.slane %v5137_v5, 6 }
 0x1fa   : > { %v927_v57 = vsel %vm924_vm4, %v6666_v38, %v2362_v58  ;;  %v1690_v55 = vadd.f32 %v1674_v16, %v1616_v40  ;;  %v3038_v56 = vpop.eup %3037  ;;  %v1929_v0 = vmul.f32 %v6631_v24, %v5347_v33  ;;  %v1963_v59 = vmul.f32 %v6632_v49, %v6656_v34  ;;  %v5402_v40 = vld [vmem:[#allocation2 + $0xf8] sm:$0xff] }
 0x1fb   : > { %v1002_v45 = vsel %vm999_vm5, %v6667_v12, %v2436_v15  ;;  %v862_v1 = vadd.f32 %v846_v27, %v771_v28  ;;  %v955_v29 = vmul.f32 %v6668_v17, %v927_v57  ;;  %v2611_v16 = vmul.f32 %v3038_v56, %v5265_v23  ;;  %6673 = vst [vmem:[#allocation42_spill] sm:$0xff] %v5402_v40  ;;  %v6674_v27 = vld [vmem:[#allocation5_spill] sm:$0xff]  ;;  %v6679_v56 = vld [vmem:[#allocation22_spill] sm:$0xff] }
 0x1fc   : > { %v5386_v4 = vadd.f32 %v4998_v53, %v2497_v63  ;;  %v1764_v26 = vadd.f32 %v1748_v25, %v1690_v55  ;;  %v1177_v44 = vrot.slane %v5137_v5, 7  ;;  %v6669_v46 = vrot.slane %v6656_v34, 1 }
 0x1fd   : > { %v6671_v7 = vrot.slane %v6656_v34, 2  ;;  %v896_v31 = vadd.f32 %v880_v51, %v862_v1  ;;  %v1030_v23 = vmul.f32 %v4631_v20, %v1002_v45  ;;  %2653 = vrot.lane.b32.xlu1 %v2611_v16, %s3175_s12  ;;  %v6676_v34 = vld [vmem:[#allocation6_spill] sm:$0xff]  ;;  %v6677_v51 = vld [vmem:[#allocation51_spill] sm:$0xff]  ;;  %v2254_v20 = vrot.slane %v5357_v60, 7 }
 0x1fe   : > { %v5393_v48 = vsel %vm924_vm4, %v6669_v46, %v1999_v6  ;;  %v2533_v25 = vsub.f32 0.0, %v5386_v4  ;;  %v1871_v28 = vadd.f32 %v1855_v42, %v1764_v26  ;;  %v5409_v6 = vsel %vm740_vm2, %v6674_v27, %v2180_v2  ;;  %v6678_v42 = vld [vmem:[#allocation38_spill] sm:$0xff] }
 0x1ff   : > { %6670 = vst [vmem:[#allocation33_spill] sm:$0xff] %v5393_v48  ;;  %v5399_v32 = vsel %vm999_vm5, %v6671_v7, %v2073_v10  ;;  %v1109_v10 = vsel %vm740_vm2, %v6676_v34, %v1103_v52  ;;  %v2037_v38 = vmul.f32 %v6677_v51, %v5393_v48  ;;  %v971_v57 = vadd.f32 %v955_v29, %v896_v31  ;;  %v6682_v31 = vld [vmem:[#allocation26_spill] sm:$0xff]  ;;  %v6692_v34 = vld [vmem:[#allocation45_spill] sm:$0xff]  ;;  %v6701_v48 = vld [vmem:[#allocation52_spill] sm:$0xff] }
 0x200   : > { %6672 = vst [vmem:[#allocation44_spill] sm:$0xff] %v5399_v32  ;;  %v1137_v63 = vmul.f32 %v4648_v36, %v1109_v10  ;;  %v2561_v55 = vmul.f32 1.442695, %v2533_v25  ;;  %v1945_v12 = vadd.f32 %v1929_v0, %v1871_v28  ;;  %v1183_v45 = vsel %vm815_vm3, %v6678_v42, %v1177_v44  ;;  %v6680_v0 = vld [vmem:[#allocation20_spill] sm:$0xff]  ;;  %v5444_v25 = vld [vmem:[#allocation2 + $0x118] sm:$0xff] }
 0x201   : > { %6675 = vst [vmem:[#allocation19_spill] sm:$0xff] %v5409_v6  ;;  %v6366_v2 = vrot.slane %v5402_v40, 1  ;;  %v2111_v1 = vmul.f32 %v6679_v56, %v5399_v32  ;;  %v1046_v52 = vadd.f32 %v1030_v23, %v971_v57  ;;  %v1211_v17 = vmul.f32 %v4658_v35, %v1183_v45  ;;  %v6683_v28 = vld [vmem:[#allocation18_spill] sm:$0xff] }
 0x202   : > { %3039 = vpow2.f32 %v2561_v55  ;;  %v1979_v16 = vadd.f32 %v1963_v59, %v1945_v12  ;;  %v2218_v29 = vmul.f32 %v4853_v54, %v5409_v6  ;;  %v6367_v36 = vrot.slane %v5402_v40, 2  ;;  %v6685_v55 = vld [vmem:[#allocation24_spill] sm:$0xff] }
 0x203   : > { %v5431_v26 = vsel %vm815_vm3, %v6680_v0, %v2254_v20  ;;  %v1153_v44 = vadd.f32 %v1137_v63, %v1046_v52  ;;  %v1245_v46 = vmul.f32 %v4665_v3, %v5137_v5  ;;  %v2326_v59 = vmul.f32 %v5357_v60, %v4860_v39  ;;  %v6687_v52 = vld [vmem:[#allocation25_spill] sm:$0xff]  ;;  %v5516_v60 = vld [vmem:[%s6134_s3 + $0xd] ss:$0 sm:$0xff] }
 0x204   : > { %6681 = vst [vmem:[#allocation15_spill] sm:$0xff] %v5431_v26  ;;  %v2053_v7 = vadd.f32 %v2037_v38, %v1979_v16  ;;  %v2292_v35 = vmul.f32 %v4870_v30, %v5431_v26  ;;  %v1291_v23 = vsel %vm924_vm4, %v6682_v31, %v6366_v2  ;;  %v5451_v3 = vsel %vm924_vm4, %v6683_v28, %v2362_v58  ;;  %v5479_v31 = vld [vmem:[#allocation2 + $0x138] sm:$0xff] }
 0x205   : > { %6684 = vst [vmem:[#allocation7_spill] sm:$0xff] %v5451_v3  ;;  %v1227_v38 = vadd.f32 %v1211_v17, %v1153_v44  ;;  %v1319_v20 = vmul.f32 %v4673_v13, %v1291_v23  ;;  %v2400_v63 = vmul.f32 %v4934_v50, %v5451_v3  ;;  %v5461_v12 = vsel %vm999_vm5, %v6685_v55, %v2436_v15  ;;  %v5475_v15 = vld [vmem:[%s6134_s3 + $0xa] ss:$0 sm:$0xff]  ;;  %v2166_v28 = vld [vmem:[#allocation2 + $0x158] sm:$0xff] }
 0x206   : > { %v2127_v57 = vadd.f32 %v2111_v1, %v2053_v7  ;;  %6686 = vst [vmem:[#allocation11_spill] sm:$0xff] %v5461_v12  ;;  %v1365_v58 = vsel %vm999_vm5, %v6687_v52, %v6367_v36  ;;  %v6370_v1 = vrot.slane %v5444_v25, 1  ;;  %v2474_v19 = vmul.f32 %v4952_v21, %v5461_v12  ;;  %v6688_v7 = vld [vmem:[#allocation43_spill] sm:$0xff] }
 0x207   : > { %v1261_v17 = vadd.f32 %v1245_v46, %v1227_v38  ;;  %v1393_v13 = vmul.f32 %v4680_v14, %v1365_v58  ;;  %v1500_v2 = vmul.f32 %v5475_v15, %v6688_v7  ;;  %v6689_v46 = vld [vmem:[#allocation10_spill] sm:$0xff]  ;;  %v6374_v52 = vrot.slane %v5444_v25, 2  ;;  %v5493_v7 = vld [vmem:[%s6134_s3 + $0xb] ss:$0 sm:$0xff] }
 0x208   : > { %v3040_v16 = vpop.eup %3039  ;;  %v2234_v44 = vadd.f32 %v2218_v29, %v2127_v57  ;;  %v1829_v38 = vrot.slane %v6689_v46, 6  ;;  %v6690_v29 = vld [vmem:[#allocation40_spill] sm:$0xff]  ;;  %v1574_v40 = vmul.f32 %v5493_v7, %v6692_v34  ;;  %v2011_v34 = vrot.slane %v5479_v31, 1 }
 0x209   : > { %v2581_v14 = vadd.f32 1.0, %v3040_v16  ;;  %v1335_v36 = vadd.f32 %v1319_v20, %v1261_v17  ;;  %v5487_v57 = vsel %vm924_vm4, %v6690_v29, %v6370_v1  ;;  %v5500_v20 = vld [vmem:[%s6134_s3 + $0xc] ss:$0 sm:$0xff]  ;;  %v1903_v1 = vrot.slane %v6689_v46, 7 }
 0x20a   : > { %6691 = vst [vmem:[#allocation39_spill] sm:$0xff] %v5487_v57  ;;  %v2308_v42 = vadd.f32 %v2292_v35, %v2234_v44  ;;  %v6693_v17 = vld [vmem:[#allocation16_spill] sm:$0xff]  ;;  %v6694_v44 = vld [vmem:[#allocation47_spill] sm:$0xff] }
 0x20b   : > { %v1608_v16 = vmul.f32 %v5500_v20, %v6693_v17  ;;  %3041 = vrcp.f32 %v2581_v14  ;;  %v1409_v35 = vadd.f32 %v1393_v13, %v1335_v36  ;;  %v5510_v12 = vsel %vm999_vm5, %v6694_v44, %v6374_v52  ;;  %v6696_v14 = vld [vmem:[#allocation9_spill] sm:$0xff] }
 0x20c   : > { %6695 = vst [vmem:[#allocation46_spill] sm:$0xff] %v5510_v12  ;;  %v2342_v3 = vadd.f32 %v2326_v59, %v2308_v42  ;;  %v1682_v17 = vmul.f32 %v5516_v60, %v5487_v57  ;;  %v5523_v36 = vsel %vm740_vm2, %v6696_v14, %v1829_v38  ;;  %v5527_v13 = vmul.f32 %v6632_v49, %v6689_v46  ;;  %v5532_v42 = vld [vmem:[%s6134_s3] ss:$0 sm:$0xff]  ;;  %v5538_v57 = vld [vmem:[%s6134_s3 + $0x1] ss:$0 sm:$0xff]  ;;  %v5550_v44 = vld [vmem:[#allocation2 + $0x110] sm:$0xff] }
 0x20d   : > { %6697 = vst [vmem:[#allocation3_spill] sm:$0xff] %v5523_v36  ;;  %v1516_v52 = vadd.f32 %v1500_v2, %v1409_v35  ;;  %v773_v59 = vmul.f32 %v5532_v42, %v1109_v10  ;;  %v848_v38 = vmul.f32 %v5538_v57, %v1183_v45  ;;  %v5544_v14 = vld [vmem:[%s6134_s3 + $0x2] ss:$0 sm:$0xff]  ;;  %v5548_v35 = vld [vmem:[#allocation2 + $0x108] sm:$0xff]  ;;  %v1756_v29 = vmul.f32 %v4942_v41, %v5510_v12  ;;  %v6699_v45 = vld [vmem:[#allocation34_spill] sm:$0xff] }
 0x20e   : > { %v882_v2 = vmul.f32 %v5544_v14, %v5137_v5  ;;  %6698 = vst [vmem:[#allocation5_spill] sm:$0xff] %v5548_v35  ;;  %v2416_v10 = vadd.f32 %v2400_v63, %v2342_v3  ;;  %v1863_v26 = vmul.f32 %v6630_v8, %v5523_v36  ;;  %v5559_v6 = vsel %vm815_vm3, %v6699_v45, %v1903_v1  ;;  %v5569_v3 = vld [vmem:[%s6134_s3 + $0x3] ss:$0 sm:$0xff]  ;;  %v5575_v1 = vld [vmem:[%s6134_s3 + $0x4] ss:$0 sm:$0xff] }
 0x20f   : > { %6700 = vst [vmem:[#allocation51_spill] sm:$0xff] %v5559_v6  ;;  %v1590_v32 = vadd.f32 %v1574_v40, %v1516_v52  ;;  %v5564_v5 = vsel %vm924_vm4, %v6701_v48, %v2011_v34  ;;  %v864_v33 = vadd.f32 %v848_v38, %v773_v59  ;;  %v957_v63 = vmul.f32 %v5569_v3, %v1291_v23 }
 0x210   : > { %6702 = vst [vmem:[#allocation22_spill] sm:$0xff] %v5564_v5  ;;  %v2490_v12 = vadd.f32 %v2474_v19, %v2416_v10  ;;  %v1032_v40 = vmul.f32 %v5575_v1, %v1365_v58  ;;  %v6384_v52 = vrot.slane %v5548_v35, 6  ;;  %v1106_v34 = vrot.slane %v5550_v44, 6 }
 0x211   : > { %v3042_v59 = vpop.eup %3041  ;;  %v1624_v38 = vadd.f32 %v1608_v16, %v1590_v32  ;;  %v898_v48 = vadd.f32 %v882_v2, %v864_v33  ;;  %v6383_v45 = vrot.slane %v5548_v35, 7  ;;  %v1180_v11 = vrot.slane %v5550_v44, 7  ;;  %v5594_v33 = vld [vmem:[%s6134_s3 + $0x5] ss:$0 sm:$0xff] }
 0x212   : > { %v2613_v23 = vmul.f32 %v3042_v59, %v5386_v4  ;;  %v5584_v19 = vadd.f32 %v4998_v53, %v2490_v12  ;;  %v2085_v10 = vrot.slane %v5479_v31, 2  ;;  %v1107_v58 = vsel %vm740_vm2, %v6384_v52, %v1106_v34  ;;  %v5611_v59 = vld [vmem:[%s6134_s3 + $0x6] ss:$0 sm:$0xff]  ;;  %v5624_v52 = vld [vmem:[%s6134_s3 + $0x7] ss:$0 sm:$0xff] }
 0x213   : > { %v1698_v55 = vadd.f32 %v1682_v17, %v1624_v38  ;;  %v973_v32 = vadd.f32 %v957_v63, %v898_v48  ;;  %v1139_v4 = vmul.f32 %v5594_v33, %v1107_v58  ;;  %v1181_v31 = vsel %vm815_vm3, %v6383_v45, %v1180_v11  ;;  %v6704_v17 = vld [vmem:[#allocation53_spill] sm:$0xff] }
 0x214   : > { %2657 = vrot.lane.b32.xlu0 %v2613_v23, %s3175_s12  ;;  %v2526_v12 = vsub.f32 0.0, %v5584_v19  ;;  %v1937_v16 = vmul.f32 %v6631_v24, %v5559_v6  ;;  %v6387_v48 = vrot.slane %v5550_v44, 1  ;;  %v2192_v63 = vrot.slane %v5267_v37, 6 }
 0x215   : > { %v1772_v2 = vadd.f32 %v1756_v29, %v1698_v55  ;;  %v1048_v34 = vadd.f32 %v1032_v40, %v973_v32  ;;  %v1213_v11 = vmul.f32 %v5611_v59, %v1181_v31  ;;  %v2266_v23 = vrot.slane %v5267_v37, 7 }
 0x216   : > { %v2547_v38 = vmul.f32 1.442695, %v2526_v12  ;;  %v2374_v58 = vrot.slane %v2166_v28, 1  ;;  %v6703_v45 = vrot.slane %v5444_v25, 1  ;;  %v2448_v40 = vrot.slane %v2166_v28, 2 }
 0x217   : > { %v1879_v29 = vadd.f32 %v1863_v26, %v1772_v2  ;;  %v1155_v32 = vadd.f32 %v1139_v4, %v1048_v34  ;;  %v1247_v31 = vmul.f32 %v5624_v52, %v5550_v44  ;;  %v2045_v12 = vmul.f32 %v6677_v51, %v5564_v5 }
 0x218   : > { %v1289_v55 = vsel %vm924_vm4, %v6387_v48, %v6703_v45  ;;  %3043 = vpow2.f32 %v2547_v38  ;;  %v5633_v35 = vsel %vm999_vm5, %v6704_v17, %v2085_v10  ;;  %v6706_v26 = vrot.slane %v5444_v25, 2  ;;  %v5646_v38 = vld [vmem:[%s6134_s3 + $0x8] ss:$0 sm:$0xff]  ;;  %v697_v48 = vld [vmem:[#allocation2 + $0x80] sm:$0xff] }
 0x219   : > { %6705 = vst [vmem:[#allocation20_spill] sm:$0xff] %v5633_v35  ;;  %v6707_v28 = vrot.slane %v5550_v44, 2  ;;  %v1953_v4 = vadd.f32 %v1937_v16, %v1879_v29  ;;  %v2119_v2 = vmul.f32 %v6679_v56, %v5633_v35  ;;  %v1229_v34 = vadd.f32 %v1213_v11, %v1155_v32  ;;  %v709_v17 = vld [vmem:[#allocation2 + $0xe0] sm:$0xff] }
 0x21a   : > { %v1321_v10 = vmul.f32 %v5646_v38, %v1289_v55  ;;  %v2198_v25 = vsel %vm740_vm2, %v5245_v22, %v2192_v63  ;;  %v2334_v16 = vmul.f32 %v4860_v39, %v5267_v37  ;;  %v2380_v11 = vsel %vm924_vm4, %v5273_v62, %v2374_v58  ;;  %v5669_v63 = vld [vmem:[%s6134_s3 + $0x9] ss:$0 sm:$0xff] }
 0x21b   : > { %v1363_v45 = vsel %vm999_vm5, %v6707_v28, %v6706_v26  ;;  %v2272_v26 = vsel %vm815_vm3, %v5262_v9, %v2266_v23  ;;  %v1987_v29 = vadd.f32 %v5527_v13, %v1953_v4  ;;  %v5664_v55 = vsel %vm999_vm5, %v5292_v61, %v2448_v40 }
 0x21c   : > { %v1263_v32 = vadd.f32 %v1247_v31, %v1229_v34  ;;  %v1395_v23 = vmul.f32 %v5669_v63, %v1363_v45  ;;  %v2226_v39 = vmul.f32 %v4853_v54, %v2198_v25  ;;  %v2300_v28 = vmul.f32 %v4870_v30, %v2272_v26 }
 0x21d   : > { %v2408_v58 = vmul.f32 %v4934_v50, %v2380_v11  ;;  %v2482_v13 = vmul.f32 %v4952_v21, %v5664_v55  ;;  %v2061_v4 = vadd.f32 %v2045_v12, %v1987_v29  ;;  %v1502_v31 = vmul.f32 %v5475_v15, %v5523_v36 }
 0x21e   : > { %v1337_v40 = vadd.f32 %v1321_v10, %v1263_v32  ;;  %v1576_v34 = vmul.f32 %v5493_v7, %v5559_v6  ;;  %v3044_v61 = vpop.eup %3043  ;;  %v1610_v54 = vmul.f32 %v5500_v20, %v6689_v46  ;;  %v1684_v30 = vmul.f32 %v5516_v60, %v5564_v5 }
 0x21f   : > { %v1758_v50 = vmul.f32 %v4942_v41, %v5633_v35  ;;  %v1865_v21 = vmul.f32 %v6630_v8, %v2198_v25  ;;  %v2574_v12 = vadd.f32 1.0, %v3044_v61  ;;  %v2135_v45 = vadd.f32 %v2119_v2, %v2061_v4  ;;  %v3108_v41 = vld [vmem:[#allocation2 + $0x88] sm:$0xff]  ;;  %v1066_v61 = vld [vmem:[#allocation2 + $0xa0] sm:$0xff]  ;;  %v6708_v2 = vld [vmem:[#allocation13_spill] sm:$0xff] }
 0x220   : > { %v1411_v10 = vadd.f32 %v1395_v23, %v1337_v40  ;;  %v1939_v29 = vmul.f32 %v6631_v24, %v2272_v26  ;;  %v5691_v32 = vmul.f32 %v6632_v49, %v5267_v37  ;;  %v5694_v62 = vmul.f32 %v6677_v51, %v2380_v11  ;;  %v6709_v25 = vld [vmem:[#allocation41_spill] sm:$0xff]  ;;  %v6740_v35 = vld [vmem:[#allocation32_spill] sm:$0xff] }
 0x221   : > { %v726_v46 = vrot.slane %v697_v48, 6  ;;  %v803_v9 = vrot.slane %v697_v48, 7  ;;  %3045 = vrcp.f32 %v2574_v12  ;;  %v2242_v5 = vadd.f32 %v2226_v39, %v2135_v45  ;;  %v5703_v48 = vld [vmem:[#allocation2 + $0x168] sm:$0xff]  ;;  %v5705_v23 = vld [vmem:[#allocation2 + $0x170] sm:$0xff] }
 0x222   : > { %v1518_v22 = vadd.f32 %v1502_v31, %v1411_v10  ;;  %v875_v8 = vmul.f32 %v3108_v41, %v5544_v14  ;;  %v912_v37 = vrot.slane %v3108_v41, 1  ;;  %v987_v51 = vrot.slane %v3108_v41, 2  ;;  %6710 = vst [vmem:[#allocation10_spill] sm:$0xff] %v5703_v48  ;;  %v6712_v41 = vld [vmem:[#allocation30_spill] sm:$0xff] }
 0x223   : > { %v748_v24 = vsel %vm740_vm2, %v726_v46, %v6708_v2  ;;  %v823_v49 = vsel %vm815_vm3, %v803_v9, %v6709_v25  ;;  %v2316_v26 = vadd.f32 %v2300_v28, %v2242_v5  ;;  %6711 = vst [vmem:[#allocation16_spill] sm:$0xff] %v5705_v23  ;;  %v1095_v31 = vrot.slane %v1066_v61, 6  ;;  %v2170_v25 = vld [vmem:[#allocation2 + $0x178] sm:$0xff] }
 0x224   : > { %v1592_v11 = vadd.f32 %v1576_v34, %v1518_v22  ;;  %v766_v39 = vmul.f32 %v5532_v42, %v748_v24  ;;  %v841_v4 = vmul.f32 %v5538_v57, %v823_v49  ;;  %v932_v40 = vsel %vm924_vm4, %v912_v37, %v6653_v43 }
 0x225   : > { %v1007_v9 = vsel %vm999_vm5, %v987_v51, %v6654_v18  ;;  %v1169_v12 = vrot.slane %v1066_v61, 7  ;;  %v2350_v5 = vadd.f32 %v2334_v16, %v2316_v26  ;;  %v950_v34 = vmul.f32 %v5569_v3, %v932_v40  ;;  %v6713_v16 = vld [vmem:[#allocation31_spill] sm:$0xff]  ;;  %v3109_v26 = vld [vmem:[#allocation2 + $0xa8] sm:$0xff] }
 0x226   : > { %v1626_v22 = vadd.f32 %v1610_v54, %v1592_v11  ;;  %v857_v28 = vadd.f32 %v841_v4, %v766_v39  ;;  %v6396_v45 = vrot.slane %v5703_v48, 6  ;;  %v2195_v10 = vrot.slane %v5705_v23, 6 }
 0x227   : > { %v1025_v46 = vmul.f32 %v5575_v1, %v1007_v9  ;;  %v1114_v43 = vsel %vm740_vm2, %v1095_v31, %v6712_v41  ;;  %v3046_v2 = vpop.eup %3045  ;;  %v2424_v24 = vadd.f32 %v2408_v58, %v2350_v5  ;;  %v1188_v54 = vsel %vm815_vm3, %v1169_v12, %v6713_v16 }
 0x228   : > { %v1700_v18 = vadd.f32 %v1684_v30, %v1626_v22  ;;  %v891_v61 = vadd.f32 %v875_v8, %v857_v28  ;;  %v2606_v49 = vmul.f32 %v3046_v2, %v5584_v19  ;;  %v6395_v37 = vrot.slane %v5703_v48, 7  ;;  %v6714_v22 = vld [vmem:[#allocation36_spill] sm:$0xff] }
 0x229   : > { %v2269_v51 = vrot.slane %v5705_v23, 7  ;;  %v1277_v11 = vrot.slane %v3109_v26, 1  ;;  %v2498_v39 = vadd.f32 %v2482_v13, %v2424_v24  ;;  %v1132_v58 = vmul.f32 %v5594_v33, %v1114_v43 }
 0x22a   : > { %v1774_v4 = vadd.f32 %v1758_v50, %v1700_v18  ;;  %v966_v40 = vadd.f32 %v950_v34, %v891_v61  ;;  %2643 = vrot.lane.b32.xlu2 %v2606_v49, %s3175_s12  ;;  %v6394_v30 = vrot.slane %v5705_v23, 1  ;;  %v2377_v8 = vrot.slane %v2170_v25, 1  ;;  %v3110_v61 = vld [vmem:[#allocation2 + $0xc8] sm:$0xff] }
 0x22b   : > { %v1206_v9 = vmul.f32 %v5611_v59, %v1188_v54  ;;  %v1351_v31 = vrot.slane %v3109_v26, 2  ;;  %v5733_v19 = vadd.f32 %v4998_v53, %v2498_v39  ;;  %v1296_v13 = vsel %vm924_vm4, %v1277_v11, %v6714_v22  ;;  %v5763_v54 = vld [vmem:[%s6134_s3 + $0x14] ss:$0 sm:$0xff] }
 0x22c   : > { %v1881_v12 = vadd.f32 %v1865_v21, %v1774_v4  ;;  %v1041_v5 = vadd.f32 %v1025_v46, %v966_v40  ;;  %v2121_v50 = vmul.f32 %v6679_v56, %v5664_v55  ;;  %v2196_v28 = vsel %vm740_vm2, %v6396_v45, %v2195_v10  ;;  %v6715_v10 = vld [vmem:[#allocation37_spill] sm:$0xff] }
 0x22d   : > { %v6393_v34 = vrot.slane %v5705_v23, 2  ;;  %v2451_v41 = vrot.slane %v2170_v25, 2  ;;  %v2534_v53 = vsub.f32 0.0, %v5733_v19  ;;  %v1240_v46 = vmul.f32 %v3109_v26, %v5624_v52  ;;  %v6716_v26 = vld [vmem:[#allocation14_spill] sm:$0xff]  ;;  %v6736_v45 = vld [vmem:[#allocation21_spill] sm:$0xff] }
 0x22e   : > { %v1955_v43 = vadd.f32 %v1939_v29, %v1881_v12  ;;  %v1148_v21 = vadd.f32 %v1132_v58, %v1041_v5  ;;  %v2270_v2 = vsel %vm815_vm3, %v6395_v37, %v2269_v51  ;;  %v2378_v56 = vsel %vm924_vm4, %v6394_v30, %v2377_v8  ;;  %v6730_v30 = vld [vmem:[#allocation33_spill] sm:$0xff]  ;;  %v3123_v37 = vld [vmem:[#allocation2 + $0x108] sm:$0xff] }
 0x22f   : > { %v1314_v55 = vmul.f32 %v5646_v38, %v1296_v13  ;;  %v1370_v24 = vsel %vm999_vm5, %v1351_v31, %v6715_v10  ;;  %v2563_v29 = vmul.f32 1.442695, %v2534_v53  ;;  %v1640_v16 = vrot.slane %v3110_v61, 1 }
 0x230   : > { %v1989_v18 = vadd.f32 %v5691_v32, %v1955_v43  ;;  %v1222_v25 = vadd.f32 %v1206_v9, %v1148_v21  ;;  %v2228_v49 = vmul.f32 %v5763_v54, %v2196_v28  ;;  %v2452_v51 = vsel %vm999_vm5, %v6393_v34, %v2451_v41  ;;  %v5785_v9 = vld [vmem:[%s6134_s3 + $0x15] ss:$0 sm:$0xff]  ;;  %v6720_v41 = vld [vmem:[#allocation18_spill] sm:$0xff] }
 0x231   : > { %v6717_v11 = vrot.slane %v6716_v26, 6  ;;  %v6718_v39 = vrot.slane %v6716_v26, 7  ;;  %3047 = vpow2.f32 %v2563_v29  ;;  %v1388_v8 = vmul.f32 %v5669_v63, %v1370_v24  ;;  %v5808_v43 = vld [vmem:[%s6134_s3 + $0x18] ss:$0 sm:$0xff] }
 0x232   : > { %v2063_v40 = vadd.f32 %v5694_v62, %v1989_v18  ;;  %v1256_v58 = vadd.f32 %v1240_v46, %v1222_v25  ;;  %v2302_v31 = vmul.f32 %v5785_v9, %v2270_v2  ;;  %v5798_v62 = vld [vmem:[%s6134_s3 + $0x17] ss:$0 sm:$0xff]  ;;  %v1714_v5 = vrot.slane %v3110_v61, 2  ;;  %v6721_v2 = vld [vmem:[#allocation28_spill] sm:$0xff] }
 0x233   : > { %v1477_v32 = vsel %vm740_vm2, %v6717_v11, %v6674_v27  ;;  %v1551_v4 = vsel %vm815_vm3, %v6718_v39, %v6680_v0  ;;  %v5791_v27 = vld [vmem:[%s6134_s3 + $0x16] ss:$0 sm:$0xff]  ;;  %v2410_v12 = vmul.f32 %v5798_v62, %v2378_v56  ;;  %v1659_v53 = vsel %vm924_vm4, %v1640_v16, %v6720_v41  ;;  %v6722_v56 = vld [vmem:[#allocation27_spill] sm:$0xff] }
 0x234   : > { %6719 = vst [vmem:[#allocation13_spill] sm:$0xff] %v5791_v27  ;;  %v2336_v0 = vmul.f32 %v5791_v27, %v5705_v23  ;;  %v2137_v22 = vadd.f32 %v2121_v50, %v2063_v40  ;;  %v1330_v13 = vadd.f32 %v1314_v55, %v1256_v58  ;;  %v1495_v28 = vmul.f32 %v5475_v15, %v1477_v32  ;;  %v3116_v55 = vld [vmem:[#allocation2 + $0xe8] sm:$0xff]  ;;  %v6724_v16 = vld [vmem:[#allocation35_spill] sm:$0xff] }
 0x235   : > { %v2484_v21 = vmul.f32 %v5808_v43, %v2452_v51  ;;  %v1569_v46 = vmul.f32 %v5493_v7, %v1551_v4  ;;  %v6723_v10 = vrot.slane %v6722_v56, 6  ;;  %v2003_v24 = vrot.slane %v3116_v55, 1  ;;  %v6726_v32 = vld [vmem:[#allocation24_spill] sm:$0xff]  ;;  %v5830_v4 = vld [vmem:[%s6134_s3 + $0x11] ss:$0 sm:$0xff]  ;;  %v5843_v41 = vld [vmem:[#allocation2 + $0x100] sm:$0xff] }
 0x236   : > { %v2244_v29 = vadd.f32 %v2228_v49, %v2137_v22  ;;  %v1404_v18 = vadd.f32 %v1388_v8, %v1330_v13  ;;  %v1603_v25 = vmul.f32 %v3110_v61, %v5500_v20  ;;  %v6725_v26 = vrot.slane %v6722_v56, 7  ;;  %v6727_v61 = vld [vmem:[#allocation8_spill] sm:$0xff] }
 0x237   : > { %v1840_v50 = vsel %vm740_vm2, %v6723_v10, %v6721_v2  ;;  %v1677_v11 = vmul.f32 %v5516_v60, %v1659_v53  ;;  %v1733_v39 = vsel %vm999_vm5, %v1714_v5, %v6726_v32  ;;  %v5833_v49 = vmul.f32 %v5830_v4, %v3116_v55  ;;  %v3048_v58 = vpop.eup %3047  ;;  %v5840_v13 = vld [vmem:[%s6134_s3 + $0xf] ss:$0 sm:$0xff] }
 0x238   : > { %v1914_v51 = vsel %vm815_vm3, %v6725_v26, %v6724_v16  ;;  %v769_v40 = vmul.f32 %v5532_v42, %v6727_v61  ;;  %v2318_v8 = vadd.f32 %v2302_v31, %v2244_v29  ;;  %v1511_v22 = vadd.f32 %v1495_v28, %v1404_v18  ;;  %v6728_v53 = vld [vmem:[#allocation4_spill] sm:$0xff]  ;;  %v6729_v26 = vld [vmem:[#allocation29_spill] sm:$0xff] }
 0x239   : > { %v1858_v5 = vmul.f32 %v5840_v13, %v1840_v50  ;;  %v844_v56 = vmul.f32 %v5538_v57, %v6728_v53  ;;  %v2582_v10 = vadd.f32 1.0, %v3048_v58  ;;  %v2022_v32 = vsel %vm924_vm4, %v2003_v24, %v6729_v26  ;;  %v3119_v31 = vld [vmem:[#allocation2 + $0xb0] sm:$0xff]  ;;  %v5856_v53 = vld [vmem:[%s6134_s3 + $0xe] ss:$0 sm:$0xff] }
 0x23a   : > { %v2077_v61 = vrot.slane %v3116_v55, 2  ;;  %v878_v28 = vmul.f32 %v3119_v31, %v5544_v14  ;;  %v2352_v29 = vadd.f32 %v2336_v0, %v2318_v8  ;;  %v1585_v18 = vadd.f32 %v1569_v46, %v1511_v22  ;;  %v5862_v55 = vld [vmem:[%s6134_s3 + $0x10] ss:$0 sm:$0xff]  ;;  %v6731_v8 = vld [vmem:[#allocation44_spill] sm:$0xff] }
 0x23b   : > { %v860_v34 = vadd.f32 %v844_v56, %v769_v40  ;;  %v953_v50 = vmul.f32 %v5569_v3, %v6730_v30  ;;  %3049 = vrcp.f32 %v2582_v10  ;;  %v1751_v58 = vmul.f32 %v5856_v53, %v1733_v39  ;;  %v5871_v56 = vld [vmem:[%s6134_s3 + $0x12] ss:$0 sm:$0xff]  ;;  %v6733_v10 = vld [vmem:[#allocation23_spill] sm:$0xff] }
 0x23c   : > { %v1932_v0 = vmul.f32 %v5862_v55, %v1914_v51  ;;  %v6399_v46 = vrot.slane %v5843_v41, 6  ;;  %v2426_v24 = vadd.f32 %v2410_v12, %v2352_v29  ;;  %v1619_v40 = vadd.f32 %v1603_v25, %v1585_v18  ;;  %6732 = vst [vmem:[#allocation41_spill] sm:$0xff] %v5871_v56  ;;  %v6734_v29 = vld [vmem:[#allocation19_spill] sm:$0xff] }
 0x23d   : > { %v894_v30 = vadd.f32 %v878_v28, %v860_v34  ;;  %v1028_v22 = vmul.f32 %v5575_v1, %v6731_v8  ;;  %v2040_v39 = vmul.f32 %v5871_v56, %v2022_v32  ;;  %v2096_v31 = vsel %vm999_vm5, %v2077_v61, %v6733_v10  ;;  %v6735_v8 = vld [vmem:[#allocation12_spill] sm:$0xff] }
 0x23e   : > { %v6400_v51 = vrot.slane %v5843_v41, 7  ;;  %v2366_v12 = vrot.slane %v3123_v37, 1  ;;  %v2500_v25 = vadd.f32 %v2484_v21, %v2426_v24  ;;  %v1693_v34 = vadd.f32 %v1677_v11, %v1619_v40  ;;  %v6737_v21 = vld [vmem:[#allocation15_spill] sm:$0xff] }
 0x23f   : > { %v969_v28 = vadd.f32 %v953_v50, %v894_v30  ;;  %v1135_v18 = vmul.f32 %v5594_v33, %v6734_v29  ;;  %v2203_v32 = vsel %vm740_vm2, %v6399_v46, %v6735_v8  ;;  %v5891_v23 = vmul.f32 %v3123_v37, %v5791_v27  ;;  %v5898_v50 = vld [vmem:[%s6135_s4] ss:$0 sm:$0xff]  ;;  %v3125_v29 = vld [vmem:[#allocation2 + $0xf0] sm:$0xff] }
 0x240   : > { %v2277_v61 = vsel %vm815_vm3, %v6400_v51, %v6736_v45  ;;  %v1209_v11 = vmul.f32 %v5611_v59, %v6737_v21  ;;  %v5901_v24 = vadd.f32 %v5898_v50, %v2500_v25  ;;  %v1767_v40 = vadd.f32 %v1751_v58, %v1693_v34  ;;  %v5906_v45 = vld [vmem:[%s6134_s3 + $0x13] ss:$0 sm:$0xff]  ;;  %v6739_v51 = vld [vmem:[#allocation40_spill] sm:$0xff] }
 0x241   : > { %v1044_v30 = vadd.f32 %v1028_v22, %v969_v28  ;;  %v1463_v8 = vrot.slane %v3125_v29, 6  ;;  %v3050_v46 = vpop.eup %3049  ;;  %6738 = vst [vmem:[#allocation30_spill] sm:$0xff] %v5906_v45  ;;  %v2114_v21 = vmul.f32 %v5906_v45, %v2096_v31  ;;  %v2385_v48 = vsel %vm924_vm4, %v2366_v12, %v6739_v51  ;;  %v6741_v45 = vld [vmem:[#allocation7_spill] sm:$0xff] }
 0x242   : > { %v1243_v25 = vmul.f32 %v5624_v52, %v6740_v35  ;;  %v1537_v27 = vrot.slane %v3125_v29, 7  ;;  %v2614_v58 = vmul.f32 %v3050_v46, %v5733_v19  ;;  %v2536_v22 = vsub.f32 0.0, %v5901_v24  ;;  %v6742_v46 = vld [vmem:[#allocation11_spill] sm:$0xff] }
 0x243   : > { %v1874_v34 = vadd.f32 %v1858_v5, %v1767_v40  ;;  %v1151_v28 = vadd.f32 %v1135_v18, %v1044_v30  ;;  %v2221_v6 = vmul.f32 %v5763_v54, %v2203_v32  ;;  %v2295_v36 = vmul.f32 %v5785_v9, %v2277_v61  ;;  %v6745_v30 = vld [vmem:[#allocation6_spill] sm:$0xff] }
 0x244   : > { %v2440_v31 = vrot.slane %v3123_v37, 2  ;;  %v1317_v56 = vmul.f32 %v5646_v38, %v6741_v45  ;;  %2659 = vrot.lane.b32.xlu1 %v2614_v58, %s3175_s12  ;;  %v2567_v51 = vmul.f32 1.442695, %v2536_v22  ;;  %v1474_v19 = vsel %vm740_vm2, %v6721_v2, %v1463_v8  ;;  %v3127_v58 = vld [vmem:[#allocation2 + $0xe8] sm:$0xff] }
 0x245   : > { %v1948_v35 = vadd.f32 %v1932_v0, %v1874_v34  ;;  %v1225_v12 = vadd.f32 %v1209_v11, %v1151_v28  ;;  %v2403_v5 = vmul.f32 %v5798_v62, %v2385_v48  ;;  %v1391_v18 = vmul.f32 %v5669_v63, %v6742_v46  ;;  %v6743_v0 = vld [vmem:[#allocation42_spill] sm:$0xff]  ;;  %v6746_v34 = vld [vmem:[#allocation47_spill] sm:$0xff] }
 0x246   : > { %v1548_v37 = vsel %vm815_vm3, %v6724_v16, %v1537_v27  ;;  %v735_v32 = vrot.slane %v709_v17, 6  ;;  %3051 = vpow2.f32 %v2567_v51  ;;  %v6744_v11 = vrot.slane %v6743_v0, 1  ;;  %v6747_v51 = vld [vmem:[#allocation38_spill] sm:$0xff] }
 0x247   : > { %v1982_v61 = vadd.f32 %v5833_v49, %v1948_v35  ;;  %v1259_v40 = vadd.f32 %v1243_v25, %v1225_v12  ;;  %v1498_v48 = vmul.f32 %v5475_v15, %v1474_v19  ;;  %v812_v45 = vrot.slane %v709_v17, 7  ;;  %v6748_v12 = vld [vmem:[#allocation26_spill] sm:$0xff] }
 0x248   : > { %v1656_v2 = vsel %vm924_vm4, %v6729_v26, %v6744_v11  ;;  %v742_v8 = vsel %vm740_vm2, %v735_v32, %v6745_v30  ;;  %v921_v27 = vrot.slane %v3127_v58, 1  ;;  %v996_v25 = vrot.slane %v3127_v58, 2 }
 0x249   : > { %v2056_v16 = vadd.f32 %v2040_v39, %v1982_v61  ;;  %v1333_v22 = vadd.f32 %v1317_v56, %v1259_v40  ;;  %v772_v49 = vmul.f32 %v5532_v42, %v742_v8  ;;  %v2459_v28 = vsel %vm999_vm5, %v2440_v31, %v6746_v34  ;;  %v6750_v61 = vld [vmem:[#allocation25_spill] sm:$0xff] }
 0x24a   : > { %v1572_v26 = vmul.f32 %v5493_v7, %v1548_v37  ;;  %v817_v35 = vsel %vm815_vm3, %v812_v45, %v6747_v51  ;;  %v926_v17 = vsel %vm924_vm4, %v921_v27, %v6748_v12  ;;  %v881_v42 = vmul.f32 %v3127_v58, %v5544_v14 }
 0x24b   : > { %v2130_v19 = vadd.f32 %v2114_v21, %v2056_v16  ;;  %v1407_v39 = vadd.f32 %v1391_v18, %v1333_v22  ;;  %v847_v56 = vmul.f32 %v5538_v57, %v817_v35  ;;  %v1606_v46 = vmul.f32 %v3125_v29, %v5500_v20  ;;  %v6756_v35 = vld [vmem:[#allocation43_spill] sm:$0xff] }
 0x24c   : > { %v1680_v31 = vmul.f32 %v5516_v60, %v1656_v2  ;;  %v6749_v37 = vrot.slane %v6743_v0, 2  ;;  %v1001_v40 = vsel %vm999_vm5, %v996_v25, %v6750_v61  ;;  %v3052_v21 = vpop.eup %3051  ;;  %v956_v14 = vmul.f32 %v5569_v3, %v926_v17  ;;  %v6751_v2 = vld [vmem:[#allocation5_spill] sm:$0xff] }
 0x24d   : > { %v2237_v18 = vadd.f32 %v2221_v6, %v2130_v19  ;;  %v1514_v11 = vadd.f32 %v1498_v48, %v1407_v39  ;;  %v863_v57 = vadd.f32 %v847_v56, %v772_v49  ;;  %v2584_v30 = vadd.f32 1.0, %v3052_v21  ;;  %v6758_v56 = vld [vmem:[#allocation45_spill] sm:$0xff] }
 0x24e   : > { %v1730_v32 = vsel %vm999_vm5, %v6733_v10, %v6749_v37  ;;  %v1031_v29 = vmul.f32 %v5575_v1, %v1001_v40  ;;  %v6752_v8 = vrot.slane %v6751_v2, 6  ;;  %v6753_v0 = vrot.slane %v5843_v41, 6  ;;  %v3128_v40 = vld [vmem:[#allocation2 + $0x110] sm:$0xff] }
 0x24f   : > { %v6754_v45 = vrot.slane %v6751_v2, 7  ;;  %v6755_v58 = vrot.slane %v5843_v41, 7  ;;  %v2311_v48 = vadd.f32 %v2295_v36, %v2237_v18  ;;  %v1588_v27 = vadd.f32 %v1572_v26, %v1514_v11  ;;  %v1441_v41 = vld [vmem:[#allocation2 + $0x120] sm:$0xff] }
 0x250   : > { %v1108_v10 = vsel %vm740_vm2, %v6753_v0, %v6752_v8  ;;  %v897_v3 = vadd.f32 %v881_v42, %v863_v57  ;;  %v1286_v16 = vrot.slane %v6751_v2, 1  ;;  %3053 = vrcp.f32 %v2584_v30  ;;  %v6762_v0 = vld [vmem:[#allocation9_spill] sm:$0xff] }
 0x251   : > { %v1182_v6 = vsel %vm815_vm3, %v6755_v58, %v6754_v45  ;;  %v2477_v1 = vmul.f32 %v5808_v43, %v2459_v28  ;;  %v1754_v22 = vmul.f32 %v5856_v53, %v1730_v32  ;;  %v2345_v49 = vadd.f32 %v5891_v23, %v2311_v48  ;;  %v6763_v58 = vld [vmem:[#allocation46_spill] sm:$0xff] }
 0x252   : > { %v1622_v25 = vadd.f32 %v1606_v46, %v1588_v27  ;;  %v972_v34 = vadd.f32 %v956_v14, %v897_v3  ;;  %v1138_v51 = vmul.f32 %v5594_v33, %v1108_v10  ;;  %v1861_v12 = vmul.f32 %v5840_v13, %v6756_v35  ;;  %v6765_v27 = vld [vmem:[#allocation34_spill] sm:$0xff] }
 0x253   : > { %v1212_v36 = vmul.f32 %v5611_v59, %v1182_v6  ;;  %v1360_v26 = vrot.slane %v6751_v2, 2  ;;  %v2419_v17 = vadd.f32 %v2403_v5, %v2345_v49  ;;  %v6757_v28 = vrot.slane %v5550_v44, 1  ;;  %v6764_v6 = vld [vmem:[#allocation30_spill] sm:$0xff] }
 0x254   : > { %v1696_v19 = vadd.f32 %v1680_v31, %v1622_v25  ;;  %v1047_v39 = vadd.f32 %v1031_v29, %v972_v34  ;;  %v1935_v42 = vmul.f32 %v5862_v55, %v6758_v56  ;;  %v1467_v33 = vrot.slane %v1441_v41, 6 }
 0x255   : > { %v1290_v23 = vsel %vm924_vm4, %v1286_v16, %v6757_v28  ;;  %v2493_v46 = vadd.f32 %v2477_v1, %v2419_v17  ;;  %v1246_v59 = vmul.f32 %v5624_v52, %v6751_v2  ;;  %v1969_v5 = vmul.f32 %v3128_v40, %v5830_v4  ;;  %v6760_v52 = vld [vmem:[#allocation39_spill] sm:$0xff]  ;;  %v6761_v2 = vld [vmem:[#allocation41_spill] sm:$0xff]  ;;  %v3129_v16 = vld [vmem:[#allocation2 + $0x128] sm:$0xff] }
 0x256   : > { %v1770_v37 = vadd.f32 %v1754_v22, %v1696_v19  ;;  %v1154_v32 = vadd.f32 %v1138_v51, %v1047_v39  ;;  %v3054_v61 = vpop.eup %3053  ;;  %v1320_v31 = vmul.f32 %v5646_v38, %v1290_v23  ;;  %v6759_v21 = vrot.slane %v5550_v44, 2  ;;  %v1804_v51 = vld [vmem:[#allocation2 + $0x140] sm:$0xff]  ;;  %v6767_v17 = vld [vmem:[#allocation52_spill] sm:$0xff] }
 0x257   : > { %v1541_v11 = vrot.slane %v1441_v41, 7  ;;  %v2616_v57 = vmul.f32 %v3054_v61, %v5901_v24  ;;  %v6002_v14 = vadd.f32 %v5898_v50, %v2493_v46  ;;  %v2043_v8 = vmul.f32 %v6761_v2, %v6760_v52  ;;  %v6766_v41 = vld [vmem:[#allocation3_spill] sm:$0xff] }
 0x258   : > { %v1364_v18 = vsel %vm999_vm5, %v1360_v26, %v6759_v21  ;;  %v1877_v30 = vadd.f32 %v1861_v12, %v1770_v37  ;;  %v1228_v29 = vadd.f32 %v1212_v36, %v1154_v32  ;;  %v1471_v38 = vsel %vm740_vm2, %v1467_v33, %v6762_v0  ;;  %v6768_v23 = vld [vmem:[#allocation51_spill] sm:$0xff]  ;;  %v6769_v33 = vld [vmem:[#allocation53_spill] sm:$0xff] }
 0x259   : > { %2663 = vrot.lane.b32.xlu0 %v2616_v57, %s3175_s12  ;;  %v2529_v44 = vsub.f32 0.0, %v6002_v14  ;;  %v1394_v24 = vmul.f32 %v5669_v63, %v1364_v18  ;;  %v2117_v48 = vmul.f32 %v6764_v6, %v6763_v58  ;;  %v1545_v3 = vsel %vm815_vm3, %v1541_v11, %v6765_v27  ;;  %v6772_v57 = vld [vmem:[#allocation22_spill] sm:$0xff] }
 0x25a   : > { %v1951_v10 = vadd.f32 %v1935_v42, %v1877_v30  ;;  %v1262_v45 = vadd.f32 %v1246_v59, %v1228_v29  ;;  %v1649_v1 = vrot.slane %v3129_v16, 1  ;;  %v1501_v34 = vmul.f32 %v5475_v15, %v1471_v38  ;;  %v3130_v59 = vld [vmem:[#allocation2 + $0x130] sm:$0xff]  ;;  %v3131_v38 = vld [vmem:[#allocation2 + $0x148] sm:$0xff] }
 0x25b   : > { %v2553_v22 = vmul.f32 1.442695, %v2529_v44  ;;  %v2224_v35 = vmul.f32 %v5763_v54, %v6766_v41  ;;  %v1723_v12 = vrot.slane %v3129_v16, 2  ;;  %v1575_v26 = vmul.f32 %v5493_v7, %v1545_v3  ;;  %v6770_v7 = vld [vmem:[#allocation13_spill] sm:$0xff] }
 0x25c   : > { %v1985_v49 = vadd.f32 %v1969_v5, %v1951_v10  ;;  %v1336_v25 = vadd.f32 %v1320_v31, %v1262_v45  ;;  %v1653_v19 = vsel %vm924_vm4, %v1649_v1, %v6767_v17  ;;  %v1830_v39 = vrot.slane %v1804_v51, 6  ;;  %v6771_v31 = vld [vmem:[#allocation48_spill] sm:$0xff]  ;;  %v6775_v1 = vld [vmem:[#allocation50_spill] sm:$0xff]  ;;  %v6776_v41 = vld [vmem:[#allocation17_spill] sm:$0xff] }
 0x25d   : > { %3055 = vpow2.f32 %v2553_v22  ;;  %v2298_v56 = vmul.f32 %v5785_v9, %v6768_v23  ;;  %v1609_v42 = vmul.f32 %v3129_v16, %v5500_v20  ;;  %v1727_v46 = vsel %vm999_vm5, %v1723_v12, %v6769_v33  ;;  %v6774_v10 = vld [vmem:[#allocation20_spill] sm:$0xff] }
 0x25e   : > { %v2059_v63 = vadd.f32 %v2043_v8, %v1985_v49  ;;  %v1410_v36 = vadd.f32 %v1394_v24, %v1336_v25  ;;  %v1904_v37 = vrot.slane %v1804_v51, 7  ;;  %v2332_v61 = vmul.f32 %v3130_v59, %v6770_v7  ;;  %v6773_v8 = vld [vmem:[#allocation49_spill] sm:$0xff] }
 0x25f   : > { %v1683_v5 = vmul.f32 %v5516_v60, %v1653_v19  ;;  %v1834_v21 = vsel %vm740_vm2, %v1830_v39, %v6771_v31  ;;  %v2406_v20 = vmul.f32 %v5798_v62, %v6772_v57  ;;  %v1757_v29 = vmul.f32 %v5856_v53, %v1727_v46  ;;  %v2638_v57 = vpop.permute.xlu1 %2637 }
 0x260   : > { %v2133_v28 = vadd.f32 %v2117_v48, %v2059_v63  ;;  %v1517_v15 = vadd.f32 %v1501_v34, %v1410_v36  ;;  %v1908_v0 = vsel %vm815_vm3, %v1904_v37, %v6773_v8  ;;  %v2012_v44 = vrot.slane %v3131_v38, 1  ;;  %v2167_v48 = vld [vmem:[#allocation2 + $0x160] sm:$0xff]  ;;  %2684 = vst.msk [vmem:[%s3349_s17 + $0x10] sm:$0xff] %vm2681_vm6, %v2638_v57 }
 0x261   : > { %v2480_v45 = vmul.f32 %v5808_v43, %v6774_v10  ;;  %v1864_v58 = vmul.f32 %v5840_v13, %v1834_v21  ;;  %v2086_v27 = vrot.slane %v3131_v38, 2  ;;  %v1938_v53 = vmul.f32 %v5862_v55, %v1908_v0 }
 0x262   : > { %v2240_v32 = vadd.f32 %v2224_v35, %v2133_v28  ;;  %v1591_v40 = vadd.f32 %v1575_v26, %v1517_v15  ;;  %v2016_v22 = vsel %vm924_vm4, %v2012_v44, %v6775_v1  ;;  %v2193_v49 = vrot.slane %v2167_v48, 6  ;;  %v6777_v26 = vld [vmem:[#allocation10_spill] sm:$0xff] }
 0x263   : > { %v3056_v18 = vpop.eup %3055  ;;  %v1972_v51 = vmul.f32 %v3131_v38, %v5830_v4  ;;  %v2090_v13 = vsel %vm999_vm5, %v2086_v27, %v6776_v41  ;;  %v2267_v35 = vrot.slane %v2167_v48, 7  ;;  %v2046_v36 = vmul.f32 %v6761_v2, %v2016_v22 }
 0x264   : > { %v2314_v11 = vadd.f32 %v2298_v56, %v2240_v32  ;;  %v1625_v30 = vadd.f32 %v1609_v42, %v1591_v40  ;;  %v2577_v52 = vadd.f32 1.0, %v3056_v18  ;;  %v6778_v17 = vrot.slane %v6777_v26, 6  ;;  %v6780_v32 = vld [vmem:[#allocation16_spill] sm:$0xff] }
 0x265   : > { %v2120_v23 = vmul.f32 %v6764_v6, %v2090_v13  ;;  %v6779_v56 = vrot.slane %v6777_v26, 7  ;;  %v2375_v42 = vrot.slane %v6777_v26, 1  ;;  %v6781_v59 = vrot.slane %v6780_v32, 1 }
 0x266   : > { %v2348_v60 = vadd.f32 %v2332_v61, %v2314_v11  ;;  %v1699_v24 = vadd.f32 %v1683_v5, %v1625_v30  ;;  %3057 = vrcp.f32 %v2577_v52  ;;  %v2197_v19 = vsel %vm740_vm2, %v2193_v49, %v6778_v17  ;;  %v2642_v11 = vpop.permute.xlu2 %2641 }
 0x267   : > { %v2271_v15 = vsel %vm815_vm3, %v2267_v35, %v6779_v56  ;;  %v2227_v46 = vmul.f32 %v5763_v54, %v2197_v19  ;;  %v2379_v61 = vsel %vm924_vm4, %v2375_v42, %v6781_v59  ;;  %v2335_v5 = vmul.f32 %v6770_v7, %v6777_v26  ;;  %2686 = vst.msk [vmem:[%s3349_s17 + $0x20] sm:$0xff] %vm2681_vm6, %v2642_v11  ;;  %v2640_v0 = vpop.permute.xlu1 %2639 }
 0x268   : > { %v2422_v3 = vadd.f32 %v2406_v20, %v2348_v60  ;;  %v1773_v16 = vadd.f32 %v1757_v29, %v1699_v24  ;;  %v2301_v6 = vmul.f32 %v5785_v9, %v2271_v15  ;;  %v6782_v31 = vrot.slane %v6780_v32, 2  ;;  %v2634_v9 = vpop.permute.xlu0 %2633  ;;  %2685 = vst.msk [vmem:[%s3349_s17 + $0x18] sm:$0xff] %vm2681_vm6, %v2640_v0 }
 0x269   : > { %v2409_v18 = vmul.f32 %v5798_v62, %v2379_v61  ;;  %2682 = vst.msk [vmem:[%s3349_s17] sm:$0xff] %vm2681_vm6, %v2634_v9 }
 0x26a   : > { %v2496_v25 = vadd.f32 %v2480_v45, %v2422_v3  ;;  %v1880_v34 = vadd.f32 %v1864_v58, %v1773_v16 }
 0x26c   : > { %v2516_v12 = vadd.f32 %v5898_v50, %v2496_v25  ;;  %v1954_v63 = vadd.f32 %v1938_v53, %v1880_v34  ;;  %v3058_v55 = vpop.eup %3057 }
 0x26d   : > { %v2609_v39 = vmul.f32 %v3058_v55, %v6002_v14  ;;  %v2449_v14 = vrot.slane %v6777_v26, 2 }
 0x26e   : > { %v2532_v28 = vsub.f32 0.0, %v2516_v12  ;;  %v1988_v4 = vadd.f32 %v1972_v51, %v1954_v63 }
 0x26f   : > { %2649 = vrot.lane.b32.xlu2 %v2609_v39, %s3175_s12  ;;  %v2453_v54 = vsel %vm999_vm5, %v2449_v14, %v6782_v31  ;;  %v2648_v27 = vpop.permute.xlu1 %2647 }
 0x270   : > { %v2559_v2 = vmul.f32 1.442695, %v2532_v28  ;;  %v2062_v33 = vadd.f32 %v2046_v36, %v1988_v4  ;;  %v2483_v7 = vmul.f32 %v5808_v43, %v2453_v54  ;;  %v2636_v8 = vpop.permute.xlu0 %2635  ;;  %2689 = vst.msk [vmem:[%s3349_s17 + $0x38] sm:$0xff] %vm2681_vm6, %v2648_v27 }
 0x271   : > { %2683 = vst.msk [vmem:[%s3349_s17 + $0x8] sm:$0xff] %vm2681_vm6, %v2636_v8 }
 0x272   : > { %3059 = vpow2.f32 %v2559_v2  ;;  %v2136_v37 = vadd.f32 %v2120_v23, %v2062_v33 }
 0x274   : > { %v2243_v40 = vadd.f32 %v2227_v46, %v2136_v37 }
 0x276   : > { %v2317_v21 = vadd.f32 %v2301_v6, %v2243_v40 }
 0x277   : > { %v2654_v16 = vpop.permute.xlu1 %2653 }
 0x278   : > { %v3060_v20 = vpop.eup %3059  ;;  %v2351_v30 = vadd.f32 %v2335_v5, %v2317_v21  ;;  %v2646_v10 = vpop.permute.xlu0 %2645  ;;  %2692 = vst.msk [vmem:[%s3349_s17 + $0x50] sm:$0xff] %vm2681_vm6, %v2654_v16 }
 0x279   : > { %v2580_v29 = vadd.f32 1.0, %v3060_v20  ;;  %2688 = vst.msk [vmem:[%s3349_s17 + $0x30] sm:$0xff] %vm2681_vm6, %v2646_v10 }
 0x27a   : > { %v2425_v47 = vadd.f32 %v2409_v18, %v2351_v30 }
 0x27b   : > { %3061 = vrcp.f32 %v2580_v29 }
 0x27c   : > { %v2499_v62 = vadd.f32 %v2483_v7, %v2425_v47 }
 0x27e   : > { %v2519_v52 = vadd.f32 %v5898_v50, %v2499_v62 }
 0x280   : > { %v2535_v38 = vsub.f32 0.0, %v2519_v52  ;;  %v2652_v3 = vpop.permute.xlu0 %2651 }
 0x281   : > { %v3062_v43 = vpop.eup %3061  ;;  %2691 = vst.msk [vmem:[%s3349_s17 + $0x48] sm:$0xff] %vm2681_vm6, %v2652_v3 }
 0x282   : > { %v2612_v44 = vmul.f32 %v3062_v43, %v2516_v12  ;;  %v2565_v60 = vmul.f32 1.442695, %v2535_v38 }
 0x284   : > { %2655 = vrot.lane.b32.xlu2 %v2612_v44, %s3175_s12  ;;  %3063 = vpow2.f32 %v2565_v60  ;;  %v2644_v45 = vpop.permute.xlu2 %2643 }
 0x285   : > { %2687 = vst.msk [vmem:[%s3349_s17 + $0x28] sm:$0xff] %vm2681_vm6, %v2644_v45 }
 0x288   : > { %v2658_v53 = vpop.permute.xlu0 %2657 }
 0x289   : > { %2694 = vst.msk [vmem:[%s3349_s17 + $0x60] sm:$0xff] %vm2681_vm6, %v2658_v53 }
 0x28a   : > { %v3064_v50 = vpop.eup %3063 }
 0x28b   : > { %v2583_v24 = vadd.f32 1.0, %v3064_v50 }
 0x28d   : > { %3065 = vrcp.f32 %v2583_v24 }
 0x293   : > { %v3066_v58 = vpop.eup %3065 }
 0x294   : > { %v2615_v48 = vmul.f32 %v3066_v58, %v2519_v52 }
 0x296   : > { %2661 = vrot.lane.b32.xlu2 %v2615_v48, %s3175_s12 }
 0x2b6   : > { %v2660_v22 = vpop.permute.xlu1 %2659 }
 0x2b7   : > { %2695 = vst.msk [vmem:[%s3349_s17 + $0x68] sm:$0xff] %vm2681_vm6, %v2660_v22 }
 0x2c9   : > { %v2650_v1 = vpop.permute.xlu2 %2649 }
 0x2ca   : > { %2690 = vst.msk [vmem:[%s3349_s17 + $0x40] sm:$0xff] %vm2681_vm6, %v2650_v1 }
 0x2cb   : > { %v2664_v49 = vpop.permute.xlu0 %2663 }
 0x2cc   : > { %2697 = vst.msk [vmem:[%s3349_s17 + $0x78] sm:$0xff] %vm2681_vm6, %v2664_v49 }
 0x2de   : > { %v2656_v25 = vpop.permute.xlu2 %2655 }
 0x2df   : > { %2693 = vst.msk [vmem:[%s3349_s17 + $0x58] sm:$0xff] %vm2681_vm6, %v2656_v25 }
 0x2f0   : > { %v2662_v34 = vpop.permute.xlu2 %2661 }
 0x2f1   : > { %2696 = vst.msk [vmem:[%s3349_s17 + $0x70] sm:$0xff] %vm2681_vm6, %v2662_v34 }
 0x2f2 PF: > { %s15_s22 = sadd.s32 1, %s3170_s22   ;;  %s6783_s18 = smov %s3162_s20 }
 0x2f3   : > { %p12_p9 = scmp.ge.s32.totalorder %s15_s22, 6   ;;  %s6784_s19 = smov %s3166_s21 }
 0x2f4   : > { %s6785_s20 = smov %s6788_s23  ;;  %s6786_s21 = smov %s6792_s24 }
 0x2f5   :  { %14 = sbr.rel (!%p12_p9) target bundleno = 3 (0x3), region = 84 }

</bundles_post_ra>
